<compile_context>
chip_gen: v6e
topology: v6e:2x2x1
jax: 0.10.0
libtpu: 0.0.40
codegen_flags: <defaults>
</compile_context>

<pallas_src>
import functools

import jax
import jax.numpy as jnp
from jax.experimental import pallas as pl
from jax.experimental.pallas import tpu as pltpu

P_DROP = 0.2
LAYER_SIZES = [784, 512, 256, 10]
NUM_CLASSES = LAYER_SIZES[-1]
PAD_OUT = 128           # lane-dense padded width of the fc3 output
DEFAULT_TILE_M = 512    # batch-tile rows (512-1024 ~= 85% of HBM roofline)


def _round_up(a, b):
    return ((a + b - 1) // b) * b


# ---------------------------------------------------------------------------
# Kernel bodies
# ---------------------------------------------------------------------------
def _mlp_block(x, m1, m2, w1_ref, b1_ref, w2_ref, b2_ref, w3_ref, b3_ref):
    """One stochastic forward pass for a (tile_m, 784) bf16 tile -> f32 log-probs."""
    # fc1 + relu + Dropout1d (row-wise scale mask broadcast over lanes)
    h = jnp.dot(x, w1_ref[...], preferred_element_type=jnp.float32) + b1_ref[...]
    h = jnp.maximum(h, 0.0) * m1
    # fc2 + relu + Dropout1d
    h = jnp.dot(h.astype(jnp.bfloat16), w2_ref[...],
                preferred_element_type=jnp.float32) + b2_ref[...]
    h = jnp.maximum(h, 0.0) * m2
    # fc3 (padded to 128 lanes; pad bias = -1e30 so padded lanes vanish) + log_softmax
    logits = jnp.dot(h.astype(jnp.bfloat16), w3_ref[...],
                     preferred_element_type=jnp.float32) + b3_ref[...]
    mx = jnp.max(logits, axis=-1, keepdims=True)
    lse = mx + jnp.log(jnp.sum(jnp.exp(logits - mx), axis=-1, keepdims=True))
    return logits - lse


def samples_kernel(x_ref, m_ref, w1_ref, b1_ref, w2_ref, b2_ref,
                   w3_ref, b3_ref, out_ref):
    """Per-sample log-probs; grid = (batch_tiles, samples)."""
    mm = m_ref[...]                                   # (tile_m, 2) dropout scales
    out_ref[...] = _mlp_block(x_ref[...], mm[:, 0:1], mm[:, 1:2],
                              w1_ref, b1_ref, w2_ref, b2_ref, w3_ref, b3_ref)


def mean_kernel(x_ref, m_ref, w1_ref, b1_ref, w2_ref, b2_ref,
                w3_ref, b3_ref, out_ref, *, inv_s):
    """MC-dropout mean accumulated in the VMEM-resident output block."""
    s = pl.program_id(1)
    mm = m_ref[...]
    lp = _mlp_block(x_ref[...], mm[:, 0:1], mm[:, 1:2],
                    w1_ref, b1_ref, w2_ref, b2_ref, w3_ref, b3_ref)

    @pl.when(s == 0)
    def _():
        out_ref[...] = jnp.zeros_like(out_ref)

    out_ref[...] += lp * inv_s


# ---------------------------------------------------------------------------
# pallas_call wrapper
# ---------------------------------------------------------------------------
@functools.partial(jax.jit,
                   static_argnames=("tile_m", "reduce_mean", "buffered_weights"))
def _fused_forward(x, masks, w1, b1, w2, b2, w3p, b3p, *,
                   tile_m, reduce_mean, buffered_weights):
    b_pad, feat = x.shape
    n_samples = masks.shape[0]
    grid = (b_pad // tile_m, n_samples)

    def pinned(arr):
        # Weights/biases always map to block (0, 0): DMA'd once, VMEM-resident.
        # Buffered(1) drops the pointless double buffer when supported.
        if buffered_weights:
            return pl.BlockSpec(arr.shape, lambda i, s: (0, 0),
                                pipeline_mode=pl.Buffered(1))
        return pl.BlockSpec(arr.shape, lambda i, s: (0, 0))

    in_specs = [
        # x: block index ignores the sample axis -> fetched once per batch tile,
        # revisited for every MC sample (no S-fold replication in HBM).
        pl.BlockSpec((tile_m, feat), lambda i, s: (i, 0)),
        # merged Dropout1d scale masks (S, B_pad, 2); leading sample dim squeezed.
        pl.BlockSpec((None, tile_m, 2), lambda i, s: (s, i, 0)),
        pinned(w1), pinned(b1), pinned(w2), pinned(b2), pinned(w3p), pinned(b3p),
    ]

    if reduce_mean:
        kernel = functools.partial(mean_kernel, inv_s=1.0 / n_samples)
        out_shape = jax.ShapeDtypeStruct((b_pad, PAD_OUT), jnp.float32)
        # Output block constant across the sample axis -> accumulator pattern;
        # sample axis must be "arbitrary", batch axis is "parallel".
        out_specs = pl.BlockSpec((tile_m, PAD_OUT), lambda i, s: (i, 0))
        dims = ("parallel", "arbitrary")
    else:
        kernel = samples_kernel
        out_shape = jax.ShapeDtypeStruct((n_samples, b_pad, PAD_OUT), jnp.float32)
        out_specs = pl.BlockSpec((None, tile_m, PAD_OUT), lambda i, s: (s, i, 0))
        # Every (batch tile, sample) output is independent -> both axes
        # "parallel" so v7x can split over samples when the batch is tiny.
        dims = ("parallel", "parallel")

    return pl.pallas_call(
        kernel,
        out_shape=out_shape,
        grid=grid,
        in_specs=in_specs,
        out_specs=out_specs,
        compiler_params=pltpu.CompilerParams(dimension_semantics=dims),
    )(x, masks, w1, b1, w2, b2, w3p, b3p)


_BUFFERED_WEIGHTS_OK = None   # None = unknown; probed on first call


def _call_fused(x, masks, weights, *, tile_m, reduce_mean):
    global _BUFFERED_WEIGHTS_OK
    if _BUFFERED_WEIGHTS_OK is None:
        try:
            out = jax.block_until_ready(
                _fused_forward(x, masks, *weights, tile_m=tile_m,
                               reduce_mean=reduce_mean, buffered_weights=True))
            _BUFFERED_WEIGHTS_OK = True
            return out
        except Exception:
            # pl.Buffered(1) not supported by this jax/libtpu build -> plain specs.
            _BUFFERED_WEIGHTS_OK = False
    return _fused_forward(x, masks, *weights, tile_m=tile_m,
                          reduce_mean=reduce_mean,
                          buffered_weights=_BUFFERED_WEIGHTS_OK)


# ---------------------------------------------------------------------------
# Host-side preparation
# ---------------------------------------------------------------------------
def _prep_weights(params):
    """Cast weights to bf16 and pad fc3 to 128 output lanes; biases stay f32."""
    w1, b1, w2, b2, w3, b3 = params
    n_out = w3.shape[1]
    w3p = jnp.zeros((w3.shape[0], PAD_OUT), jnp.float32).at[:, :n_out].set(w3)
    b3p = jnp.full((1, PAD_OUT), -1e30, jnp.float32).at[:, :n_out].set(b3)
    return (w1.astype(jnp.bfloat16), b1.astype(jnp.float32),
            w2.astype(jnp.bfloat16), b2.astype(jnp.float32),
            w3p.astype(jnp.bfloat16), b3p.astype(jnp.float32))


def _choose_tiling(batch, tile_m):
    """Rows padded to a multiple of 16 (bf16 sublane pack); >= 2 batch tiles
    whenever there are > 16 rows so the "parallel" axis feeds both v7x cores."""
    b_pad0 = _round_up(max(batch, 1), 16)
    cap = max(16, _round_up(tile_m, 16))
    n_tiles = -(-b_pad0 // cap)
    if b_pad0 > 16:
        n_tiles = max(n_tiles, 2)
    tile = _round_up(-(-b_pad0 // n_tiles), 16)
    return tile, tile * n_tiles


def _prep_inputs(x, key, num_samples, tile_m):
    batch = x.shape[0]
    n_samples = int(num_samples)
    tile, b_pad = _choose_tiling(batch, tile_m)

    # x streamed once, in bf16 (largest operand -> halves dominant HBM bytes).
    x_bf = jnp.pad(x, ((0, b_pad - batch), (0, 0))).astype(jnp.bfloat16)

    # Row-wise Dropout1d scale masks: PyTorch treats a 2-D input to nn.Dropout1d
    # as (C, L), zeroing whole activation rows with prob p and scaling kept rows
    # by 1/(1-p).  Independent per (sample, row, layer); merged into (S, B_pad, 2).
    # TODO(synk): exact torch RNG bit-stream is not reproduced (jax.random here).
    keep = 1.0 - P_DROP
    k1, k2 = jax.random.split(key)
    bern = jnp.stack([jax.random.bernoulli(k1, keep, (n_samples, batch)),
                      jax.random.bernoulli(k2, keep, (n_samples, batch))], axis=-1)
    masks = jnp.where(bern, 1.0 / keep, 0.0).astype(jnp.float32)
    masks = jnp.pad(masks, ((0, 0), (0, b_pad - batch), (0, 0)),
                    constant_values=1.0)
    return x_bf, masks, tile


# ---------------------------------------------------------------------------
# Public API
# ---------------------------------------------------------------------------
def net_mc_dropout_v2_forward(x, params, key, num_samples=1, tile_m=DEFAULT_TILE_M):
    """`num_samples` stochastic forward passes fused into one kernel launch.
    Returns log-probs of shape (num_samples, B, 10)."""
    batch = x.shape[0]
    x_bf, masks, tile = _prep_inputs(x, key, num_samples, tile_m)
    weights = _prep_weights(params)
    out = _call_fused(x_bf, masks, weights, tile_m=tile, reduce_mean=False)
    return out[:, :batch, :NUM_CLASSES]


def mc_dropout_predict(x, params, num_samples, key, tile_m=DEFAULT_TILE_M):
    """Mean of `num_samples` stochastic passes, accumulated inside the kernel."""
    batch = x.shape[0]
    x_bf, masks, tile = _prep_inputs(x, key, num_samples, tile_m)
    weights = _prep_weights(params)
    out = _call_fused(x_bf, masks, weights, tile_m=tile, reduce_mean=True)
    return out[:batch, :NUM_CLASSES]


def init_params(key):
    """nn.Linear-style init: U(-1/sqrt(fan_in), 1/sqrt(fan_in))."""
    params = []
    for i in range(3):
        fan_in, fan_out = LAYER_SIZES[i], LAYER_SIZES[i + 1]
        key, kw, kb = jax.random.split(key, 3)
        bound = 1.0 / float(fan_in) ** 0.5
        w = jax.random.uniform(kw, (fan_in, fan_out), jnp.float32, -bound, bound)
        b = jax.random.uniform(kb, (1, fan_out), jnp.float32, -bound, bound)
        params += [w, b]
    return params


if __name__ == "__main__":
    key = jax.random.PRNGKey(0)
    kp, kx, kf, km = jax.random.split(key, 4)
    params = init_params(kp)

    B = 8
    x = jax.random.normal(kx, (B, LAYER_SIZES[0]), dtype=jnp.float32)

    # Single stochastic forward pass (== NetMCDropoutV2.forward).
    log_probs = jax.block_until_ready(
        net_mc_dropout_v2_forward(x, params, kf, num_samples=1))[0]

    # MC-dropout prediction: mean over 4 samples, accumulated in-kernel.
    S = 4
    mc_pred = jax.block_until_ready(mc_dropout_predict(x, params, S, km))

    # Cross-check the in-kernel mean against the per-sample path
    # (same key => identical dropout masks).
    per_sample = jax.block_until_ready(
        net_mc_dropout_v2_forward(x, params, km, num_samples=S))
    ref_mean = jnp.mean(per_sample, axis=0)

    assert log_probs.shape == (B, NUM_CLASSES)
    assert mc_pred.shape == (B, NUM_CLASSES)
    assert per_sample.shape == (S, B, NUM_CLASSES)
    row_sums = jnp.sum(jnp.exp(log_probs), axis=1)
    assert bool(jnp.all(jnp.isfinite(log_probs)))
    assert bool(jnp.all(jnp.isfinite(mc_pred)))
    assert bool(jnp.all(jnp.abs(row_sums - 1.0) < 1e-3))
    assert bool(jnp.max(jnp.abs(ref_mean - mc_pred)) < 1e-4)
    print("KERNEL_OK")
</pallas_src>

<mosaic_0001>
module attributes {stable_mosaic.version = 11 : i64} {
  func.func @samples_kernel(%arg0: i32, %arg1: i32, %arg2: memref<16x784xbf16, #tpu.memory_space<vmem>>, %arg3: memref<1x16x2xf32, #tpu.memory_space<vmem>>, %arg4: memref<784x512xbf16, #tpu.memory_space<vmem>>, %arg5: memref<1x512xf32, #tpu.memory_space<vmem>>, %arg6: memref<512x256xbf16, #tpu.memory_space<vmem>>, %arg7: memref<1x256xf32, #tpu.memory_space<vmem>>, %arg8: memref<256x128xbf16, #tpu.memory_space<vmem>>, %arg9: memref<1x128xf32, #tpu.memory_space<vmem>>, %arg10: memref<1x16x128xf32, #tpu.memory_space<vmem>>) attributes {dimension_semantics = [#tpu.dimension_semantics<parallel>, #tpu.dimension_semantics<parallel>], iteration_bounds = array<i64: 1, 1>, scalar_prefetch = 0 : i64, scratch_operands = 0 : i64, tpu.core_type = #tpu.core_type<tc>, window_params = [{transform_indices = @transform_0, window_bounds = array<i64: 16, 784>}, {transform_indices = @transform_1, window_bounds = array<i64: 1, 16, 2>}, {pipeline_mode = #tpu.pipeline_mode<synchronous>, transform_indices = @transform_2, window_bounds = array<i64: 784, 512>}, {pipeline_mode = #tpu.pipeline_mode<synchronous>, transform_indices = @transform_3, window_bounds = array<i64: 1, 512>}, {pipeline_mode = #tpu.pipeline_mode<synchronous>, transform_indices = @transform_4, window_bounds = array<i64: 512, 256>}, {pipeline_mode = #tpu.pipeline_mode<synchronous>, transform_indices = @transform_5, window_bounds = array<i64: 1, 256>}, {pipeline_mode = #tpu.pipeline_mode<synchronous>, transform_indices = @transform_6, window_bounds = array<i64: 256, 128>}, {pipeline_mode = #tpu.pipeline_mode<synchronous>, transform_indices = @transform_7, window_bounds = array<i64: 1, 128>}, {transform_indices = @transform_8, window_bounds = array<i64: 1, 16, 128>}]} {
    %c0 = arith.constant 0 : index
    %c0_0 = arith.constant 0 : index
    %c0_1 = arith.constant 0 : index
    %0 = vector.load %arg3[%c0, %c0_0, %c0_1] : memref<1x16x2xf32, #tpu.memory_space<vmem>>, vector<1x16x2xf32>
    %1 = vector.shape_cast %0 : vector<1x16x2xf32> to vector<16x2xf32>
    %c0_2 = arith.constant 0 : index
    %c0_3 = arith.constant 0 : index
    %2 = vector.load %arg2[%c0_2, %c0_3] : memref<16x784xbf16, #tpu.memory_space<vmem>>, vector<16x784xbf16>
    %3 = vector.extract_strided_slice %1 {offsets = [0, 0], sizes = [16, 1], strides = [1, 1]} : vector<16x2xf32> to vector<16x1xf32>
    %4 = vector.extract_strided_slice %1 {offsets = [0, 1], sizes = [16, 1], strides = [1, 1]} : vector<16x2xf32> to vector<16x1xf32>
    %c0_4 = arith.constant 0 : index
    %c0_5 = arith.constant 0 : index
    %5 = vector.load %arg4[%c0_4, %c0_5] : memref<784x512xbf16, #tpu.memory_space<vmem>>, vector<784x512xbf16>
    %cst = arith.constant dense<0.000000e+00> : vector<16x512xf32>
    %6 = tpu.matmul %2, %5, %cst {dimension_numbers = #tpu.dot_dimension_numbers<[1], [0], [0], [1], [0, 0, 1, 1], [], []>} : vector<16x784xbf16>, vector<784x512xbf16>, vector<16x512xf32> -> vector<16x512xf32>
    %c0_6 = arith.constant 0 : index
    %c0_7 = arith.constant 0 : index
    %7 = vector.load %arg5[%c0_6, %c0_7] : memref<1x512xf32, #tpu.memory_space<vmem>>, vector<1x512xf32>
    %8 = vector.broadcast %7 : vector<1x512xf32> to vector<16x512xf32>
    %9 = arith.addf %6, %8 : vector<16x512xf32>
    %cst_8 = arith.constant 0.000000e+00 : f32
    %10 = vector.broadcast %cst_8 : f32 to vector<16x512xf32>
    %11 = arith.maximumf %9, %10 : vector<16x512xf32>
    %12 = vector.broadcast %3 : vector<16x1xf32> to vector<16x512xf32>
    %13 = arith.mulf %11, %12 : vector<16x512xf32>
    %14 = arith.truncf %13 : vector<16x512xf32> to vector<16x512xbf16>
    %c0_9 = arith.constant 0 : index
    %c0_10 = arith.constant 0 : index
    %15 = vector.load %arg6[%c0_9, %c0_10] : memref<512x256xbf16, #tpu.memory_space<vmem>>, vector<512x256xbf16>
    %cst_11 = arith.constant dense<0.000000e+00> : vector<16x256xf32>
    %16 = tpu.matmul %14, %15, %cst_11 {dimension_numbers = #tpu.dot_dimension_numbers<[1], [0], [0], [1], [0, 0, 1, 1], [], []>} : vector<16x512xbf16>, vector<512x256xbf16>, vector<16x256xf32> -> vector<16x256xf32>
    %c0_12 = arith.constant 0 : index
    %c0_13 = arith.constant 0 : index
    %17 = vector.load %arg7[%c0_12, %c0_13] : memref<1x256xf32, #tpu.memory_space<vmem>>, vector<1x256xf32>
    %18 = vector.broadcast %17 : vector<1x256xf32> to vector<16x256xf32>
    %19 = arith.addf %16, %18 : vector<16x256xf32>
    %cst_14 = arith.constant 0.000000e+00 : f32
    %20 = vector.broadcast %cst_14 : f32 to vector<16x256xf32>
    %21 = arith.maximumf %19, %20 : vector<16x256xf32>
    %22 = vector.broadcast %4 : vector<16x1xf32> to vector<16x256xf32>
    %23 = arith.mulf %21, %22 : vector<16x256xf32>
    %24 = arith.truncf %23 : vector<16x256xf32> to vector<16x256xbf16>
    %c0_15 = arith.constant 0 : index
    %c0_16 = arith.constant 0 : index
    %25 = vector.load %arg8[%c0_15, %c0_16] : memref<256x128xbf16, #tpu.memory_space<vmem>>, vector<256x128xbf16>
    %cst_17 = arith.constant dense<0.000000e+00> : vector<16x128xf32>
    %26 = tpu.matmul %24, %25, %cst_17 {dimension_numbers = #tpu.dot_dimension_numbers<[1], [0], [0], [1], [0, 0, 1, 1], [], []>} : vector<16x256xbf16>, vector<256x128xbf16>, vector<16x128xf32> -> vector<16x128xf32>
    %c0_18 = arith.constant 0 : index
    %c0_19 = arith.constant 0 : index
    %27 = vector.load %arg9[%c0_18, %c0_19] : memref<1x128xf32, #tpu.memory_space<vmem>>, vector<1x128xf32>
    %28 = vector.broadcast %27 : vector<1x128xf32> to vector<16x128xf32>
    %29 = arith.addf %26, %28 : vector<16x128xf32>
    %cst_20 = arith.constant dense<0xFF800000> : vector<16xf32>
    %30 = vector.multi_reduction <maximumf>, %29, %cst_20 [1] : vector<16x128xf32> to vector<16xf32>
    %31 = vector.shape_cast %30 : vector<16xf32> to vector<16x1xf32>
    %32 = vector.broadcast %31 : vector<16x1xf32> to vector<16x128xf32>
    %33 = arith.subf %29, %32 : vector<16x128xf32>
    %34 = math.exp %33 : vector<16x128xf32>
    %cst_21 = arith.constant dense<0.000000e+00> : vector<16xf32>
    %35 = vector.multi_reduction <add>, %34, %cst_21 [1] : vector<16x128xf32> to vector<16xf32>
    %36 = vector.shape_cast %35 : vector<16xf32> to vector<16x1xf32>
    %37 = math.log %36 : vector<16x1xf32>
    %38 = arith.addf %31, %37 : vector<16x1xf32>
    %39 = vector.broadcast %38 : vector<16x1xf32> to vector<16x128xf32>
    %40 = arith.subf %29, %39 : vector<16x128xf32>
    %c0_22 = arith.constant 0 : index
    %c0_23 = arith.constant 0 : index
    %c0_24 = arith.constant 0 : index
    %41 = vector.load %arg10[%c0_22, %c0_23, %c0_24] : memref<1x16x128xf32, #tpu.memory_space<vmem>>, vector<1x16x128xf32>
    %42 = vector.shape_cast %41 : vector<1x16x128xf32> to vector<16x128xf32>
    %43 = vector.shape_cast %40 : vector<16x128xf32> to vector<1x16x128xf32>
    tpu.vector_store %arg10[%c0_22, %c0_23, %c0_24], %43 {strides = array<i32>} : memref<1x16x128xf32, #tpu.memory_space<vmem>>, vector<1x16x128xf32>,
    return
  }
  func.func @transform_0(%arg0: i32, %arg1: i32) -> (i32, i32) {
    %c0_i32 = arith.constant 0 : i32
    %c0_i32_0 = arith.constant 0 : i32
    return %arg0, %c0_i32 : i32, i32
  }
  func.func @transform_1(%arg0: i32, %arg1: i32) -> (i32, i32, i32) {
    %c0_i32 = arith.constant 0 : i32
    %c0_i32_0 = arith.constant 0 : i32
    return %arg1, %arg0, %c0_i32 : i32, i32, i32
  }
  func.func @transform_2(%arg0: i32, %arg1: i32) -> (i32, i32) {
    %c0_i32 = arith.constant 0 : i32
    %c0_i32_0 = arith.constant 0 : i32
    %c0_i32_1 = arith.constant 0 : i32
    return %c0_i32, %c0_i32_0 : i32, i32
  }
  func.func @transform_3(%arg0: i32, %arg1: i32) -> (i32, i32) {
    %c0_i32 = arith.constant 0 : i32
    %c0_i32_0 = arith.constant 0 : i32
    %c0_i32_1 = arith.constant 0 : i32
    return %c0_i32, %c0_i32_0 : i32, i32
  }
  func.func @transform_4(%arg0: i32, %arg1: i32) -> (i32, i32) {
    %c0_i32 = arith.constant 0 : i32
    %c0_i32_0 = arith.constant 0 : i32
    %c0_i32_1 = arith.constant 0 : i32
    return %c0_i32, %c0_i32_0 : i32, i32
  }
  func.func @transform_5(%arg0: i32, %arg1: i32) -> (i32, i32) {
    %c0_i32 = arith.constant 0 : i32
    %c0_i32_0 = arith.constant 0 : i32
    %c0_i32_1 = arith.constant 0 : i32
    return %c0_i32, %c0_i32_0 : i32, i32
  }
  func.func @transform_6(%arg0: i32, %arg1: i32) -> (i32, i32) {
    %c0_i32 = arith.constant 0 : i32
    %c0_i32_0 = arith.constant 0 : i32
    %c0_i32_1 = arith.constant 0 : i32
    return %c0_i32, %c0_i32_0 : i32, i32
  }
  func.func @transform_7(%arg0: i32, %arg1: i32) -> (i32, i32) {
    %c0_i32 = arith.constant 0 : i32
    %c0_i32_0 = arith.constant 0 : i32
    %c0_i32_1 = arith.constant 0 : i32
    return %c0_i32, %c0_i32_0 : i32, i32
  }
  func.func @transform_8(%arg0: i32, %arg1: i32) -> (i32, i32, i32) {
    %c0_i32 = arith.constant 0 : i32
    %c0_i32_0 = arith.constant 0 : i32
    return %arg1, %arg0, %c0_i32 : i32, i32, i32
  }
}

module attributes {stable_mosaic.version = 11 : i64} {
  func.func @samples_kernel(%arg0: i32, %arg1: i32, %arg2: memref<16x784xbf16, #tpu.memory_space<vmem>>, %arg3: memref<1x16x2xf32, #tpu.memory_space<vmem>>, %arg4: memref<784x512xbf16, #tpu.memory_space<vmem>>, %arg5: memref<1x512xf32, #tpu.memory_space<vmem>>, %arg6: memref<512x256xbf16, #tpu.memory_space<vmem>>, %arg7: memref<1x256xf32, #tpu.memory_space<vmem>>, %arg8: memref<256x128xbf16, #tpu.memory_space<vmem>>, %arg9: memref<1x128xf32, #tpu.memory_space<vmem>>, %arg10: memref<1x16x128xf32, #tpu.memory_space<vmem>>) attributes {dimension_semantics = [#tpu.dimension_semantics<parallel>, #tpu.dimension_semantics<parallel>], iteration_bounds = array<i64: 1, 1>, scalar_prefetch = 0 : i64, scratch_operands = 0 : i64, tpu.core_type = #tpu.core_type<tc>, window_params = [{transform_indices = @transform_0, window_bounds = array<i64: 16, 784>}, {transform_indices = @transform_1, window_bounds = array<i64: 1, 16, 2>}, {pipeline_mode = #tpu.pipeline_mode<synchronous>, transform_indices = @transform_2, window_bounds = array<i64: 784, 512>}, {pipeline_mode = #tpu.pipeline_mode<synchronous>, transform_indices = @transform_3, window_bounds = array<i64: 1, 512>}, {pipeline_mode = #tpu.pipeline_mode<synchronous>, transform_indices = @transform_4, window_bounds = array<i64: 512, 256>}, {pipeline_mode = #tpu.pipeline_mode<synchronous>, transform_indices = @transform_5, window_bounds = array<i64: 1, 256>}, {pipeline_mode = #tpu.pipeline_mode<synchronous>, transform_indices = @transform_6, window_bounds = array<i64: 256, 128>}, {pipeline_mode = #tpu.pipeline_mode<synchronous>, transform_indices = @transform_7, window_bounds = array<i64: 1, 128>}, {transform_indices = @transform_8, window_bounds = array<i64: 1, 16, 128>}]} {
    %c0 = arith.constant 0 : index
    %c0_0 = arith.constant 0 : index
    %c0_1 = arith.constant 0 : index
    %0 = vector.load %arg3[%c0, %c0_0, %c0_1] : memref<1x16x2xf32, #tpu.memory_space<vmem>>, vector<1x16x2xf32>
    %1 = vector.shape_cast %0 : vector<1x16x2xf32> to vector<16x2xf32>
    %c0_2 = arith.constant 0 : index
    %c0_3 = arith.constant 0 : index
    %2 = vector.load %arg2[%c0_2, %c0_3] : memref<16x784xbf16, #tpu.memory_space<vmem>>, vector<16x784xbf16>
    %3 = vector.extract_strided_slice %1 {offsets = [0, 0], sizes = [16, 1], strides = [1, 1]} : vector<16x2xf32> to vector<16x1xf32>
    %4 = vector.extract_strided_slice %1 {offsets = [0, 1], sizes = [16, 1], strides = [1, 1]} : vector<16x2xf32> to vector<16x1xf32>
    %c0_4 = arith.constant 0 : index
    %c0_5 = arith.constant 0 : index
    %5 = vector.load %arg4[%c0_4, %c0_5] : memref<784x512xbf16, #tpu.memory_space<vmem>>, vector<784x512xbf16>
    %cst = arith.constant dense<0.000000e+00> : vector<16x512xf32>
    %6 = tpu.matmul %2, %5, %cst {dimension_numbers = #tpu.dot_dimension_numbers<[1], [0], [0], [1], [0, 0, 1, 1], [], []>} : vector<16x784xbf16>, vector<784x512xbf16>, vector<16x512xf32> -> vector<16x512xf32>
    %c0_6 = arith.constant 0 : index
    %c0_7 = arith.constant 0 : index
    %7 = vector.load %arg5[%c0_6, %c0_7] : memref<1x512xf32, #tpu.memory_space<vmem>>, vector<1x512xf32>
    %8 = vector.broadcast %7 : vector<1x512xf32> to vector<16x512xf32>
    %9 = arith.addf %6, %8 : vector<16x512xf32>
    %cst_8 = arith.constant 0.000000e+00 : f32
    %10 = vector.broadcast %cst_8 : f32 to vector<16x512xf32>
    %11 = arith.maximumf %9, %10 : vector<16x512xf32>
    %12 = vector.broadcast %3 : vector<16x1xf32> to vector<16x512xf32>
    %13 = arith.mulf %11, %12 : vector<16x512xf32>
    %14 = arith.truncf %13 : vector<16x512xf32> to vector<16x512xbf16>
    %c0_9 = arith.constant 0 : index
    %c0_10 = arith.constant 0 : index
    %15 = vector.load %arg6[%c0_9, %c0_10] : memref<512x256xbf16, #tpu.memory_space<vmem>>, vector<512x256xbf16>
    %cst_11 = arith.constant dense<0.000000e+00> : vector<16x256xf32>
    %16 = tpu.matmul %14, %15, %cst_11 {dimension_numbers = #tpu.dot_dimension_numbers<[1], [0], [0], [1], [0, 0, 1, 1], [], []>} : vector<16x512xbf16>, vector<512x256xbf16>, vector<16x256xf32> -> vector<16x256xf32>
    %c0_12 = arith.constant 0 : index
    %c0_13 = arith.constant 0 : index
    %17 = vector.load %arg7[%c0_12, %c0_13] : memref<1x256xf32, #tpu.memory_space<vmem>>, vector<1x256xf32>
    %18 = vector.broadcast %17 : vector<1x256xf32> to vector<16x256xf32>
    %19 = arith.addf %16, %18 : vector<16x256xf32>
    %cst_14 = arith.constant 0.000000e+00 : f32
    %20 = vector.broadcast %cst_14 : f32 to vector<16x256xf32>
    %21 = arith.maximumf %19, %20 : vector<16x256xf32>
    %22 = vector.broadcast %4 : vector<16x1xf32> to vector<16x256xf32>
    %23 = arith.mulf %21, %22 : vector<16x256xf32>
    %24 = arith.truncf %23 : vector<16x256xf32> to vector<16x256xbf16>
    %c0_15 = arith.constant 0 : index
    %c0_16 = arith.constant 0 : index
    %25 = vector.load %arg8[%c0_15, %c0_16] : memref<256x128xbf16, #tpu.memory_space<vmem>>, vector<256x128xbf16>
    %cst_17 = arith.constant dense<0.000000e+00> : vector<16x128xf32>
    %26 = tpu.matmul %24, %25, %cst_17 {dimension_numbers = #tpu.dot_dimension_numbers<[1], [0], [0], [1], [0, 0, 1, 1], [], []>} : vector<16x256xbf16>, vector<256x128xbf16>, vector<16x128xf32> -> vector<16x128xf32>
    %c0_18 = arith.constant 0 : index
    %c0_19 = arith.constant 0 : index
    %27 = vector.load %arg9[%c0_18, %c0_19] : memref<1x128xf32, #tpu.memory_space<vmem>>, vector<1x128xf32>
    %28 = vector.broadcast %27 : vector<1x128xf32> to vector<16x128xf32>
    %29 = arith.addf %26, %28 : vector<16x128xf32>
    %cst_20 = arith.constant dense<0xFF800000> : vector<16xf32>
    %30 = vector.multi_reduction <maximumf>, %29, %cst_20 [1] : vector<16x128xf32> to vector<16xf32>
    %31 = vector.shape_cast %30 : vector<16xf32> to vector<16x1xf32>
    %32 = vector.broadcast %31 : vector<16x1xf32> to vector<16x128xf32>
    %33 = arith.subf %29, %32 : vector<16x128xf32>
    %34 = math.exp %33 : vector<16x128xf32>
    %cst_21 = arith.constant dense<0.000000e+00> : vector<16xf32>
    %35 = vector.multi_reduction <add>, %34, %cst_21 [1] : vector<16x128xf32> to vector<16xf32>
    %36 = vector.shape_cast %35 : vector<16xf32> to vector<16x1xf32>
    %37 = math.log %36 : vector<16x1xf32>
    %38 = arith.addf %31, %37 : vector<16x1xf32>
    %39 = vector.broadcast %38 : vector<16x1xf32> to vector<16x128xf32>
    %40 = arith.subf %29, %39 : vector<16x128xf32>
    %c0_22 = arith.constant 0 : index
    %c0_23 = arith.constant 0 : index
    %c0_24 = arith.constant 0 : index
    %41 = vector.load %arg10[%c0_22, %c0_23, %c0_24] : memref<1x16x128xf32, #tpu.memory_space<vmem>>, vector<1x16x128xf32>
    %42 = vector.shape_cast %41 : vector<1x16x128xf32> to vector<16x128xf32>
    %43 = vector.shape_cast %40 : vector<16x128xf32> to vector<1x16x128xf32>
    tpu.vector_store %arg10[%c0_22, %c0_23, %c0_24], %43 {strides = array<i32>} : memref<1x16x128xf32, #tpu.memory_space<vmem>>, vector<1x16x128xf32>,
    return
  }
  func.func @transform_0(%arg0: i32, %arg1: i32) -> (i32, i32) {
    %c0_i32 = arith.constant 0 : i32
    %c0_i32_0 = arith.constant 0 : i32
    return %arg0, %c0_i32 : i32, i32
  }
  func.func @transform_1(%arg0: i32, %arg1: i32) -> (i32, i32, i32) {
    %c0_i32 = arith.constant 0 : i32
    %c0_i32_0 = arith.constant 0 : i32
    return %arg1, %arg0, %c0_i32 : i32, i32, i32
  }
  func.func @transform_2(%arg0: i32, %arg1: i32) -> (i32, i32) {
    %c0_i32 = arith.constant 0 : i32
    %c0_i32_0 = arith.constant 0 : i32
    %c0_i32_1 = arith.constant 0 : i32
    return %c0_i32, %c0_i32_0 : i32, i32
  }
  func.func @transform_3(%arg0: i32, %arg1: i32) -> (i32, i32) {
    %c0_i32 = arith.constant 0 : i32
    %c0_i32_0 = arith.constant 0 : i32
    %c0_i32_1 = arith.constant 0 : i32
    return %c0_i32, %c0_i32_0 : i32, i32
  }
  func.func @transform_4(%arg0: i32, %arg1: i32) -> (i32, i32) {
    %c0_i32 = arith.constant 0 : i32
    %c0_i32_0 = arith.constant 0 : i32
    %c0_i32_1 = arith.constant 0 : i32
    return %c0_i32, %c0_i32_0 : i32, i32
  }
  func.func @transform_5(%arg0: i32, %arg1: i32) -> (i32, i32) {
    %c0_i32 = arith.constant 0 : i32
    %c0_i32_0 = arith.constant 0 : i32
    %c0_i32_1 = arith.constant 0 : i32
    return %c0_i32, %c0_i32_0 : i32, i32
  }
  func.func @transform_6(%arg0: i32, %arg1: i32) -> (i32, i32) {
    %c0_i32 = arith.constant 0 : i32
    %c0_i32_0 = arith.constant 0 : i32
    %c0_i32_1 = arith.constant 0 : i32
    return %c0_i32, %c0_i32_0 : i32, i32
  }
  func.func @transform_7(%arg0: i32, %arg1: i32) -> (i32, i32) {
    %c0_i32 = arith.constant 0 : i32
    %c0_i32_0 = arith.constant 0 : i32
    %c0_i32_1 = arith.constant 0 : i32
    return %c0_i32, %c0_i32_0 : i32, i32
  }
  func.func @transform_8(%arg0: i32, %arg1: i32) -> (i32, i32, i32) {
    %c0_i32 = arith.constant 0 : i32
    %c0_i32_0 = arith.constant 0 : i32
    return %arg1, %arg0, %c0_i32 : i32, i32, i32
  }
}

</mosaic_0001>

<bundles_post_ra>
// kernel: _fused_forward.1
= control target key start
LH: loop header
LB: loop body
LE: loop exit
PB: predicated region body
PF: predicated region fallthrough
CT: control target
= control target key end

     0   :  { %13 = vsyncpa [#allocation3], 0  ;;  %s3441_s0 = inlined_call_operand.hbm [shape: bf16[16,784], index: 0, kind: input, shape index: {}]   ;;  %s3442_s1 = inlined_call_operand.vmem [shape: f32[1,16,2], index: 1, kind: input, shape index: {}]   ;;  %s3443_s2 = inlined_call_operand.hbm [shape: bf16[784,512], index: 2, kind: input, shape index: {}]   ;;  %s3444_s3 = inlined_call_operand.vmem [shape: f32[1,512], index: 3, kind: input, shape index: {}]   ;;  %s3445_s4 = inlined_call_operand.hbm [shape: bf16[512,256], index: 4, kind: input, shape index: {}]   ;;  %s3446_s5 = inlined_call_operand.vmem [shape: f32[1,256], index: 5, kind: input, shape index: {}]   ;;  %s3447_s6 = inlined_call_operand.hbm [shape: bf16[256,128], index: 6, kind: input, shape index: {}]   ;;  %s3448_s7 = inlined_call_operand.vmem [shape: f32[1,128], index: 7, kind: input, shape index: {}]   ;;  %s3449_s8 = inlined_call_operand.hbm [shape: f32[1,16,128], index: 8, kind: output, shape index: {}]  }
   0x1   :  { %14 = vsyncpa [#allocation6], 0 }
   0x2   :  { %15 = vsyncpa [#allocation9], 0 }
   0x3   :  { %16 = vsyncpa [#allocation4], 0  ;;  %s3284_s27 = smov [#allocation5]  }
   0x4   :  { %s36_s28 = sshll.u32 %s3284_s27, 4  ;;  %s37_s28 = int_to_ptr.vmem [resolvable:$true] %s36_s28 }
   0x5   :  { %s3184_s29 = scalar_lea.vmem %s37_s28, 25088  ;;  %p3189_p1 = scmp.lt.s32.totalorder %s37_s28, %s37_s28 }
   0x6   :  { %p3185_p0 = scmp.ne.s32.totalorder %s37_s28, %s3184_s29  ;;  %p3190_p2 = scmp.lt.s32.totalorder %s3184_s29, %s3184_s29 }
   0x8   :  { %p3191_p3 = por %p3190_p2, %p3189_p1 }
   0xa   :  { %p3192_p4 = pnand %p3191_p3, %p3185_p0 }
   0xc   :  { %3195 = shalt.err (!%p3192_p4)
}
   0xd   :  { %s3285_s30 = smov 256   ;;  %s3286_s9 = smov 16  }
   0xe   :  { %42 = dma.hbm_to_vmem [thread:$0]  %s3443_s2, 25088, %s37_s28, [#allocation6], %s3285_s30, %s3285_s30, %s3286_s9  }
   0xf   :  { %s3287_s12 = smov [#allocation2]  }
  0x10   :  { %s22_s13 = sshll.u32 %s3287_s12, 4  ;;  %s23_s13 = int_to_ptr.vmem [resolvable:$true] %s22_s13 }
  0x11   :  { %s3204_s14 = scalar_lea.vmem %s23_s13, 896  ;;  %p3209_p6 = scmp.lt.s32.totalorder %s23_s13, %s23_s13 }
  0x12   :  { %p3205_p5 = scmp.ne.s32.totalorder %s23_s13, %s3204_s14  ;;  %p3210_p7 = scmp.lt.s32.totalorder %s3204_s14, %s3204_s14 }
  0x14   :  { %p3211_p8 = por %p3210_p7, %p3209_p6 }
  0x16   :  { %p3212_p9 = pnand %p3211_p8, %p3205_p5 }
  0x18   :  { %3215 = shalt.err (!%p3212_p9)
}
  0x19   :  { %s3288_s15 = smov 448   ;;  %s3289_s16 = smov 28  }
  0x1a   :  { %28 = dma.hbm_to_vmem [thread:$0]  %s3441_s0, 896, %s23_s13, [#allocation3], %s3288_s15, %s3288_s15, %s3289_s16  }
  0x1b   :  { %s3290_s19 = smov [#allocation7]  }
  0x1c   :  { %s50_s20 = sshll.u32 %s3290_s19, 4  ;;  %s51_s20 = int_to_ptr.vmem [resolvable:$true] %s50_s20 }
  0x1d   :  { %s3224_s2 = scalar_lea.vmem %s51_s20, 8192  ;;  %p3229_p11 = scmp.lt.s32.totalorder %s51_s20, %s51_s20 }
  0x1e   :  { %p3225_p10 = scmp.ne.s32.totalorder %s51_s20, %s3224_s2  ;;  %p3230_p12 = scmp.lt.s32.totalorder %s3224_s2, %s3224_s2 }
  0x20   :  { %p3231_p13 = por %p3230_p12, %p3229_p11 }
  0x22   :  { %p3232_p0 = pnand %p3231_p13, %p3225_p10 }
  0x24   :  { %3235 = shalt.err (!%p3232_p0)
}
  0x25   :  { %s3291_s21 = smov 128   ;;  %s3292_s22 = smov 8  }
  0x26   :  { %56 = dma.hbm_to_vmem [thread:$0]  %s3445_s4, 8192, %s51_s20, [#allocation6], %s3291_s21, %s3291_s21, %s3292_s22  }
  0x27   :  { %s3293_s0 = smov [#allocation8]  }
  0x28   :  { %s64_s25 = sshll.u32 %s3293_s0, 4  ;;  %s65_s25 = int_to_ptr.vmem [resolvable:$true] %s64_s25 }
  0x29   :  { %s3244_s26 = scalar_lea.vmem %s65_s25, 2048  ;;  %p3249_p2 = scmp.lt.s32.totalorder %s65_s25, %s65_s25 }
  0x2a   :  { %p3245_p1 = scmp.ne.s32.totalorder %s65_s25, %s3244_s26  ;;  %p3250_p3 = scmp.lt.s32.totalorder %s3244_s26, %s3244_s26 }
  0x2c   :  { %p3251_p4 = por %p3250_p3, %p3249_p2 }
  0x2e   :  { %p3252_p5 = pnand %p3251_p4, %p3245_p1 }
  0x30   :  { %3255 = shalt.err (!%p3252_p5)
}
  0x31   :  { %s3294_s27 = smov 64   ;;  %s3295_s28 = smov 4  }
  0x32   :  { %70 = dma.hbm_to_vmem [thread:$0]  %s3447_s6, 2048, %s65_s25, [#allocation9], %s3294_s27, %s3294_s27, %s3295_s28  }
  0x33   :  { %3276 = dma.done.wait [#allocation3], 896  }
  0x34   :  { %3277 = vsyncadd [#allocation3], 4294966400 }
  0x35   :  { %3278 = dma.done.wait [#allocation6], 33280  }
  0x36   :  { %3279 = vsyncadd [#allocation6], 4294934016 }
  0x37   :  { %3280 = dma.done.wait [#allocation9], 2048  }
  0x38   :  { %3281 = vsyncadd [#allocation9], 4294965248  ;;  %v3296_v0 = vmov 0   ;;  %v2752_v1 = vld [vmem:[#allocation5 + $0xe4] ss:$16 sps:$4 sm:$0xff]   ;;  %vm1329_vm0 = vcmask 130048  }
  0x39   :  { %2749 = vset.pattern.permute.xlu0 %v3296_v0  ;;  %v2754_v2 = vld [vmem:[#allocation5 + $0x2e4] ss:$16 sps:$4 sm:$0xff]   ;;  %1333 = vmatprep.subr.bf16.mxu0 %v2752_v1  ;;  %v2756_v3 = vld [vmem:[#allocation5 + $0xe0] ss:$16 sps:$4 sm:$0xff]   ;;  %v3360_v50 = vld [vmem:[#allocation2 + $0x4] ss:$28 sps:$4 sm:$0xff]  }
  0x3a   :  { %v2757_v4 = vld [vmem:[#allocation5 + $0x2e0] ss:$16 sps:$4 sm:$0xff]   ;;  %1376 = vmatprep.subr.bf16.mxu1 %v2754_v2  ;;  %v2758_v5 = vld [vmem:[#allocation5 + $0xc4] ss:$16 sps:$4 sm:$0xff]   ;;  %1334 = vmatpush1.bf16.msra.mxu0 %v2756_v3 }
  0x3b   :  { %1377 = vmatpush1.bf16.msra.mxu1 %v2757_v4  ;;  %v2760_v6 = vld [vmem:[#allocation5 + $0x2c4] ss:$16 sps:$4 sm:$0xff]   ;;  %v2762_v7 = vld [vmem:[#allocation5 + $0xc0] ss:$16 sps:$4 sm:$0xff]   ;;  %1335 = vmatprep.subr.bf16.mxu0 %v2758_v5 }
  0x3c   :  { %v2763_v8 = vld [vmem:[#allocation5 + $0x2c0] ss:$16 sps:$4 sm:$0xff]   ;;  %1378 = vmatprep.subr.bf16.mxu1 %v2760_v6  ;;  %v2764_v9 = vld [vmem:[#allocation5 + $0xa4] ss:$16 sps:$4 sm:$0xff]   ;;  %1365 = vmatprep.mubr.bf16.mxu0 %v3360_v50 }
  0x3d   :  { %v2766_v10 = vld [vmem:[#allocation5 + $0x2a4] ss:$16 sps:$4 sm:$0xff]   ;;  %v2768_v11 = vld [vmem:[#allocation5 + $0xa0] ss:$16 sps:$4 sm:$0xff]  }
  0x3e   :  { %v2769_v12 = vld [vmem:[#allocation5 + $0x2a0] ss:$16 sps:$4 sm:$0xff]   ;;  %1336 = vmatpush1.bf16.msra.mxu0 %v2762_v7  ;;  %v2770_v13 = vld [vmem:[#allocation5 + $0x84] ss:$16 sps:$4 sm:$0xff]  }
  0x3f   :  { %1379 = vmatpush1.bf16.msra.mxu1 %v2763_v8  ;;  %1337 = vmatprep.subr.bf16.mxu0 %v2764_v9  ;;  %v2772_v14 = vld [vmem:[#allocation5 + $0x284] ss:$16 sps:$4 sm:$0xff]   ;;  %v2774_v15 = vld [vmem:[#allocation5 + $0x80] ss:$16 sps:$4 sm:$0xff]  }
  0x40   :  { %1380 = vmatprep.subr.bf16.mxu1 %v2766_v10  ;;  %v2775_v16 = vld [vmem:[#allocation5 + $0x280] ss:$16 sps:$4 sm:$0xff]   ;;  %v2776_v17 = vld [vmem:[#allocation5 + $0x64] ss:$16 sps:$4 sm:$0xff]  }
  0x41   :  { %v2778_v18 = vld [vmem:[#allocation5 + $0x264] ss:$16 sps:$4 sm:$0xff]   ;;  %v2780_v19 = vld [vmem:[#allocation5 + $0x60] ss:$16 sps:$4 sm:$0xff]  }
  0x42   :  { %1338 = vmatpush1.bf16.msra.mxu0 %v2768_v11  ;;  %v2781_v20 = vld [vmem:[#allocation5 + $0x260] ss:$16 sps:$4 sm:$0xff]   ;;  %v2782_v21 = vld [vmem:[#allocation5 + $0x44] ss:$16 sps:$4 sm:$0xff]   ;;  %v2865_v11 = vld [vmem:[#allocation5 + $0xec] ss:$16 sps:$4 sm:$0xff]  }
  0x43   :  { %1381 = vmatpush1.bf16.msra.mxu1 %v2769_v12  ;;  %1339 = vmatprep.subr.bf16.mxu0 %v2770_v13  ;;  %v2784_v22 = vld [vmem:[#allocation5 + $0x244] ss:$16 sps:$4 sm:$0xff]   ;;  %v2786_v23 = vld [vmem:[#allocation5 + $0x40] ss:$16 sps:$4 sm:$0xff]  }
  0x44   :  { %1382 = vmatprep.subr.bf16.mxu1 %v2772_v14  ;;  %v2787_v24 = vld [vmem:[#allocation5 + $0x240] ss:$16 sps:$4 sm:$0xff]   ;;  %v2788_v25 = vld [vmem:[#allocation5 + $0x24] ss:$16 sps:$4 sm:$0xff]   ;;  %v2863_v14 = vld [vmem:[#allocation5 + $0xe8] ss:$16 sps:$4 sm:$0xff]  }
  0x45   :  { %v2790_v26 = vld [vmem:[#allocation5 + $0x224] ss:$16 sps:$4 sm:$0xff]   ;;  %v2792_v27 = vld [vmem:[#allocation5 + $0x20] ss:$16 sps:$4 sm:$0xff]  }
  0x46   :  { %1340 = vmatpush1.bf16.msra.mxu0 %v2774_v15  ;;  %v2793_v28 = vld [vmem:[#allocation5 + $0x220] ss:$16 sps:$4 sm:$0xff]   ;;  %v2794_v29 = vld [vmem:[#allocation5 + $0x4] ss:$16 sps:$4 sm:$0xff]  }
  0x47   :  { %1383 = vmatpush1.bf16.msra.mxu1 %v2775_v16  ;;  %1341 = vmatprep.subr.bf16.mxu0 %v2776_v17  ;;  %v2796_v30 = vld [vmem:[#allocation5 + $0x204] ss:$16 sps:$4 sm:$0xff]   ;;  %v2798_v31 = vld [vmem:[#allocation5] ss:$16 sps:$4 sm:$0xff]   ;;  %v2872_v17 = vld [vmem:[#allocation5 + $0xcc] ss:$16 sps:$4 sm:$0xff]  }
  0x48   :  { %1384 = vmatprep.subr.bf16.mxu1 %v2778_v18  ;;  %v2799_v32 = vld [vmem:[#allocation5 + $0x200] ss:$16 sps:$4 sm:$0xff]   ;;  %v2800_v33 = vld [vmem:[#allocation5 + $0x1e4] ss:$16 sps:$4 sm:$0xff]  }
  0x49   :  { %v2802_v34 = vld [vmem:[#allocation5 + $0x3e4] ss:$16 sps:$4 sm:$0xff]   ;;  %v2804_v35 = vld [vmem:[#allocation5 + $0x1e0] ss:$16 sps:$4 sm:$0xff]  }
  0x4a   :  { %1342 = vmatpush1.bf16.msra.mxu0 %v2780_v19  ;;  %v2805_v36 = vld [vmem:[#allocation5 + $0x3e0] ss:$16 sps:$4 sm:$0xff]   ;;  %v2806_v37 = vld [vmem:[#allocation5 + $0x1c4] ss:$16 sps:$4 sm:$0xff]   ;;  %v2870_v19 = vld [vmem:[#allocation5 + $0xc8] ss:$16 sps:$4 sm:$0xff]  }
  0x4b   :  { %1385 = vmatpush1.bf16.msra.mxu1 %v2781_v20  ;;  %1343 = vmatprep.subr.bf16.mxu0 %v2782_v21  ;;  %v2808_v38 = vld [vmem:[#allocation5 + $0x3c4] ss:$16 sps:$4 sm:$0xff]   ;;  %v2810_v39 = vld [vmem:[#allocation5 + $0x1c0] ss:$16 sps:$4 sm:$0xff]   ;;  %v2878_v21 = vld [vmem:[#allocation5 + $0xac] ss:$16 sps:$4 sm:$0xff]  }
  0x4c   :  { %1386 = vmatprep.subr.bf16.mxu1 %v2784_v22  ;;  %v2811_v40 = vld [vmem:[#allocation5 + $0x3c0] ss:$16 sps:$4 sm:$0xff]   ;;  %v2812_v41 = vld [vmem:[#allocation5 + $0x1a4] ss:$16 sps:$4 sm:$0xff]  }
  0x4d   :  { %v2814_v42 = vld [vmem:[#allocation5 + $0x3a4] ss:$16 sps:$4 sm:$0xff]   ;;  %v2816_v43 = vld [vmem:[#allocation5 + $0x1a0] ss:$16 sps:$4 sm:$0xff]  }
  0x4e   :  { %1344 = vmatpush1.bf16.msra.mxu0 %v2786_v23  ;;  %v2817_v44 = vld [vmem:[#allocation5 + $0x3a0] ss:$16 sps:$4 sm:$0xff]   ;;  %v2818_v45 = vld [vmem:[#allocation5 + $0x184] ss:$16 sps:$4 sm:$0xff]   ;;  %v2876_v23 = vld [vmem:[#allocation5 + $0xa8] ss:$16 sps:$4 sm:$0xff]  }
  0x4f   :  { %1387 = vmatpush1.bf16.msra.mxu1 %v2787_v24  ;;  %1345 = vmatprep.subr.bf16.mxu0 %v2788_v25  ;;  %v2820_v46 = vld [vmem:[#allocation5 + $0x384] ss:$16 sps:$4 sm:$0xff]   ;;  %v2822_v47 = vld [vmem:[#allocation5 + $0x180] ss:$16 sps:$4 sm:$0xff]   ;;  %v2884_v25 = vld [vmem:[#allocation5 + $0x8c] ss:$16 sps:$4 sm:$0xff]  }
  0x50   :  { %1388 = vmatprep.subr.bf16.mxu1 %v2790_v26  ;;  %v2823_v48 = vld [vmem:[#allocation5 + $0x380] ss:$16 sps:$4 sm:$0xff]   ;;  %v2824_v49 = vld [vmem:[#allocation5 + $0x164] ss:$16 sps:$4 sm:$0xff]  }
  0x51   :  { %v2826_v51 = vld [vmem:[#allocation5 + $0x364] ss:$16 sps:$4 sm:$0xff]   ;;  %v2828_v53 = vld [vmem:[#allocation5 + $0x160] ss:$16 sps:$4 sm:$0xff]  }
  0x52   :  { %1346 = vmatpush1.bf16.msra.mxu0 %v2792_v27  ;;  %v3362_v52 = vld [vmem:[#allocation2 + $0xc] ss:$28 sps:$4 sm:$0xff]   ;;  %v3366_v6 = vld [vmem:[#allocation2] ss:$28 sps:$4 sm:$0xff]   ;;  %v3373_v15 = vld [vmem:[#allocation2 + $0x18] ss:$28 sps:$4 sm:$0xff]  }
  0x53   :  { %1389 = vmatpush1.bf16.msra.mxu1 %v2793_v28  ;;  %1347 = vmatprep.subr.bf16.mxu0 %v2794_v29  ;;  %v2829_v54 = vld [vmem:[#allocation5 + $0x360] ss:$16 sps:$4 sm:$0xff]   ;;  %v2830_v55 = vld [vmem:[#allocation5 + $0x144] ss:$16 sps:$4 sm:$0xff]   ;;  %v2882_v27 = vld [vmem:[#allocation5 + $0x88] ss:$16 sps:$4 sm:$0xff]  }
  0x54   :  { %1390 = vmatprep.subr.bf16.mxu1 %v2796_v30  ;;  %1408 = vmatprep.mubr.bf16.mxu1 %v3362_v52  ;;  %v2832_v56 = vld [vmem:[#allocation5 + $0x344] ss:$16 sps:$4 sm:$0xff]   ;;  %v2834_v57 = vld [vmem:[#allocation5 + $0x140] ss:$16 sps:$4 sm:$0xff]   ;;  %v2890_v29 = vld [vmem:[#allocation5 + $0x6c] ss:$16 sps:$4 sm:$0xff]  }
  0x55   :  { %v2835_v58 = vld [vmem:[#allocation5 + $0x340] ss:$16 sps:$4 sm:$0xff]   ;;  %v2836_v59 = vld [vmem:[#allocation5 + $0x124] ss:$16 sps:$4 sm:$0xff]  }
  0x56   :  { %1348 = vmatpush1.bf16.msra.mxu0 %v2798_v31  ;;  %v2838_v60 = vld [vmem:[#allocation5 + $0x324] ss:$16 sps:$4 sm:$0xff]   ;;  %v2840_v61 = vld [vmem:[#allocation5 + $0x120] ss:$16 sps:$4 sm:$0xff]   ;;  %v2888_v31 = vld [vmem:[#allocation5 + $0x68] ss:$16 sps:$4 sm:$0xff]  }
  0x57   :  { %1391 = vmatpush1.bf16.msra.mxu1 %v2799_v32  ;;  %1349 = vmatprep.subr.bf16.mxu0 %v2800_v33  ;;  %v2841_v62 = vld [vmem:[#allocation5 + $0x320] ss:$16 sps:$4 sm:$0xff]   ;;  %v2842_v63 = vld [vmem:[#allocation5 + $0x104] ss:$16 sps:$4 sm:$0xff]   ;;  %v2896_v33 = vld [vmem:[#allocation5 + $0x4c] ss:$16 sps:$4 sm:$0xff]  }
  0x58   :  { %1392 = vmatprep.subr.bf16.mxu1 %v2802_v34  ;;  %v2844_v1 = vld [vmem:[#allocation5 + $0x304] ss:$16 sps:$4 sm:$0xff]   ;;  %v2846_v2 = vld [vmem:[#allocation5 + $0x100] ss:$16 sps:$4 sm:$0xff]   ;;  %v3378_v34 = vld [vmem:[#allocation2 + $0x14] ss:$28 sps:$4 sm:$0xff]  }
  0x59   :  { %v2847_v3 = vld [vmem:[#allocation5 + $0x300] ss:$16 sps:$4 sm:$0xff]   ;;  %v2856_v4 = vld [vmem:[#allocation5 + $0x4e4] ss:$16 sps:$4 sm:$0xff]  }
  0x5a   :  { %1350 = vmatpush2.bf16.msra.mxu0 %v2804_v35  ;;  %v2859_v5 = vld [vmem:[#allocation5 + $0x604] ss:$16 sps:$4 sm:$0xff]   ;;  %v3368_v7 = vld [vmem:[#allocation2 + $0x8] ss:$28 sps:$4 sm:$0xff]  }
  0x5b   :  { %1393 = vmatpush2.bf16.msra.mxu1 %v2805_v36  ;;  %1351 = vmatprep.subr.bf16.mxu0 %v2806_v37  ;;  %v2854_v8 = vld [vmem:[#allocation5 + $0x4e0] ss:$16 sps:$4 sm:$0xff]   ;;  %v2862_v10 = vld [vmem:[#allocation5 + $0x4c4] ss:$16 sps:$4 sm:$0xff]   ;;  %v2894_v36 = vld [vmem:[#allocation5 + $0x48] ss:$16 sps:$4 sm:$0xff]  }
  0x5c   :  { %1394 = vmatprep.subr.bf16.mxu1 %v2808_v38  ;;  %v2857_v9 = vld [vmem:[#allocation5 + $0x600] ss:$16 sps:$4 sm:$0xff]   ;;  %v2868_v13 = vld [vmem:[#allocation5 + $0x4a4] ss:$16 sps:$4 sm:$0xff]   ;;  %v2902_v38 = vld [vmem:[#allocation5 + $0x2c] ss:$16 sps:$4 sm:$0xff]  }
  0x5d   :  { %v2860_v12 = vld [vmem:[#allocation5 + $0x4c0] ss:$16 sps:$4 sm:$0xff]   ;;  %v2875_v18 = vld [vmem:[#allocation5 + $0x484] ss:$16 sps:$4 sm:$0xff]  }
  0x5e   :  { %1352 = vmatpush2.bf16.msra.mxu0 %v2810_v39  ;;  %v2866_v16 = vld [vmem:[#allocation5 + $0x4a0] ss:$16 sps:$4 sm:$0xff]   ;;  %v2881_v22 = vld [vmem:[#allocation5 + $0x464] ss:$16 sps:$4 sm:$0xff]  }
  0x5f   :  { %1395 = vmatpush2.bf16.msra.mxu1 %v2811_v40  ;;  %1353 = vmatprep.subr.bf16.mxu0 %v2812_v41  ;;  %v2873_v20 = vld [vmem:[#allocation5 + $0x480] ss:$16 sps:$4 sm:$0xff]   ;;  %v2887_v26 = vld [vmem:[#allocation5 + $0x444] ss:$16 sps:$4 sm:$0xff]   ;;  %v2900_v40 = vld [vmem:[#allocation5 + $0x28] ss:$16 sps:$4 sm:$0xff]  }
  0x60   :  { %1396 = vmatprep.subr.bf16.mxu1 %v2814_v42  ;;  %v2879_v24 = vld [vmem:[#allocation5 + $0x460] ss:$16 sps:$4 sm:$0xff]   ;;  %v2893_v30 = vld [vmem:[#allocation5 + $0x424] ss:$16 sps:$4 sm:$0xff]   ;;  %v2908_v42 = vld [vmem:[#allocation5 + $0xc] ss:$16 sps:$4 sm:$0xff]  }
  0x61   :  { %v2885_v28 = vld [vmem:[#allocation5 + $0x440] ss:$16 sps:$4 sm:$0xff]   ;;  %v2899_v35 = vld [vmem:[#allocation5 + $0x404] ss:$16 sps:$4 sm:$0xff]  }
  0x62   :  { %1354 = vmatpush2.bf16.msra.mxu0 %v2816_v43  ;;  %v2891_v32 = vld [vmem:[#allocation5 + $0x420] ss:$16 sps:$4 sm:$0xff]   ;;  %v2905_v39 = vld [vmem:[#allocation5 + $0x5e4] ss:$16 sps:$4 sm:$0xff]  }
  0x63   :  { %1397 = vmatpush2.bf16.msra.mxu1 %v2817_v44  ;;  %1355 = vmatprep.subr.bf16.mxu0 %v2818_v45  ;;  %v2897_v37 = vld [vmem:[#allocation5 + $0x400] ss:$16 sps:$4 sm:$0xff]   ;;  %v2911_v43 = vld [vmem:[#allocation5 + $0x5c4] ss:$16 sps:$4 sm:$0xff]   ;;  %v2906_v44 = vld [vmem:[#allocation5 + $0x8] ss:$16 sps:$4 sm:$0xff]  }
  0x64   :  { %1398 = vmatprep.subr.bf16.mxu1 %v2820_v46  ;;  %v2903_v41 = vld [vmem:[#allocation5 + $0x5e0] ss:$16 sps:$4 sm:$0xff]   ;;  %v2914_v46 = vld [vmem:[#allocation5 + $0x1ec] ss:$16 sps:$4 sm:$0xff]  }
  0x65   :  { %v2909_v45 = vld [vmem:[#allocation5 + $0x5c0] ss:$16 sps:$4 sm:$0xff]  }
  0x66   :  { %1356 = vmatpush2.bf16.msra.mxu0 %v2822_v47  ;;  %v2917_v47 = vld [vmem:[#allocation5 + $0x5a4] ss:$16 sps:$4 sm:$0xff]  }
  0x67   :  { %1399 = vmatpush2.bf16.msra.mxu1 %v2823_v48  ;;  %1357 = vmatprep.subr.bf16.mxu0 %v2824_v49  ;;  %v2912_v48 = vld [vmem:[#allocation5 + $0x1e8] ss:$16 sps:$4 sm:$0xff]   ;;  %v2915_v49 = vld [vmem:[#allocation5 + $0x5a0] ss:$16 sps:$4 sm:$0xff]  }
  0x68   :  { %1400 = vmatprep.subr.bf16.mxu1 %v2826_v51  ;;  %v2923_v51 = vld [vmem:[#allocation5 + $0x584] ss:$16 sps:$4 sm:$0xff]  }
  0x6a   :  { %1358 = vmatpush2.bf16.msra.mxu0 %v2828_v53  ;;  %v2918_v53 = vld [vmem:[#allocation5 + $0x1c8] ss:$16 sps:$4 sm:$0xff]  }
  0x6b   :  { %1401 = vmatpush2.bf16.msra.mxu1 %v2829_v54  ;;  %1359 = vmatprep.subr.bf16.mxu0 %v2830_v55  ;;  %v2921_v54 = vld [vmem:[#allocation5 + $0x580] ss:$16 sps:$4 sm:$0xff]   ;;  %v2926_v55 = vld [vmem:[#allocation5 + $0x1ac] ss:$16 sps:$4 sm:$0xff]  }
  0x6c   :  { %1402 = vmatprep.subr.bf16.mxu1 %v2832_v56  ;;  %v2929_v56 = vld [vmem:[#allocation5 + $0x564] ss:$16 sps:$4 sm:$0xff]  }
  0x6e   :  { %1360 = vmatpush2.bf16.msra.mxu0 %v2834_v57  ;;  %v2924_v57 = vld [vmem:[#allocation5 + $0x1a8] ss:$16 sps:$4 sm:$0xff]  }
  0x6f   :  { %1403 = vmatpush2.bf16.msra.mxu1 %v2835_v58  ;;  %1361 = vmatprep.subr.bf16.mxu0 %v2836_v59  ;;  %v2927_v58 = vld [vmem:[#allocation5 + $0x560] ss:$16 sps:$4 sm:$0xff]   ;;  %v2932_v59 = vld [vmem:[#allocation5 + $0x18c] ss:$16 sps:$4 sm:$0xff]  }
  0x70   :  { %1404 = vmatprep.subr.bf16.mxu1 %v2838_v60  ;;  %v2935_v60 = vld [vmem:[#allocation5 + $0x544] ss:$16 sps:$4 sm:$0xff]  }
  0x72   :  { %1362 = vmatpush2.bf16.msra.mxu0 %v2840_v61  ;;  %v2930_v61 = vld [vmem:[#allocation5 + $0x188] ss:$16 sps:$4 sm:$0xff]  }
  0x73   :  { %1405 = vmatpush2.bf16.msra.mxu1 %v2841_v62  ;;  %1363 = vmatprep.subr.bf16.mxu0 %v2842_v63  ;;  %v2933_v62 = vld [vmem:[#allocation5 + $0x540] ss:$16 sps:$4 sm:$0xff]   ;;  %v2938_v63 = vld [vmem:[#allocation5 + $0x16c] ss:$16 sps:$4 sm:$0xff]  }
  0x74   :  { %1406 = vmatprep.subr.bf16.mxu1 %v2844_v1  ;;  %v2941_v1 = vld [vmem:[#allocation5 + $0x524] ss:$16 sps:$4 sm:$0xff]  }
  0x76   :  { %1364 = vmatpush2.bf16.msra.mxu0 %v2846_v2  ;;  %v2936_v2 = vld [vmem:[#allocation5 + $0x168] ss:$16 sps:$4 sm:$0xff]  }
  0x77   :  { %1407 = vmatpush2.bf16.msra.mxu1 %v2847_v3  ;;  %1419 = vmatprep.subr.bf16.mxu0 %v2856_v4  ;;  %v2939_v3 = vld [vmem:[#allocation5 + $0x520] ss:$16 sps:$4 sm:$0xff]   ;;  %v2944_v4 = vld [vmem:[#allocation5 + $0x14c] ss:$16 sps:$4 sm:$0xff]  }
  0x78   :  { %1476 = vmatprep.subr.bf16.mxu1 %v2859_v5  ;;  %v2947_v5 = vld [vmem:[#allocation5 + $0x504] ss:$16 sps:$4 sm:$0xff]  }
  0x79   :  { %1366 = vmatmul.mubr.bf16.vlgmr.msra.gmra.mxu0 %v3366_v6 }
  0x7a   :  { %1409 = vmatmul.mubr.bf16.vlgmr.msra.gmra.mxu1 %v3368_v7  ;;  %1420 = vmatpush1.bf16.msra.mxu0 %v2854_v8  ;;  %v2942_v8 = vld [vmem:[#allocation5 + $0x148] ss:$16 sps:$4 sm:$0xff]  }
  0x7b   :  { %1477 = vmatpush1.bf16.msra.mxu1 %v2857_v9  ;;  %1421 = vmatprep.subr.bf16.mxu0 %v2862_v10  ;;  %v2945_v9 = vld [vmem:[#allocation5 + $0x500] ss:$16 sps:$4 sm:$0xff]   ;;  %v2953_v10 = vld [vmem:[#allocation5 + $0x12c] ss:$16 sps:$4 sm:$0xff]  }
  0x7c   :  { %1494 = vmatprep.mubr.bf16.mxu1 %v3296_v0  ;;  %1505 = vmatprep.subr.bf16.mxu1 %v2865_v11  ;;  %v2956_v11 = vld [vmem:[#allocation5 + $0x2ec] ss:$16 sps:$4 sm:$0xff]  }
  0x7d   :  { %1451 = vmatprep.mubr.bf16.mxu0 %v3378_v34 }
  0x7e   :  { %1422 = vmatpush1.bf16.msra.mxu0 %v2860_v12  ;;  %v3381_v12 = vld [vmem:[#allocation2 + $0x10] ss:$28 sps:$4 sm:$0xff]  }
  0x7f   :  { %1423 = vmatprep.subr.bf16.mxu0 %v2868_v13  ;;  %v2951_v13 = vld [vmem:[#allocation5 + $0x128] ss:$16 sps:$4 sm:$0xff]  }
  0x82   :  { %2629 = vmatmul.mubr.msk.bf16.vlgmr.msra.gmra.mxu1 %vm1329_vm0, %v3373_v15  ;;  %1424 = vmatpush1.bf16.msra.mxu0 %v2866_v16  ;;  %v2959_v16 = vld [vmem:[#allocation5 + $0x10c] ss:$16 sps:$4 sm:$0xff]  }
  0x83   :  { %1506 = vmatpush1.bf16.msra.mxu1 %v2863_v14  ;;  %1425 = vmatprep.subr.bf16.mxu0 %v2875_v18  ;;  %v2954_v14 = vld [vmem:[#allocation5 + $0x2e8] ss:$16 sps:$4 sm:$0xff]  }
  0x84   :  { %1507 = vmatprep.subr.bf16.mxu1 %v2872_v17  ;;  %1537 = vmatprep.mubr.bf16.mxu1 %v3360_v50  ;;  %v2920_v50 = vld [vmem:[#allocation5 + $0x1cc] ss:$16 sps:$4 sm:$0xff]   ;;  %v2957_v18 = vld [vmem:[#allocation5 + $0x108] ss:$16 sps:$4 sm:$0xff]  }
  0x85   :  { %v2962_v17 = vld [vmem:[#allocation5 + $0x2cc] ss:$16 sps:$4 sm:$0xff]  }
  0x86   :  { %1426 = vmatpush1.bf16.msra.mxu0 %v2873_v20  ;;  %v2965_v20 = vld [vmem:[#allocation5 + $0x4ec] ss:$16 sps:$4 sm:$0xff]  }
  0x87   :  { %1508 = vmatpush1.bf16.msra.mxu1 %v2870_v19  ;;  %1427 = vmatprep.subr.bf16.mxu0 %v2881_v22  ;;  %v2960_v19 = vld [vmem:[#allocation5 + $0x2c8] ss:$16 sps:$4 sm:$0xff]  }
  0x88   :  { %1509 = vmatprep.subr.bf16.mxu1 %v2878_v21  ;;  %v2968_v21 = vld [vmem:[#allocation5 + $0x2ac] ss:$16 sps:$4 sm:$0xff]   ;;  %v2963_v22 = vld [vmem:[#allocation5 + $0x4e8] ss:$16 sps:$4 sm:$0xff]  }
  0x8a   :  { %1428 = vmatpush1.bf16.msra.mxu0 %v2879_v24  ;;  %v3388_v24 = vld [vmem:[%s3442_s1] sm:$0xff] }
  0x8b   :  { %1510 = vmatpush1.bf16.msra.mxu1 %v2876_v23  ;;  %1429 = vmatprep.subr.bf16.mxu0 %v2887_v26  ;;  %v2966_v23 = vld [vmem:[#allocation5 + $0x2a8] ss:$16 sps:$4 sm:$0xff]   ;;  %v2974_v26 = vld [vmem:[#allocation5 + $0x28c] ss:$16 sps:$4 sm:$0xff]  }
  0x8c   :  { %1511 = vmatprep.subr.bf16.mxu1 %v2884_v25  ;;  %v2971_v25 = vld [vmem:[#allocation5 + $0x4cc] ss:$16 sps:$4 sm:$0xff]   ;;  %1687 = vperm.xlu0 %2749, %v3388_v24  }
  0x8e   :  { %1430 = vmatpush1.bf16.msra.mxu0 %v2885_v28  ;;  %v2969_v28 = vld [vmem:[#allocation5 + $0x4c8] ss:$16 sps:$4 sm:$0xff]  }
  0x8f   :  { %1512 = vmatpush1.bf16.msra.mxu1 %v2882_v27  ;;  %1431 = vmatprep.subr.bf16.mxu0 %v2893_v30  ;;  %v3393_v27 = vld [vmem:[%s3442_s1 + $0x8] sm:$0xff]  ;;  %v2980_v30 = vld [vmem:[#allocation5 + $0x26c] ss:$16 sps:$4 sm:$0xff]  }
  0x90   :  { %1513 = vmatprep.subr.bf16.mxu1 %v2890_v29  ;;  %v2977_v29 = vld [vmem:[#allocation5 + $0x4ac] ss:$16 sps:$4 sm:$0xff]   ;;  %1692 = vperm.xlu0 %2749, %v3393_v27  }
  0x92   :  { %1432 = vmatpush1.bf16.msra.mxu0 %v2891_v32  ;;  %v2978_v32 = vld [vmem:[#allocation5 + $0x268] ss:$16 sps:$4 sm:$0xff]  }
  0x93   :  { %1514 = vmatpush1.bf16.msra.mxu1 %v2888_v31  ;;  %1433 = vmatprep.subr.bf16.mxu0 %v2899_v35  ;;  %v2975_v31 = vld [vmem:[#allocation5 + $0x4a8] ss:$16 sps:$4 sm:$0xff]   ;;  %v2986_v35 = vld [vmem:[#allocation5 + $0x24c] ss:$16 sps:$4 sm:$0xff]  }
  0x94   :  { %1515 = vmatprep.subr.bf16.mxu1 %v2896_v33  ;;  %v2983_v33 = vld [vmem:[#allocation5 + $0x48c] ss:$16 sps:$4 sm:$0xff]  }
  0x96   :  { %1434 = vmatpush1.bf16.msra.mxu0 %v2897_v37  ;;  %v2989_v37 = vld [vmem:[#allocation5 + $0x46c] ss:$16 sps:$4 sm:$0xff]  }
  0x97   :  { %1516 = vmatpush1.bf16.msra.mxu1 %v2894_v36  ;;  %1435 = vmatprep.subr.bf16.mxu0 %v2905_v39  ;;  %v2984_v36 = vld [vmem:[#allocation5 + $0x248] ss:$16 sps:$4 sm:$0xff]  }
  0x98   :  { %1517 = vmatprep.subr.bf16.mxu1 %v2902_v38  ;;  %v2992_v38 = vld [vmem:[#allocation5 + $0x22c] ss:$16 sps:$4 sm:$0xff]   ;;  %v2987_v39 = vld [vmem:[#allocation5 + $0x468] ss:$16 sps:$4 sm:$0xff]  }
  0x9a   :  { %1436 = vmatpush2.bf16.msra.mxu0 %v2903_v41  ;;  %v2998_v41 = vld [vmem:[#allocation5 + $0x20c] ss:$16 sps:$4 sm:$0xff]  }
  0x9b   :  { %1518 = vmatpush1.bf16.msra.mxu1 %v2900_v40  ;;  %1437 = vmatprep.subr.bf16.mxu0 %v2911_v43  ;;  %v2995_v40 = vld [vmem:[#allocation5 + $0x44c] ss:$16 sps:$4 sm:$0xff]   ;;  %v2996_v43 = vld [vmem:[#allocation5 + $0x208] ss:$16 sps:$4 sm:$0xff]  }
  0x9c   :  { %1519 = vmatprep.subr.bf16.mxu1 %v2908_v42  ;;  %v2993_v42 = vld [vmem:[#allocation5 + $0x448] ss:$16 sps:$4 sm:$0xff]  }
  0x9e   :  { %1438 = vmatpush2.bf16.msra.mxu0 %v2909_v45  ;;  %v3004_v45 = vld [vmem:[#allocation5 + $0x3ec] ss:$16 sps:$4 sm:$0xff]  }
  0x9f   :  { %1520 = vmatpush1.bf16.msra.mxu1 %v2906_v44  ;;  %1439 = vmatprep.subr.bf16.mxu0 %v2917_v47  ;;  %v3001_v44 = vld [vmem:[#allocation5 + $0x42c] ss:$16 sps:$4 sm:$0xff]   ;;  %v3002_v47 = vld [vmem:[#allocation5 + $0x3e8] ss:$16 sps:$4 sm:$0xff]  }
  0xa0   :  { %1521 = vmatprep.subr.bf16.mxu1 %v2914_v46  ;;  %v2999_v46 = vld [vmem:[#allocation5 + $0x428] ss:$16 sps:$4 sm:$0xff]  }
  0xa2   :  { %1440 = vmatpush2.bf16.msra.mxu0 %v2915_v49  ;;  %v3010_v49 = vld [vmem:[#allocation5 + $0x3cc] ss:$16 sps:$4 sm:$0xff]  }
  0xa3   :  { %1522 = vmatpush2.bf16.msra.mxu1 %v2912_v48  ;;  %1441 = vmatprep.subr.bf16.mxu0 %v2923_v51  ;;  %v3007_v48 = vld [vmem:[#allocation5 + $0x40c] ss:$16 sps:$4 sm:$0xff]   ;;  %v3008_v51 = vld [vmem:[#allocation5 + $0x3c8] ss:$16 sps:$4 sm:$0xff]  }
  0xa4   :  { %1523 = vmatprep.subr.bf16.mxu1 %v2920_v50  ;;  %v3005_v50 = vld [vmem:[#allocation5 + $0x408] ss:$16 sps:$4 sm:$0xff]  }
  0xa6   :  { %1442 = vmatpush2.bf16.msra.mxu0 %v2921_v54  ;;  %v3016_v54 = vld [vmem:[#allocation5 + $0x3ac] ss:$16 sps:$4 sm:$0xff]  }
  0xa7   :  { %1524 = vmatpush2.bf16.msra.mxu1 %v2918_v53  ;;  %1443 = vmatprep.subr.bf16.mxu0 %v2929_v56  ;;  %v3013_v53 = vld [vmem:[#allocation5 + $0x5ec] ss:$16 sps:$4 sm:$0xff]   ;;  %v3014_v56 = vld [vmem:[#allocation5 + $0x3a8] ss:$16 sps:$4 sm:$0xff]  }
  0xa8   :  { %1525 = vmatprep.subr.bf16.mxu1 %v2926_v55  ;;  %v3011_v55 = vld [vmem:[#allocation5 + $0x5e8] ss:$16 sps:$4 sm:$0xff]  }
  0xaa   :  { %1444 = vmatpush2.bf16.msra.mxu0 %v2927_v58  ;;  %v3022_v58 = vld [vmem:[#allocation5 + $0x38c] ss:$16 sps:$4 sm:$0xff]  }
  0xab   :  { %1526 = vmatpush2.bf16.msra.mxu1 %v2924_v57  ;;  %1445 = vmatprep.subr.bf16.mxu0 %v2935_v60  ;;  %v3019_v57 = vld [vmem:[#allocation5 + $0x5cc] ss:$16 sps:$4 sm:$0xff]   ;;  %v3020_v60 = vld [vmem:[#allocation5 + $0x388] ss:$16 sps:$4 sm:$0xff]  }
  0xac   :  { %1527 = vmatprep.subr.bf16.mxu1 %v2932_v59  ;;  %v3017_v59 = vld [vmem:[#allocation5 + $0x5c8] ss:$16 sps:$4 sm:$0xff]  }
  0xae   :  { %1446 = vmatpush2.bf16.msra.mxu0 %v2933_v62  ;;  %v3028_v62 = vld [vmem:[#allocation5 + $0x36c] ss:$16 sps:$4 sm:$0xff]  }
  0xaf   :  { %1528 = vmatpush2.bf16.msra.mxu1 %v2930_v61  ;;  %1447 = vmatprep.subr.bf16.mxu0 %v2941_v1  ;;  %v3025_v61 = vld [vmem:[#allocation5 + $0x5ac] ss:$16 sps:$4 sm:$0xff]   ;;  %v3026_v1 = vld [vmem:[#allocation5 + $0x368] ss:$16 sps:$4 sm:$0xff]  }
  0xb0   :  { %1529 = vmatprep.subr.bf16.mxu1 %v2938_v63  ;;  %v3023_v63 = vld [vmem:[#allocation5 + $0x5a8] ss:$16 sps:$4 sm:$0xff]  }
  0xb2   :  { %1448 = vmatpush2.bf16.msra.mxu0 %v2939_v3  ;;  %v3034_v3 = vld [vmem:[#allocation5 + $0x34c] ss:$16 sps:$4 sm:$0xff]  }
  0xb3   :  { %1530 = vmatpush2.bf16.msra.mxu1 %v2936_v2  ;;  %1449 = vmatprep.subr.bf16.mxu0 %v2947_v5  ;;  %v3031_v2 = vld [vmem:[#allocation5 + $0x58c] ss:$16 sps:$4 sm:$0xff]   ;;  %v3032_v5 = vld [vmem:[#allocation5 + $0x348] ss:$16 sps:$4 sm:$0xff]  }
  0xb4   :  { %1531 = vmatprep.subr.bf16.mxu1 %v2944_v4  ;;  %v3029_v4 = vld [vmem:[#allocation5 + $0x588] ss:$16 sps:$4 sm:$0xff]  }
  0xb6   :  { %1450 = vmatpush2.bf16.msra.mxu0 %v2945_v9  ;;  %v3040_v9 = vld [vmem:[#allocation5 + $0x32c] ss:$16 sps:$4 sm:$0xff]  }
  0xb7   :  { %1532 = vmatpush2.bf16.msra.mxu1 %v2942_v8  ;;  %1548 = vmatprep.subr.bf16.mxu0 %v2956_v11  ;;  %v3037_v8 = vld [vmem:[#allocation5 + $0x56c] ss:$16 sps:$4 sm:$0xff]   ;;  %v3038_v11 = vld [vmem:[#allocation5 + $0x328] ss:$16 sps:$4 sm:$0xff]  }
  0xb8   :  { %1533 = vmatprep.subr.bf16.mxu1 %v2953_v10  ;;  %v3035_v10 = vld [vmem:[#allocation5 + $0x568] ss:$16 sps:$4 sm:$0xff]  }
  0xb9   :  { %1452 = vmatmul.mubr.bf16.vlgmr.msra.gmra.mxu0 %v3381_v12 }
  0xba   :  { %1549 = vmatpush1.bf16.msra.mxu0 %v2954_v14  ;;  %1580 = vmatprep.mubr.bf16.mxu0 %v3362_v52  ;;  %v2972_v52 = vld [vmem:[#allocation5 + $0x288] ss:$16 sps:$4 sm:$0xff]   ;;  %v3046_v14 = vld [vmem:[#allocation5 + $0x30c] ss:$16 sps:$4 sm:$0xff]  }
  0xbb   :  { %1534 = vmatpush2.bf16.msra.mxu1 %v2951_v13  ;;  %1550 = vmatprep.subr.bf16.mxu0 %v2962_v17  ;;  %v3043_v13 = vld [vmem:[#allocation5 + $0x54c] ss:$16 sps:$4 sm:$0xff]   ;;  %v3044_v17 = vld [vmem:[#allocation5 + $0x308] ss:$16 sps:$4 sm:$0xff]  }
  0xbc   :  { %1535 = vmatprep.subr.bf16.mxu1 %v2959_v16  ;;  %v3041_v16 = vld [vmem:[#allocation5 + $0x548] ss:$16 sps:$4 sm:$0xff]  }
  0xbe   :  { %1551 = vmatpush1.bf16.msra.mxu0 %v2960_v19  ;;  %v3058_v19 = vld [vmem:[#allocation7 + $0x74] ss:$8 sps:$4 sm:$0xff]  }
  0xbf   :  { %1536 = vmatpush2.bf16.msra.mxu1 %v2957_v18  ;;  %1552 = vmatprep.subr.bf16.mxu0 %v2968_v21  ;;  %v3049_v18 = vld [vmem:[#allocation5 + $0x52c] ss:$16 sps:$4 sm:$0xff]   ;;  %v3056_v21 = vld [vmem:[#allocation7 + $0x70] ss:$8 sps:$4 sm:$0xff]  }
  0xc0   :  { %1591 = vmatprep.subr.bf16.mxu1 %v2965_v20  ;;  %v3047_v20 = vld [vmem:[#allocation5 + $0x528] ss:$16 sps:$4 sm:$0xff]  }
  0xc2   :  { %1538 = vmatmul.mubr.bf16.vlgmr.msra.gmra.mxu1 %v3366_v6  ;;  %1553 = vmatpush1.bf16.msra.mxu0 %v2966_v23  ;;  %v2981_v6 = vld [vmem:[#allocation5 + $0x488] ss:$16 sps:$4 sm:$0xff]   ;;  %v3061_v23 = vld [vmem:[#allocation7 + $0x64] ss:$8 sps:$4 sm:$0xff]  }
  0xc3   :  { %1592 = vmatpush1.bf16.msra.mxu1 %v2963_v22  ;;  %1554 = vmatprep.subr.bf16.mxu0 %v2974_v26  ;;  %v3052_v22 = vld [vmem:[#allocation5 + $0x50c] ss:$16 sps:$4 sm:$0xff]   ;;  %v3059_v26 = vld [vmem:[#allocation7 + $0x60] ss:$8 sps:$4 sm:$0xff]  }
  0xc4   :  { %1593 = vmatprep.subr.bf16.mxu1 %v2971_v25  ;;  %1623 = vmatprep.mubr.bf16.mxu1 %v3378_v34  ;;  %v2990_v34 = vld [vmem:[#allocation5 + $0x228] ss:$16 sps:$4 sm:$0xff]  }
  0xc5   :  { %v3050_v25 = vld [vmem:[#allocation5 + $0x508] ss:$16 sps:$4 sm:$0xff]  }
  0xc6   :  { %1555 = vmatpush1.bf16.msra.mxu0 %v2972_v52  ;;  %v3064_v52 = vld [vmem:[#allocation7 + $0x54] ss:$8 sps:$4 sm:$0xff]  }
  0xc7   :  { %1594 = vmatpush1.bf16.msra.mxu1 %v2969_v28  ;;  %1556 = vmatprep.subr.bf16.mxu0 %v2980_v30  ;;  %v3055_v28 = vld [vmem:[#allocation5 + $0x60c] ss:$16 sps:$4 sm:$0xff]   ;;  %v3062_v30 = vld [vmem:[#allocation7 + $0x50] ss:$8 sps:$4 sm:$0xff]  }
  0xc8   :  { %1595 = vmatprep.subr.bf16.mxu1 %v2977_v29  ;;  %v3053_v29 = vld [vmem:[#allocation5 + $0x608] ss:$16 sps:$4 sm:$0xff]  }
  0xca   :  { %1557 = vmatpush1.bf16.msra.mxu0 %v2978_v32  ;;  %v3070_v32 = vld [vmem:[#allocation7 + $0x34] ss:$8 sps:$4 sm:$0xff]  }
  0xcb   :  { %1596 = vmatpush1.bf16.msra.mxu1 %v2975_v31  ;;  %1558 = vmatprep.subr.bf16.mxu0 %v2986_v35  ;;  %v3067_v31 = vld [vmem:[#allocation7 + $0x44] ss:$8 sps:$4 sm:$0xff]  }
  0xcc   :  { %1597 = vmatprep.subr.bf16.mxu1 %v2983_v33  ;;  %v3068_v33 = vld [vmem:[#allocation7 + $0x30] ss:$8 sps:$4 sm:$0xff]   ;;  %v3073_v35 = vld [vmem:[#allocation7 + $0x24] ss:$8 sps:$4 sm:$0xff]  }
  0xce   :  { %1559 = vmatpush1.bf16.msra.mxu0 %v2984_v36  ;;  %v3104_v36 = vld [vmem:[#allocation7 + $0x170] ss:$8 sps:$4 sm:$0xff]  }
  0xcf   :  { %1598 = vmatpush1.bf16.msra.mxu1 %v2981_v6  ;;  %1560 = vmatprep.subr.bf16.mxu0 %v2992_v38  ;;  %v3071_v6 = vld [vmem:[#allocation7 + $0x20] ss:$8 sps:$4 sm:$0xff]   ;;  %v3109_v38 = vld [vmem:[#allocation7 + $0x164] ss:$8 sps:$4 sm:$0xff]  }
  0xd0   :  { %1599 = vmatprep.subr.bf16.mxu1 %v2989_v37  ;;  %v3106_v37 = vld [vmem:[#allocation7 + $0x174] ss:$8 sps:$4 sm:$0xff]  }
  0xd2   :  { %1561 = vmatpush1.bf16.msra.mxu0 %v2990_v34  ;;  %v3112_v34 = vld [vmem:[#allocation7 + $0x154] ss:$8 sps:$4 sm:$0xff]  }
  0xd3   :  { %1600 = vmatpush1.bf16.msra.mxu1 %v2987_v39  ;;  %1562 = vmatprep.subr.bf16.mxu0 %v2998_v41  ;;  %v3074_v39 = vld [vmem:[#allocation7 + $0x10] ss:$8 sps:$4 sm:$0xff]  }
  0xd4   :  { %1601 = vmatprep.subr.bf16.mxu1 %v2995_v40  ;;  %v3079_v40 = vld [vmem:[#allocation7 + $0x4] ss:$8 sps:$4 sm:$0xff]   ;;  %v3110_v41 = vld [vmem:[#allocation7 + $0x150] ss:$8 sps:$4 sm:$0xff]  }
  0xd6   :  { %1563 = vmatpush1.bf16.msra.mxu0 %v2996_v43  ;;  %v3082_v43 = vld [vmem:[#allocation7 + $0xf4] ss:$8 sps:$4 sm:$0xff]  }
  0xd7   :  { %1602 = vmatpush1.bf16.msra.mxu1 %v2993_v42  ;;  %1564 = vmatprep.subr.bf16.mxu0 %v3004_v45  ;;  %v3115_v42 = vld [vmem:[#allocation7 + $0x144] ss:$8 sps:$4 sm:$0xff]   ;;  %v3080_v45 = vld [vmem:[#allocation7 + $0xf0] ss:$8 sps:$4 sm:$0xff]  }
  0xd8   :  { %1603 = vmatprep.subr.bf16.mxu1 %v3001_v44  ;;  %v3113_v44 = vld [vmem:[#allocation7 + $0x140] ss:$8 sps:$4 sm:$0xff]  }
  0xda   :  { %1565 = vmatpush2.bf16.msra.mxu0 %v3002_v47  ;;  %v3085_v47 = vld [vmem:[#allocation7 + $0xe4] ss:$8 sps:$4 sm:$0xff]  }
  0xdb   :  { %1604 = vmatpush1.bf16.msra.mxu1 %v2999_v46  ;;  %1566 = vmatprep.subr.bf16.mxu0 %v3010_v49  ;;  %v3118_v46 = vld [vmem:[#allocation7 + $0x134] ss:$8 sps:$4 sm:$0xff]   ;;  %v3083_v49 = vld [vmem:[#allocation7 + $0xe0] ss:$8 sps:$4 sm:$0xff]  }
  0xdc   :  { %1605 = vmatprep.subr.bf16.mxu1 %v3007_v48  ;;  %v3116_v48 = vld [vmem:[#allocation7 + $0x130] ss:$8 sps:$4 sm:$0xff]  }
  0xde   :  { %1567 = vmatpush2.bf16.msra.mxu0 %v3008_v51  ;;  %v3088_v51 = vld [vmem:[#allocation7 + $0xd4] ss:$8 sps:$4 sm:$0xff]  }
  0xdf   :  { %1606 = vmatpush1.bf16.msra.mxu1 %v3005_v50  ;;  %1568 = vmatprep.subr.bf16.mxu0 %v3016_v54  ;;  %v3121_v50 = vld [vmem:[#allocation7 + $0x124] ss:$8 sps:$4 sm:$0xff]   ;;  %v3086_v54 = vld [vmem:[#allocation7 + $0xd0] ss:$8 sps:$4 sm:$0xff]  }
  0xe0   :  { %1607 = vmatprep.subr.bf16.mxu1 %v3013_v53  ;;  %v3119_v53 = vld [vmem:[#allocation7 + $0x120] ss:$8 sps:$4 sm:$0xff]  }
  0xe2   :  { %1569 = vmatpush2.bf16.msra.mxu0 %v3014_v56  ;;  %v3091_v56 = vld [vmem:[#allocation7 + $0xc4] ss:$8 sps:$4 sm:$0xff]  }
  0xe3   :  { %1608 = vmatpush2.bf16.msra.mxu1 %v3011_v55  ;;  %1570 = vmatprep.subr.bf16.mxu0 %v3022_v58  ;;  %v3124_v55 = vld [vmem:[#allocation7 + $0x114] ss:$8 sps:$4 sm:$0xff]   ;;  %v3089_v58 = vld [vmem:[#allocation7 + $0xc0] ss:$8 sps:$4 sm:$0xff]  }
  0xe4   :  { %1609 = vmatprep.subr.bf16.mxu1 %v3019_v57  ;;  %v3122_v57 = vld [vmem:[#allocation7 + $0x110] ss:$8 sps:$4 sm:$0xff]  }
  0xe6   :  { %1571 = vmatpush2.bf16.msra.mxu0 %v3020_v60  ;;  %v3094_v60 = vld [vmem:[#allocation7 + $0xb4] ss:$8 sps:$4 sm:$0xff]  }
  0xe7   :  { %1610 = vmatpush2.bf16.msra.mxu1 %v3017_v59  ;;  %1572 = vmatprep.subr.bf16.mxu0 %v3028_v62  ;;  %v3127_v59 = vld [vmem:[#allocation7 + $0x104] ss:$8 sps:$4 sm:$0xff]   ;;  %v3092_v62 = vld [vmem:[#allocation7 + $0xb0] ss:$8 sps:$4 sm:$0xff]  }
  0xe8   :  { %1611 = vmatprep.subr.bf16.mxu1 %v3025_v61  ;;  %v3125_v61 = vld [vmem:[#allocation7 + $0x100] ss:$8 sps:$4 sm:$0xff]  }
  0xea   :  { %1573 = vmatpush2.bf16.msra.mxu0 %v3026_v1  ;;  %v3097_v1 = vld [vmem:[#allocation7 + $0xa4] ss:$8 sps:$4 sm:$0xff]  }
  0xeb   :  { %1612 = vmatpush2.bf16.msra.mxu1 %v3023_v63  ;;  %1574 = vmatprep.subr.bf16.mxu0 %v3034_v3  ;;  %v3130_v63 = vld [vmem:[#allocation7 + $0x1f4] ss:$8 sps:$4 sm:$0xff]   ;;  %v3095_v3 = vld [vmem:[#allocation7 + $0xa0] ss:$8 sps:$4 sm:$0xff]  }
  0xec   :  { %1613 = vmatprep.subr.bf16.mxu1 %v3031_v2  ;;  %v3128_v2 = vld [vmem:[#allocation7 + $0x1f0] ss:$8 sps:$4 sm:$0xff]  }
  0xee   :  { %1575 = vmatpush2.bf16.msra.mxu0 %v3032_v5  ;;  %v3098_v5 = vld [vmem:[#allocation7 + $0x90] ss:$8 sps:$4 sm:$0xff]  }
  0xef   :  { %1614 = vmatpush2.bf16.msra.mxu1 %v3029_v4  ;;  %1576 = vmatprep.subr.bf16.mxu0 %v3040_v9  ;;  %v3100_v4 = vld [vmem:[#allocation7 + $0x94] ss:$8 sps:$4 sm:$0xff]   ;;  %v3101_v9 = vld [vmem:[#allocation7 + $0x80] ss:$8 sps:$4 sm:$0xff]  }
  0xf0   :  { %1615 = vmatprep.subr.bf16.mxu1 %v3037_v8  ;;  %v3103_v8 = vld [vmem:[#allocation7 + $0x84] ss:$8 sps:$4 sm:$0xff]  }
  0xf2   :  { %1577 = vmatpush2.bf16.msra.mxu0 %v3038_v11  ;;  %v3131_v11 = vld [vmem:[#allocation7 + $0x1e0] ss:$8 sps:$4 sm:$0xff]  }
  0xf3   :  { %1616 = vmatpush2.bf16.msra.mxu1 %v3035_v10  ;;  %1578 = vmatprep.subr.bf16.mxu0 %v3046_v14  ;;  %v3133_v10 = vld [vmem:[#allocation7 + $0x1e4] ss:$8 sps:$4 sm:$0xff]   ;;  %v3134_v14 = vld [vmem:[#allocation7 + $0x1d0] ss:$8 sps:$4 sm:$0xff]  }
  0xf4   :  { %1617 = vmatprep.subr.bf16.mxu1 %v3043_v13  ;;  %v3136_v13 = vld [vmem:[#allocation7 + $0x1d4] ss:$8 sps:$4 sm:$0xff]  }
  0xf6   :  { %1579 = vmatpush2.bf16.msra.mxu0 %v3044_v17  ;;  %v3137_v17 = vld [vmem:[#allocation7 + $0x1c0] ss:$8 sps:$4 sm:$0xff]  }
  0xf7   :  { %1618 = vmatpush2.bf16.msra.mxu1 %v3041_v16  ;;  %2103 = vmatprep.subr.bf16.mxu0 %v3058_v19  ;;  %v3139_v16 = vld [vmem:[#allocation7 + $0x1c4] ss:$8 sps:$4 sm:$0xff]   ;;  %v3140_v19 = vld [vmem:[#allocation7 + $0x1b0] ss:$8 sps:$4 sm:$0xff]  }
  0xf8   :  { %1619 = vmatprep.subr.bf16.mxu1 %v3049_v18  ;;  %v3142_v18 = vld [vmem:[#allocation7 + $0x1b4] ss:$8 sps:$4 sm:$0xff]  }
  0xf9   :  { %1581 = vmatmul.mubr.bf16.vlgmr.msra.gmra.mxu0 %v3368_v7  ;;  %v3065_v7 = vld [vmem:[#allocation7 + $0x40] ss:$8 sps:$4 sm:$0xff]  }
  0xfa   :  { %2104 = vmatpush1.bf16.msra.mxu0 %v3056_v21  ;;  %v3143_v21 = vld [vmem:[#allocation7 + $0x1a0] ss:$8 sps:$4 sm:$0xff]  }
  0xfb   :  { %1620 = vmatpush2.bf16.msra.mxu1 %v3047_v20  ;;  %2105 = vmatprep.subr.bf16.mxu0 %v3061_v23  ;;  %v3145_v20 = vld [vmem:[#allocation7 + $0x1a4] ss:$8 sps:$4 sm:$0xff]   ;;  %v3146_v23 = vld [vmem:[#allocation7 + $0x190] ss:$8 sps:$4 sm:$0xff]  }
  0xfc   :  { %1621 = vmatprep.subr.bf16.mxu1 %v3052_v22  ;;  %v3148_v22 = vld [vmem:[#allocation7 + $0x194] ss:$8 sps:$4 sm:$0xff]  }
  0xfe   :  { %2106 = vmatpush1.bf16.msra.mxu0 %v3059_v26  ;;  %v3149_v26 = vld [vmem:[#allocation7 + $0x180] ss:$8 sps:$4 sm:$0xff]  }
  0xff   :  { %1622 = vmatpush2.bf16.msra.mxu1 %v3050_v25  ;;  %2107 = vmatprep.subr.bf16.mxu0 %v3064_v52  ;;  %v3151_v25 = vld [vmem:[#allocation7 + $0x184] ss:$8 sps:$4 sm:$0xff]   ;;  %v294_v52 = vlaneseq }
 0x100   :  { %1648 = vmatprep.subr.bf16.mxu1 %v3055_v28  ;;  %v3297_v28 = vmov 1  }
 0x101   :  { %2750 = vset.pattern.permute.xlu1 %v3297_v28  ;;  %2751 = vset.pattern.permute.xlu0 %v3297_v28 }
 0x102   :  { %1624 = vmatmul.mubr.bf16.vlgmr.msra.gmra.mxu1 %v3381_v12  ;;  %2108 = vmatpush1.bf16.msra.mxu0 %v3062_v30  ;;  %v3076_v12 = vld [vmem:[#allocation7 + $0x14] ss:$8 sps:$4 sm:$0xff]   ;;  %v3406_v30 = vshrl.u32 %v294_v52, 7 }
 0x103   :  { %1649 = vmatpush1.bf16.msra.mxu1 %v3053_v29  ;;  %1666 = vmatprep.mubr.bf16.mxu1 %v3296_v0  ;;  %v3107_v0 = vld [vmem:[#allocation7 + $0x160] ss:$8 sps:$4 sm:$0xff]  }
 0x104   :  { %2109 = vmatprep.subr.bf16.mxu0 %v3067_v31  ;;  %2146 = vmatprep.subr.bf16.mxu1 %v3106_v37 }
 0x105   :  { %2194 = vperm.xlu1 %2750, %v3388_v24  }
 0x106   :  { %2110 = vmatpush1.bf16.msra.mxu0 %v3065_v7 }
 0x107   :  { %2111 = vmatprep.subr.bf16.mxu0 %v3070_v32  ;;  %v296_v32 = vsub.s32 0, %v3406_v30 }
 0x109   :  { %2198 = vperm.xlu1 %2750, %v3393_v27  }
 0x10a   :  { %2630 = vmatmul.mubr.msk.bf16.vlgmr.msra.gmra.mxu1 %vm1329_vm0, %v3373_v15  ;;  %2112 = vmatpush1.bf16.msra.mxu0 %v3068_v33  ;;  %v3077_v15 = vld [vmem:[#allocation7] ss:$8 sps:$4 sm:$0xff]  }
 0x10b   :  { %2113 = vmatprep.subr.bf16.mxu0 %v3073_v35  ;;  %2147 = vmatpush1.bf16.msra.mxu1 %v3104_v36  ;;  %v292_v35 = vld [vmem:[%s3444_s3] sm:$0xf] }
 0x10c   :  { %2148 = vmatprep.subr.bf16.mxu1 %v3109_v38  ;;  %v297_v24 = vrot.slane %v292_v35, %v296_v32 }
 0x10e   :  { %2114 = vmatpush1.bf16.msra.mxu0 %v3071_v6  ;;  %v300_v6 = vsub.s32 1, %v3406_v30 }
 0x10f   :  { %2115 = vmatprep.subr.bf16.mxu0 %v3076_v12  ;;  %2149 = vmatpush1.bf16.msra.mxu1 %v3107_v0 }
 0x110   :  { %2150 = vmatprep.subr.bf16.mxu1 %v3112_v34  ;;  %v301_v37 = vrot.slane %v292_v35, %v300_v6 }
 0x112   :  { %2116 = vmatpush1.bf16.msra.mxu0 %v3074_v39 }
 0x113   :  { %2117 = vmatprep.subr.bf16.mxu0 %v3079_v40  ;;  %2151 = vmatpush1.bf16.msra.mxu1 %v3110_v41 }
 0x114   :  { %2152 = vmatprep.subr.bf16.mxu1 %v3115_v42 }
 0x116   :  { %2118 = vmatpush1.bf16.msra.mxu0 %v3077_v15 }
 0x117   :  { %2119 = vmatprep.subr.bf16.mxu0 %v3082_v43  ;;  %2153 = vmatpush1.bf16.msra.mxu1 %v3113_v44 }
 0x118   :  { %2154 = vmatprep.subr.bf16.mxu1 %v3118_v46 }
 0x11a   :  { %2120 = vmatpush2.bf16.msra.mxu0 %v3080_v45 }
 0x11b   :  { %2121 = vmatprep.subr.bf16.mxu0 %v3085_v47  ;;  %2155 = vmatpush1.bf16.msra.mxu1 %v3116_v48 }
 0x11c   :  { %2156 = vmatprep.subr.bf16.mxu1 %v3121_v50 }
 0x11e   :  { %2122 = vmatpush2.bf16.msra.mxu0 %v3083_v49  ;;  %v3417_v49 = vpop.permute.xlu0 %1687 }
 0x11f   :  { %2123 = vmatprep.subr.bf16.mxu0 %v3088_v51  ;;  %2157 = vmatpush1.bf16.msra.mxu1 %v3119_v53 }
 0x120   :  { %2158 = vmatprep.subr.bf16.mxu1 %v3124_v55 }
 0x122   :  { %2124 = vmatpush2.bf16.msra.mxu0 %v3086_v54 }
 0x123   :  { %2125 = vmatprep.subr.bf16.mxu0 %v3091_v56  ;;  %2159 = vmatpush1.bf16.msra.mxu1 %v3122_v57 }
 0x124   :  { %2160 = vmatprep.subr.bf16.mxu1 %v3127_v59 }
 0x126   :  { %2126 = vmatpush2.bf16.msra.mxu0 %v3089_v58 }
 0x127   :  { %2127 = vmatprep.subr.bf16.mxu0 %v3094_v60  ;;  %2161 = vmatpush1.bf16.msra.mxu1 %v3125_v61 }
 0x128   :  { %2162 = vmatprep.subr.bf16.mxu1 %v3130_v63 }
 0x12a   :  { %2128 = vmatpush2.bf16.msra.mxu0 %v3092_v62 }
 0x12b   :  { %2129 = vmatprep.subr.bf16.mxu0 %v3097_v1  ;;  %2163 = vmatpush2.bf16.msra.mxu1 %v3128_v2  ;;  %v1693_v1 = vpop.permute.xlu0 %1692 }
 0x12c   :  { %2164 = vmatprep.subr.bf16.mxu1 %v3133_v10 }
 0x12e   :  { %2130 = vmatpush2.bf16.msra.mxu0 %v3095_v3 }
 0x12f   :  { %2131 = vmatprep.subr.bf16.mxu0 %v3100_v4  ;;  %2165 = vmatpush2.bf16.msra.mxu1 %v3131_v11 }
 0x130   :  { %2166 = vmatprep.subr.bf16.mxu1 %v3136_v13 }
 0x132   :  { %2132 = vmatpush2.bf16.msra.mxu0 %v3098_v5 }
 0x133   :  { %2133 = vmatprep.subr.bf16.mxu0 %v3103_v8  ;;  %2167 = vmatpush2.bf16.msra.mxu1 %v3134_v14 }
 0x134   :  { %2168 = vmatprep.subr.bf16.mxu1 %v3139_v16 }
 0x136   :  { %2134 = vmatpush2.bf16.msra.mxu0 %v3101_v9 }
 0x137   :  { %2169 = vmatpush2.bf16.msra.mxu1 %v3137_v17 }
 0x138   :  { %2170 = vmatprep.subr.bf16.mxu1 %v3142_v18  ;;  %v308_v18 = vsub.s32 3, %v3406_v30 }
 0x139   :  { %v1367_v7 = vpop.f32.mrf.mxu0 }
 0x13a   :  { %v1410_v29 = vpop.f32.mrf.mxu1  ;;  %v1368_v38 = vadd.f32 %v1367_v7, %v297_v24 }
 0x13b   :  { %2171 = vmatpush2.bf16.msra.mxu1 %v3140_v19  ;;  %v1369_v36 = vpop.f32.mrf.mxu0  ;;  %v304_v19 = vsub.s32 2, %v3406_v30 }
 0x13c   :  { %2172 = vmatprep.subr.bf16.mxu1 %v3145_v20  ;;  %v1412_v31 = vpop.f32.mrf.mxu1  ;;  %v1370_v39 = vadd.f32 %v1369_v36, %v301_v37  ;;  %v1411_v41 = vadd.f32 %v1410_v29, %v1368_v38 }
 0x13d   :  { %v1371_v12 = vpop.f32.mrf.mxu0 }
 0x13e   :  { %v1414_v33 = vpop.f32.mrf.mxu1  ;;  %v1372_v40 = vadd.f32 %v1371_v12, %v297_v24  ;;  %v1413_v43 = vadd.f32 %v1412_v31, %v1370_v39 }
 0x13f   :  { %2173 = vmatpush2.bf16.msra.mxu1 %v3143_v21  ;;  %v1373_v34 = vpop.f32.mrf.mxu0 }
 0x140   :  { %2174 = vmatprep.subr.bf16.mxu1 %v3148_v22  ;;  %v1416_v27 = vpop.f32.mrf.mxu1  ;;  %v1374_v44 = vadd.f32 %v1373_v34, %v301_v37  ;;  %v1415_v47 = vadd.f32 %v1414_v33, %v1372_v40 }
 0x142   :  { %v1496_v0 = vpop.f32.mrf.mxu1  ;;  %v1417_v53 = vadd.f32 %v1416_v27, %v1374_v44 }
 0x143   :  { %2175 = vmatpush2.bf16.msra.mxu1 %v3146_v23  ;;  %v309_v23 = vrot.slane %v292_v35, %v308_v18 }
 0x144   :  { %2176 = vmatprep.subr.bf16.mxu1 %v3151_v25  ;;  %v1498_v15 = vpop.f32.mrf.mxu1  ;;  %v305_v25 = vrot.slane %v292_v35, %v304_v19 }
 0x146   :  { %v1500_v50 = vpop.f32.mrf.mxu1 }
 0x147   :  { %2177 = vmatpush2.bf16.msra.mxu1 %v3149_v26 }
 0x148   :  { %v1502_v60 = vpop.f32.mrf.mxu1 }
 0x179   :  { %v1453_v42 = vpop.f32.mrf.mxu0 }
 0x17a   :  { %v1454_v45 = vadd.f32 %v1453_v42, %v1411_v41 }
 0x17b   :  { %v1455_v46 = vpop.f32.mrf.mxu0 }
 0x17c   :  { %v1456_v48 = vadd.f32 %v1455_v46, %v1413_v43  ;;  %v1497_v56 = vadd.f32 %v1496_v0, %v1454_v45 }
 0x17d   :  { %v1457_v51 = vpop.f32.mrf.mxu0 }
 0x17e   :  { %v1499_v54 = vadd.f32 %v1498_v15, %v1456_v48  ;;  %v1458_v55 = vadd.f32 %v1457_v51, %v1415_v47  ;;  %v1677_v2 = vmax.f32 %v1497_v56, 0.0 }
 0x17f   :  { %v1459_v57 = vpop.f32.mrf.mxu0 }
 0x180   :  { %v1501_v58 = vadd.f32 %v1500_v50, %v1458_v55  ;;  %v1460_v59 = vadd.f32 %v1459_v57, %v1417_v53  ;;  %v1678_v61 = vmax.f32 %v1499_v54, 0.0  ;;  %v1695_v9 = vmul.f32 %v3417_v49, %v1677_v2  ;;  %v3152_v53 = vld [vmem:[#allocation8 + $0x78] sm:$0xff]   ;;  %v3154_v55 = vld [vmem:[#allocation8 + $0x70] sm:$0xff]   ;;  %v3157_v2 = vld [vmem:[#allocation8 + $0x28] sm:$0xff]  }
 0x181   :  { %v3153_v54 = vld [vmem:[#allocation8 + $0x38] sm:$0xff]   ;;  %2712 = vmatprep.subr.bf16.mxu0 %v3152_v53 }
 0x182   :  { %v1681_v62 = vmax.f32 %v1501_v58, 0.0  ;;  %v1503_v63 = vadd.f32 %v1502_v60, %v1460_v59  ;;  %v1696_v5 = vmul.f32 %v3417_v49, %v1678_v61  ;;  %v1539_v13 = vpop.f32.mrf.mxu1  ;;  %v3155_v60 = vld [vmem:[#allocation8 + $0x30] sm:$0xff]  }
 0x183   :  { %v1540_v31 = vadd.f32 %v1539_v13, %v305_v25  ;;  %v3167_v13 = vld [vmem:[#allocation8] sm:$0xff]  }
 0x184   :  { %v1682_v3 = vmax.f32 %v1503_v63, 0.0  ;;  %v1699_v4 = vmul.f32 %v1693_v1, %v1681_v62  ;;  %v1541_v14 = vpop.f32.mrf.mxu1  ;;  %v3156_v62 = vld [vmem:[#allocation8 + $0x68] sm:$0xff]  }
 0x185   :  { %v1542_v29 = vadd.f32 %v1541_v14, %v309_v23 }
 0x186   :  { %v1700_v8 = vmul.f32 %v1693_v1, %v1682_v3  ;;  %v1703_v11 = vpack.c.bf16 %v1699_v4, %v1695_v9  ;;  %v1543_v16 = vpop.f32.mrf.mxu1  ;;  %v3158_v3 = vld [vmem:[#allocation8 + $0x60] sm:$0xff]   ;;  %v3164_v9 = vld [vmem:[#allocation8 + $0x48] sm:$0xff]  }
 0x187   :  { %v1544_v33 = vadd.f32 %v1543_v16, %v305_v25  ;;  %v3159_v4 = vld [vmem:[#allocation8 + $0x20] sm:$0xff]  }
 0x188   :  { %v1704_v10 = vpack.c.bf16 %v1700_v8, %v1696_v5  ;;  %v1545_v20 = vpop.f32.mrf.mxu1  ;;  %v3161_v5 = vld [vmem:[#allocation8 + $0x18] sm:$0xff]   ;;  %v3163_v8 = vld [vmem:[#allocation8 + $0x10] sm:$0xff]  }
 0x189   :  { %v1546_v12 = vadd.f32 %v1545_v20, %v309_v23 }
 0x18a   :  { %2135 = vmatprep.mubr.bf16.mxu0 %v1704_v10  ;;  %v3165_v10 = vld [vmem:[#allocation8 + $0x8] sm:$0xff]  }
 0x18b   :  { %2136 = vmatmul.mubr.bf16.vlgmr.msra.gmra.mxu0 %v1703_v11  ;;  %v3166_v11 = vld [vmem:[#allocation8 + $0x40] sm:$0xff]  }
 0x18c   :  { %2713 = vmatpush3.bf16.msra.mxu0 %v3153_v54 }
 0x18d   :  { %2714 = vmatprep.subr.bf16.mxu0 %v3154_v55 }
 0x190   :  { %2715 = vmatpush3.bf16.msra.mxu0 %v3155_v60 }
 0x191   :  { %2716 = vmatprep.subr.bf16.mxu0 %v3156_v62 }
 0x194   :  { %2717 = vmatpush3.bf16.msra.mxu0 %v3157_v2 }
 0x195   :  { %2718 = vmatprep.subr.bf16.mxu0 %v3158_v3 }
 0x198   :  { %2719 = vmatpush3.bf16.msra.mxu0 %v3159_v4 }
 0x1b9   :  { %v1582_v17 = vpop.f32.mrf.mxu0 }
 0x1ba   :  { %v1583_v24 = vadd.f32 %v1582_v17, %v1540_v31  ;;  %v1771_v17 = vld [vmem:[%s3446_s5] sm:$0x3] }
 0x1bb   :  { %v1584_v21 = vpop.f32.mrf.mxu0  ;;  %v1780_v18 = vrot.slane %v1771_v17, %v300_v6  ;;  %v1776_v19 = vrot.slane %v1771_v17, %v296_v32 }
 0x1bc   :  { %v1585_v36 = vadd.f32 %v1584_v21, %v1542_v29  ;;  %v2195_v29 = vpop.permute.xlu1 %2194 }
 0x1bd   :  { %v1586_v28 = vpop.f32.mrf.mxu0 }
 0x1be   :  { %v1587_v38 = vadd.f32 %v1586_v28, %v1544_v33 }
 0x1bf   :  { %v1588_v27 = vpop.f32.mrf.mxu0 }
 0x1c0   :  { %v1589_v40 = vadd.f32 %v1588_v27, %v1546_v12  ;;  %v2199_v32 = vpop.permute.xlu1 %2198 }
 0x1c2   :  { %v1625_v22 = vpop.f32.mrf.mxu1 }
 0x1c3   :  { %v1626_v39 = vadd.f32 %v1625_v22, %v1583_v24 }
 0x1c4   :  { %v1627_v26 = vpop.f32.mrf.mxu1 }
 0x1c5   :  { %v1628_v0 = vadd.f32 %v1627_v26, %v1585_v36 }
 0x1c6   :  { %v1629_v52 = vpop.f32.mrf.mxu1 }
 0x1c7   :  { %v1630_v41 = vadd.f32 %v1629_v52, %v1587_v38 }
 0x1c8   :  { %v1631_v7 = vpop.f32.mrf.mxu1 }
 0x1c9   :  { %v1632_v43 = vadd.f32 %v1631_v7, %v1589_v40 }
 0x1ca   :  { %v1668_v37 = vpop.f32.mrf.mxu1 }
 0x1cb   :  { %v1669_v35 = vadd.f32 %v1668_v37, %v1626_v39 }
 0x1cc   :  { %v1670_v34 = vpop.f32.mrf.mxu1 }
 0x1cd   :  { %v1671_v15 = vadd.f32 %v1670_v34, %v1628_v0  ;;  %v1679_v50 = vmax.f32 %v1669_v35, 0.0  ;;  %v2695_v35 = vld [vmem:[%s3448_s7] ss:$0 sm:$0xff]  ;;  %s3298_s7 = smov [#allocation10]  }
 0x1ce   :  { %v1672_v42 = vpop.f32.mrf.mxu1  ;;  %s2412_s14 = sshll.u32 %s3298_s7, 4  ;;  %s2413_s14 = int_to_ptr.vmem [resolvable:$true] %s2412_s14 }
 0x1cf   :  { %v1673_v44 = vadd.f32 %v1672_v42, %v1630_v41  ;;  %v1680_v46 = vmax.f32 %v1671_v15, 0.0  ;;  %v1697_v59 = vmul.f32 %v3417_v49, %v1679_v50  ;;  %s3256_s15 = scalar_lea.vmem %s2413_s14, 256  ;;  %p3261_p7 = scmp.lt.s32.totalorder %s2413_s14, %s2413_s14 }
 0x1d0   :  { %v1674_v45 = vpop.f32.mrf.mxu1  ;;  %p3257_p6 = scmp.ne.s32.totalorder %s2413_s14, %s3256_s15  ;;  %p3262_p8 = scmp.lt.s32.totalorder %s3256_s15, %s3256_s15 }
 0x1d1   :  { %v1683_v47 = vmax.f32 %v1673_v44, 0.0  ;;  %v1675_v48 = vadd.f32 %v1674_v45, %v1632_v43  ;;  %v1698_v57 = vmul.f32 %v3417_v49, %v1680_v46  ;;  %v3162_v49 = vld [vmem:[#allocation8 + $0x50] sm:$0xff]  }
 0x1d2   :  { %p3263_p9 = por %p3262_p8, %p3261_p7 }
 0x1d3   :  { %v1684_v51 = vmax.f32 %v1675_v48, 0.0  ;;  %v1701_v56 = vmul.f32 %v1693_v1, %v1683_v47 }
 0x1d4   :  { %p3264_p10 = pnand %p3263_p9, %p3257_p6 }
 0x1d5   :  { %v1702_v58 = vmul.f32 %v1693_v1, %v1684_v51  ;;  %v1705_v63 = vpack.c.bf16 %v1701_v56, %v1697_v59  ;;  %v3160_v1 = vld [vmem:[#allocation8 + $0x58] sm:$0xff]  }
 0x1d6   :  { %2720 = vmatprep.subr.bf16.mxu0 %v3160_v1 }
 0x1d7   :  { %v1706_v61 = vpack.c.bf16 %v1702_v58, %v1698_v57  ;;  %2721 = vmatpush3.bf16.msra.mxu0 %v3161_v5 }
 0x1d8   :  { %2722 = vmatprep.subr.bf16.mxu0 %v3162_v49 }
 0x1d9   :  { %2178 = vmatprep.mubr.bf16.mxu1 %v1706_v61 }
 0x1da   :  { %2179 = vmatmul.mubr.bf16.vlgmr.msra.gmra.mxu1 %v1705_v63 }
 0x1db   :  { %2723 = vmatpush3.bf16.msra.mxu0 %v3163_v8 }
 0x1dc   :  { %2724 = vmatprep.subr.bf16.mxu0 %v3164_v9 }
 0x1df   :  { %2725 = vmatpush3.bf16.msra.mxu0 %v3165_v10 }
 0x1e0   :  { %2726 = vmatprep.subr.bf16.mxu0 %v3166_v11 }
 0x1e3   :  { %2727 = vmatpush3.bf16.msra.mxu0 %v3167_v13 }
 0x24b   :  { %v2137_v14 = vpop.f32.mrf.mxu0 }
 0x24c   :  { %v2138_v23 = vadd.f32 %v2137_v14, %v1776_v19 }
 0x24d   :  { %v2139_v16 = vpop.f32.mrf.mxu0 }
 0x24e   :  { %v2140_v22 = vadd.f32 %v2139_v16, %v1780_v18 }
 0x24f   :  { %v2141_v20 = vpop.f32.mrf.mxu0 }
 0x250   :  { %v2142_v28 = vadd.f32 %v2141_v20, %v1776_v19 }
 0x251   :  { %v2143_v25 = vpop.f32.mrf.mxu0 }
 0x252   :  { %v2144_v33 = vadd.f32 %v2143_v25, %v1780_v18 }
 0x29a   :  { %v2180_v21 = vpop.f32.mrf.mxu1 }
 0x29b   :  { %v2181_v31 = vadd.f32 %v2180_v21, %v2138_v23 }
 0x29c   :  { %v2182_v26 = vpop.f32.mrf.mxu1 }
 0x29d   :  { %v2183_v52 = vadd.f32 %v2182_v26, %v2140_v22  ;;  %v2189_v12 = vmax.f32 %v2181_v31, 0.0 }
 0x29e   :  { %v2184_v7 = vpop.f32.mrf.mxu1 }
 0x29f   :  { %v2185_v36 = vadd.f32 %v2184_v7, %v2142_v28  ;;  %v2190_v27 = vmax.f32 %v2183_v52, 0.0  ;;  %v2201_v34 = vmul.f32 %v2195_v29, %v2189_v12 }
 0x2a0   :  { %v2186_v24 = vpop.f32.mrf.mxu1 }
 0x2a1   :  { %v2191_v37 = vmax.f32 %v2185_v36, 0.0  ;;  %v2187_v6 = vadd.f32 %v2186_v24, %v2144_v33  ;;  %v2202_v0 = vmul.f32 %v2195_v29, %v2190_v27 }
 0x2a3   :  { %v2192_v30 = vmax.f32 %v2187_v6, 0.0  ;;  %v2203_v38 = vmul.f32 %v2199_v32, %v2191_v37 }
 0x2a5   :  { %v2204_v39 = vmul.f32 %v2199_v32, %v2192_v30  ;;  %v2205_v41 = vpack.c.bf16 %v2203_v38, %v2201_v34 }
 0x2a7   :  { %v2206_v40 = vpack.c.bf16 %v2204_v39, %v2202_v0 }
 0x2a9   :  { %2374 = vmatprep.mubr.bf16.mxu0 %v2206_v40 }
 0x2aa   :  { %2375 = vmatmul.mubr.bf16.vlgmr.msra.gmra.mxu0 %v2205_v41 }
 0x36a   :  { %v2728_v15 = vpop.f32.mrf.mxu0 }
 0x36c   :  { %v2729_v42 = vpop.f32.mrf.mxu0 }
 0x36d   :  { %v2730_v43 = vadd.f32 %v2729_v42, %v2728_v15 }
 0x36e   :  { %v2731_v44 = vpop.f32.mrf.mxu0 }
 0x36f   :  { %v2377_v45 = vadd.f32 %v2730_v43, %v2695_v35 }
 0x370   :  { %v2732_v46 = vpop.f32.mrf.mxu0 }
 0x371   :  { %v2733_v47 = vadd.f32 %v2732_v46, %v2731_v44  ;;  %2383 = vmax.xlane.f32.xlu0 %v2377_v45 }
 0x373   :  { %v2380_v48 = vadd.f32 %v2733_v47, %v2695_v35 }
 0x375   :  { %2385 = vmax.xlane.f32.xlu1 %v2380_v48 }
 0x3fa   :  { %v2384_v50 = vpop.xlane.xlu0 %2383 }
 0x3fb   :  { %v2387_v51 = vsub.f32 %v2377_v45, %v2384_v50 }
 0x3fd   :  { %v2389_v53 = vmul.f32 1.442695, %v2387_v51 }
 0x3fe   :  { %v2386_v54 = vpop.xlane.xlu1 %2385 }
 0x3ff   :  { %3168 = vpow2.f32 %v2389_v53  ;;  %v2388_v55 = vsub.f32 %v2380_v48, %v2386_v54 }
 0x401   :  { %v2391_v56 = vmul.f32 1.442695, %v2388_v55 }
 0x403   :  { %3170 = vpow2.f32 %v2391_v56 }
 0x40c   :  { %v3169_v57 = vpop.eup %3168 }
 0x40d   :  { %2393 = vadd.xlane.f32.xlu0 %v3169_v57 }
 0x410   :  { %v3171_v58 = vpop.eup %3170 }
 0x411   :  { %2395 = vadd.xlane.f32.xlu0 %v3171_v58 }
 0x496   :  { %v2394_v59 = vpop.xlane.xlu0 %2393 }
 0x497   :  { %3172 = vlog2.f32 %v2394_v59 }
 0x49a   :  { %v2396_v60 = vpop.xlane.xlu0 %2395 }
 0x49b   :  { %3174 = vlog2.f32 %v2396_v60 }
 0x4a4   :  { %v3173_v61 = vpop.eup %3172 }
 0x4a5   :  { %v2398_v62 = vmul.f32 0.6931472, %v3173_v61 }
 0x4a7   :  { %v2401_v63 = vadd.f32 %v2398_v62, %v2384_v50 }
 0x4a8   :  { %v3175_v2 = vpop.eup %3174 }
 0x4a9   :  { %v2400_v3 = vmul.f32 0.6931472, %v3175_v2  ;;  %v2403_v4 = vsub.f32 %v2377_v45, %v2401_v63 }
 0x4ab   :  { %v2402_v1 = vadd.f32 %v2400_v3, %v2386_v54  ;;  %2405 = vst [vmem:[#allocation10] sm:$0xff] %v2403_v4 }
 0x4ad   :  { %v2404_v5 = vsub.f32 %v2380_v48, %v2402_v1 }
 0x4af   :  { %2406 = vst [vmem:[#allocation10 + $0x8] sm:$0xff] %v2404_v5 }
 0x4b0   :  { %3267 = shalt.err (!%p3264_p10)
}
 0x4b1   :  { %2418 = dma.vmem_to_hbm [thread:$0]  %s2413_s14, 256, %s3449_s8, [#allocation4], %s3291_s21, %s3291_s21, %s3292_s22  }
 0x4b2   :  { %3282 = dma.done.wait [#allocation4], 256  }
 0x4b3   :  { %3283 = vsyncadd [#allocation4], 4294967040 }
 0x4b4   :  { %2422 = vsyncpa [#allocation3], 1 }
 0x4b5   :  { %2423 = vsyncpa [#allocation6], 1 }
 0x4b6   :  { %2424 = vsyncpa [#allocation9], 1 }
 0x4b7   :  { %2425 = vsyncpa [#allocation4], 1 }

// kernel: _fused_forward.1
= control target key start
LH: loop header
LB: loop body
LE: loop exit
PB: predicated region body
PF: predicated region fallthrough
CT: control target
= control target key end

     0   :  { %13 = vsyncpa [#allocation3], 0  ;;  %s3441_s0 = inlined_call_operand.hbm [shape: bf16[16,784], index: 0, kind: input, shape index: {}]   ;;  %s3442_s1 = inlined_call_operand.vmem [shape: f32[1,16,2], index: 1, kind: input, shape index: {}]   ;;  %s3443_s2 = inlined_call_operand.hbm [shape: bf16[784,512], index: 2, kind: input, shape index: {}]   ;;  %s3444_s3 = inlined_call_operand.vmem [shape: f32[1,512], index: 3, kind: input, shape index: {}]   ;;  %s3445_s4 = inlined_call_operand.hbm [shape: bf16[512,256], index: 4, kind: input, shape index: {}]   ;;  %s3446_s5 = inlined_call_operand.vmem [shape: f32[1,256], index: 5, kind: input, shape index: {}]   ;;  %s3447_s6 = inlined_call_operand.hbm [shape: bf16[256,128], index: 6, kind: input, shape index: {}]   ;;  %s3448_s7 = inlined_call_operand.vmem [shape: f32[1,128], index: 7, kind: input, shape index: {}]   ;;  %s3449_s8 = inlined_call_operand.hbm [shape: f32[1,16,128], index: 8, kind: output, shape index: {}]  }
   0x1   :  { %14 = vsyncpa [#allocation6], 0 }
   0x2   :  { %15 = vsyncpa [#allocation9], 0 }
   0x3   :  { %16 = vsyncpa [#allocation4], 0  ;;  %s3284_s27 = smov [#allocation5]  }
   0x4   :  { %s36_s28 = sshll.u32 %s3284_s27, 4  ;;  %s37_s28 = int_to_ptr.vmem [resolvable:$true] %s36_s28 }
   0x5   :  { %s3184_s29 = scalar_lea.vmem %s37_s28, 25088  ;;  %p3189_p1 = scmp.lt.s32.totalorder %s37_s28, %s37_s28 }
   0x6   :  { %p3185_p0 = scmp.ne.s32.totalorder %s37_s28, %s3184_s29  ;;  %p3190_p2 = scmp.lt.s32.totalorder %s3184_s29, %s3184_s29 }
   0x8   :  { %p3191_p3 = por %p3190_p2, %p3189_p1 }
   0xa   :  { %p3192_p4 = pnand %p3191_p3, %p3185_p0 }
   0xc   :  { %3195 = shalt.err (!%p3192_p4)
}
   0xd   :  { %s3285_s30 = smov 256   ;;  %s3286_s9 = smov 16  }
   0xe   :  { %42 = dma.hbm_to_vmem [thread:$0]  %s3443_s2, 25088, %s37_s28, [#allocation6], %s3285_s30, %s3285_s30, %s3286_s9  }
   0xf   :  { %s3287_s12 = smov [#allocation2]  }
  0x10   :  { %s22_s13 = sshll.u32 %s3287_s12, 4  ;;  %s23_s13 = int_to_ptr.vmem [resolvable:$true] %s22_s13 }
  0x11   :  { %s3204_s14 = scalar_lea.vmem %s23_s13, 896  ;;  %p3209_p6 = scmp.lt.s32.totalorder %s23_s13, %s23_s13 }
  0x12   :  { %p3205_p5 = scmp.ne.s32.totalorder %s23_s13, %s3204_s14  ;;  %p3210_p7 = scmp.lt.s32.totalorder %s3204_s14, %s3204_s14 }
  0x14   :  { %p3211_p8 = por %p3210_p7, %p3209_p6 }
  0x16   :  { %p3212_p9 = pnand %p3211_p8, %p3205_p5 }
  0x18   :  { %3215 = shalt.err (!%p3212_p9)
}
  0x19   :  { %s3288_s15 = smov 448   ;;  %s3289_s16 = smov 28  }
  0x1a   :  { %28 = dma.hbm_to_vmem [thread:$0]  %s3441_s0, 896, %s23_s13, [#allocation3], %s3288_s15, %s3288_s15, %s3289_s16  }
  0x1b   :  { %s3290_s19 = smov [#allocation7]  }
  0x1c   :  { %s50_s20 = sshll.u32 %s3290_s19, 4  ;;  %s51_s20 = int_to_ptr.vmem [resolvable:$true] %s50_s20 }
  0x1d   :  { %s3224_s2 = scalar_lea.vmem %s51_s20, 8192  ;;  %p3229_p11 = scmp.lt.s32.totalorder %s51_s20, %s51_s20 }
  0x1e   :  { %p3225_p10 = scmp.ne.s32.totalorder %s51_s20, %s3224_s2  ;;  %p3230_p12 = scmp.lt.s32.totalorder %s3224_s2, %s3224_s2 }
  0x20   :  { %p3231_p13 = por %p3230_p12, %p3229_p11 }
  0x22   :  { %p3232_p0 = pnand %p3231_p13, %p3225_p10 }
  0x24   :  { %3235 = shalt.err (!%p3232_p0)
}
  0x25   :  { %s3291_s21 = smov 128   ;;  %s3292_s22 = smov 8  }
  0x26   :  { %56 = dma.hbm_to_vmem [thread:$0]  %s3445_s4, 8192, %s51_s20, [#allocation6], %s3291_s21, %s3291_s21, %s3292_s22  }
  0x27   :  { %s3293_s0 = smov [#allocation8]  }
  0x28   :  { %s64_s25 = sshll.u32 %s3293_s0, 4  ;;  %s65_s25 = int_to_ptr.vmem [resolvable:$true] %s64_s25 }
  0x29   :  { %s3244_s26 = scalar_lea.vmem %s65_s25, 2048  ;;  %p3249_p2 = scmp.lt.s32.totalorder %s65_s25, %s65_s25 }
  0x2a   :  { %p3245_p1 = scmp.ne.s32.totalorder %s65_s25, %s3244_s26  ;;  %p3250_p3 = scmp.lt.s32.totalorder %s3244_s26, %s3244_s26 }
  0x2c   :  { %p3251_p4 = por %p3250_p3, %p3249_p2 }
  0x2e   :  { %p3252_p5 = pnand %p3251_p4, %p3245_p1 }
  0x30   :  { %3255 = shalt.err (!%p3252_p5)
}
  0x31   :  { %s3294_s27 = smov 64   ;;  %s3295_s28 = smov 4  }
  0x32   :  { %70 = dma.hbm_to_vmem [thread:$0]  %s3447_s6, 2048, %s65_s25, [#allocation9], %s3294_s27, %s3294_s27, %s3295_s28  }
  0x33   :  { %3276 = dma.done.wait [#allocation3], 896  }
  0x34   :  { %3277 = vsyncadd [#allocation3], 4294966400 }
  0x35   :  { %3278 = dma.done.wait [#allocation6], 33280  }
  0x36   :  { %3279 = vsyncadd [#allocation6], 4294934016 }
  0x37   :  { %3280 = dma.done.wait [#allocation9], 2048  }
  0x38   :  { %3281 = vsyncadd [#allocation9], 4294965248  ;;  %v3296_v0 = vmov 0   ;;  %v2752_v1 = vld [vmem:[#allocation5 + $0xe4] ss:$16 sps:$4 sm:$0xff]   ;;  %vm1329_vm0 = vcmask 130048  }
  0x39   :  { %2749 = vset.pattern.permute.xlu0 %v3296_v0  ;;  %v2754_v2 = vld [vmem:[#allocation5 + $0x2e4] ss:$16 sps:$4 sm:$0xff]   ;;  %1333 = vmatprep.subr.bf16.mxu0 %v2752_v1  ;;  %v2756_v3 = vld [vmem:[#allocation5 + $0xe0] ss:$16 sps:$4 sm:$0xff]   ;;  %v3360_v50 = vld [vmem:[#allocation2 + $0x4] ss:$28 sps:$4 sm:$0xff]  }
  0x3a   :  { %v2757_v4 = vld [vmem:[#allocation5 + $0x2e0] ss:$16 sps:$4 sm:$0xff]   ;;  %1376 = vmatprep.subr.bf16.mxu1 %v2754_v2  ;;  %v2758_v5 = vld [vmem:[#allocation5 + $0xc4] ss:$16 sps:$4 sm:$0xff]   ;;  %1334 = vmatpush1.bf16.msra.mxu0 %v2756_v3 }
  0x3b   :  { %1377 = vmatpush1.bf16.msra.mxu1 %v2757_v4  ;;  %v2760_v6 = vld [vmem:[#allocation5 + $0x2c4] ss:$16 sps:$4 sm:$0xff]   ;;  %v2762_v7 = vld [vmem:[#allocation5 + $0xc0] ss:$16 sps:$4 sm:$0xff]   ;;  %1335 = vmatprep.subr.bf16.mxu0 %v2758_v5 }
  0x3c   :  { %v2763_v8 = vld [vmem:[#allocation5 + $0x2c0] ss:$16 sps:$4 sm:$0xff]   ;;  %1378 = vmatprep.subr.bf16.mxu1 %v2760_v6  ;;  %v2764_v9 = vld [vmem:[#allocation5 + $0xa4] ss:$16 sps:$4 sm:$0xff]   ;;  %1365 = vmatprep.mubr.bf16.mxu0 %v3360_v50 }
  0x3d   :  { %v2766_v10 = vld [vmem:[#allocation5 + $0x2a4] ss:$16 sps:$4 sm:$0xff]   ;;  %v2768_v11 = vld [vmem:[#allocation5 + $0xa0] ss:$16 sps:$4 sm:$0xff]  }
  0x3e   :  { %v2769_v12 = vld [vmem:[#allocation5 + $0x2a0] ss:$16 sps:$4 sm:$0xff]   ;;  %1336 = vmatpush1.bf16.msra.mxu0 %v2762_v7  ;;  %v2770_v13 = vld [vmem:[#allocation5 + $0x84] ss:$16 sps:$4 sm:$0xff]  }
  0x3f   :  { %1379 = vmatpush1.bf16.msra.mxu1 %v2763_v8  ;;  %1337 = vmatprep.subr.bf16.mxu0 %v2764_v9  ;;  %v2772_v14 = vld [vmem:[#allocation5 + $0x284] ss:$16 sps:$4 sm:$0xff]   ;;  %v2774_v15 = vld [vmem:[#allocation5 + $0x80] ss:$16 sps:$4 sm:$0xff]  }
  0x40   :  { %1380 = vmatprep.subr.bf16.mxu1 %v2766_v10  ;;  %v2775_v16 = vld [vmem:[#allocation5 + $0x280] ss:$16 sps:$4 sm:$0xff]   ;;  %v2776_v17 = vld [vmem:[#allocation5 + $0x64] ss:$16 sps:$4 sm:$0xff]  }
  0x41   :  { %v2778_v18 = vld [vmem:[#allocation5 + $0x264] ss:$16 sps:$4 sm:$0xff]   ;;  %v2780_v19 = vld [vmem:[#allocation5 + $0x60] ss:$16 sps:$4 sm:$0xff]  }
  0x42   :  { %1338 = vmatpush1.bf16.msra.mxu0 %v2768_v11  ;;  %v2781_v20 = vld [vmem:[#allocation5 + $0x260] ss:$16 sps:$4 sm:$0xff]   ;;  %v2782_v21 = vld [vmem:[#allocation5 + $0x44] ss:$16 sps:$4 sm:$0xff]   ;;  %v2865_v11 = vld [vmem:[#allocation5 + $0xec] ss:$16 sps:$4 sm:$0xff]  }
  0x43   :  { %1381 = vmatpush1.bf16.msra.mxu1 %v2769_v12  ;;  %1339 = vmatprep.subr.bf16.mxu0 %v2770_v13  ;;  %v2784_v22 = vld [vmem:[#allocation5 + $0x244] ss:$16 sps:$4 sm:$0xff]   ;;  %v2786_v23 = vld [vmem:[#allocation5 + $0x40] ss:$16 sps:$4 sm:$0xff]  }
  0x44   :  { %1382 = vmatprep.subr.bf16.mxu1 %v2772_v14  ;;  %v2787_v24 = vld [vmem:[#allocation5 + $0x240] ss:$16 sps:$4 sm:$0xff]   ;;  %v2788_v25 = vld [vmem:[#allocation5 + $0x24] ss:$16 sps:$4 sm:$0xff]   ;;  %v2863_v14 = vld [vmem:[#allocation5 + $0xe8] ss:$16 sps:$4 sm:$0xff]  }
  0x45   :  { %v2790_v26 = vld [vmem:[#allocation5 + $0x224] ss:$16 sps:$4 sm:$0xff]   ;;  %v2792_v27 = vld [vmem:[#allocation5 + $0x20] ss:$16 sps:$4 sm:$0xff]  }
  0x46   :  { %1340 = vmatpush1.bf16.msra.mxu0 %v2774_v15  ;;  %v2793_v28 = vld [vmem:[#allocation5 + $0x220] ss:$16 sps:$4 sm:$0xff]   ;;  %v2794_v29 = vld [vmem:[#allocation5 + $0x4] ss:$16 sps:$4 sm:$0xff]  }
  0x47   :  { %1383 = vmatpush1.bf16.msra.mxu1 %v2775_v16  ;;  %1341 = vmatprep.subr.bf16.mxu0 %v2776_v17  ;;  %v2796_v30 = vld [vmem:[#allocation5 + $0x204] ss:$16 sps:$4 sm:$0xff]   ;;  %v2798_v31 = vld [vmem:[#allocation5] ss:$16 sps:$4 sm:$0xff]   ;;  %v2872_v17 = vld [vmem:[#allocation5 + $0xcc] ss:$16 sps:$4 sm:$0xff]  }
  0x48   :  { %1384 = vmatprep.subr.bf16.mxu1 %v2778_v18  ;;  %v2799_v32 = vld [vmem:[#allocation5 + $0x200] ss:$16 sps:$4 sm:$0xff]   ;;  %v2800_v33 = vld [vmem:[#allocation5 + $0x1e4] ss:$16 sps:$4 sm:$0xff]  }
  0x49   :  { %v2802_v34 = vld [vmem:[#allocation5 + $0x3e4] ss:$16 sps:$4 sm:$0xff]   ;;  %v2804_v35 = vld [vmem:[#allocation5 + $0x1e0] ss:$16 sps:$4 sm:$0xff]  }
  0x4a   :  { %1342 = vmatpush1.bf16.msra.mxu0 %v2780_v19  ;;  %v2805_v36 = vld [vmem:[#allocation5 + $0x3e0] ss:$16 sps:$4 sm:$0xff]   ;;  %v2806_v37 = vld [vmem:[#allocation5 + $0x1c4] ss:$16 sps:$4 sm:$0xff]   ;;  %v2870_v19 = vld [vmem:[#allocation5 + $0xc8] ss:$16 sps:$4 sm:$0xff]  }
  0x4b   :  { %1385 = vmatpush1.bf16.msra.mxu1 %v2781_v20  ;;  %1343 = vmatprep.subr.bf16.mxu0 %v2782_v21  ;;  %v2808_v38 = vld [vmem:[#allocation5 + $0x3c4] ss:$16 sps:$4 sm:$0xff]   ;;  %v2810_v39 = vld [vmem:[#allocation5 + $0x1c0] ss:$16 sps:$4 sm:$0xff]   ;;  %v2878_v21 = vld [vmem:[#allocation5 + $0xac] ss:$16 sps:$4 sm:$0xff]  }
  0x4c   :  { %1386 = vmatprep.subr.bf16.mxu1 %v2784_v22  ;;  %v2811_v40 = vld [vmem:[#allocation5 + $0x3c0] ss:$16 sps:$4 sm:$0xff]   ;;  %v2812_v41 = vld [vmem:[#allocation5 + $0x1a4] ss:$16 sps:$4 sm:$0xff]  }
  0x4d   :  { %v2814_v42 = vld [vmem:[#allocation5 + $0x3a4] ss:$16 sps:$4 sm:$0xff]   ;;  %v2816_v43 = vld [vmem:[#allocation5 + $0x1a0] ss:$16 sps:$4 sm:$0xff]  }
  0x4e   :  { %1344 = vmatpush1.bf16.msra.mxu0 %v2786_v23  ;;  %v2817_v44 = vld [vmem:[#allocation5 + $0x3a0] ss:$16 sps:$4 sm:$0xff]   ;;  %v2818_v45 = vld [vmem:[#allocation5 + $0x184] ss:$16 sps:$4 sm:$0xff]   ;;  %v2876_v23 = vld [vmem:[#allocation5 + $0xa8] ss:$16 sps:$4 sm:$0xff]  }
  0x4f   :  { %1387 = vmatpush1.bf16.msra.mxu1 %v2787_v24  ;;  %1345 = vmatprep.subr.bf16.mxu0 %v2788_v25  ;;  %v2820_v46 = vld [vmem:[#allocation5 + $0x384] ss:$16 sps:$4 sm:$0xff]   ;;  %v2822_v47 = vld [vmem:[#allocation5 + $0x180] ss:$16 sps:$4 sm:$0xff]   ;;  %v2884_v25 = vld [vmem:[#allocation5 + $0x8c] ss:$16 sps:$4 sm:$0xff]  }
  0x50   :  { %1388 = vmatprep.subr.bf16.mxu1 %v2790_v26  ;;  %v2823_v48 = vld [vmem:[#allocation5 + $0x380] ss:$16 sps:$4 sm:$0xff]   ;;  %v2824_v49 = vld [vmem:[#allocation5 + $0x164] ss:$16 sps:$4 sm:$0xff]  }
  0x51   :  { %v2826_v51 = vld [vmem:[#allocation5 + $0x364] ss:$16 sps:$4 sm:$0xff]   ;;  %v2828_v53 = vld [vmem:[#allocation5 + $0x160] ss:$16 sps:$4 sm:$0xff]  }
  0x52   :  { %1346 = vmatpush1.bf16.msra.mxu0 %v2792_v27  ;;  %v3362_v52 = vld [vmem:[#allocation2 + $0xc] ss:$28 sps:$4 sm:$0xff]   ;;  %v3366_v6 = vld [vmem:[#allocation2] ss:$28 sps:$4 sm:$0xff]   ;;  %v3373_v15 = vld [vmem:[#allocation2 + $0x18] ss:$28 sps:$4 sm:$0xff]  }
  0x53   :  { %1389 = vmatpush1.bf16.msra.mxu1 %v2793_v28  ;;  %1347 = vmatprep.subr.bf16.mxu0 %v2794_v29  ;;  %v2829_v54 = vld [vmem:[#allocation5 + $0x360] ss:$16 sps:$4 sm:$0xff]   ;;  %v2830_v55 = vld [vmem:[#allocation5 + $0x144] ss:$16 sps:$4 sm:$0xff]   ;;  %v2882_v27 = vld [vmem:[#allocation5 + $0x88] ss:$16 sps:$4 sm:$0xff]  }
  0x54   :  { %1390 = vmatprep.subr.bf16.mxu1 %v2796_v30  ;;  %1408 = vmatprep.mubr.bf16.mxu1 %v3362_v52  ;;  %v2832_v56 = vld [vmem:[#allocation5 + $0x344] ss:$16 sps:$4 sm:$0xff]   ;;  %v2834_v57 = vld [vmem:[#allocation5 + $0x140] ss:$16 sps:$4 sm:$0xff]   ;;  %v2890_v29 = vld [vmem:[#allocation5 + $0x6c] ss:$16 sps:$4 sm:$0xff]  }
  0x55   :  { %v2835_v58 = vld [vmem:[#allocation5 + $0x340] ss:$16 sps:$4 sm:$0xff]   ;;  %v2836_v59 = vld [vmem:[#allocation5 + $0x124] ss:$16 sps:$4 sm:$0xff]  }
  0x56   :  { %1348 = vmatpush1.bf16.msra.mxu0 %v2798_v31  ;;  %v2838_v60 = vld [vmem:[#allocation5 + $0x324] ss:$16 sps:$4 sm:$0xff]   ;;  %v2840_v61 = vld [vmem:[#allocation5 + $0x120] ss:$16 sps:$4 sm:$0xff]   ;;  %v2888_v31 = vld [vmem:[#allocation5 + $0x68] ss:$16 sps:$4 sm:$0xff]  }
  0x57   :  { %1391 = vmatpush1.bf16.msra.mxu1 %v2799_v32  ;;  %1349 = vmatprep.subr.bf16.mxu0 %v2800_v33  ;;  %v2841_v62 = vld [vmem:[#allocation5 + $0x320] ss:$16 sps:$4 sm:$0xff]   ;;  %v2842_v63 = vld [vmem:[#allocation5 + $0x104] ss:$16 sps:$4 sm:$0xff]   ;;  %v2896_v33 = vld [vmem:[#allocation5 + $0x4c] ss:$16 sps:$4 sm:$0xff]  }
  0x58   :  { %1392 = vmatprep.subr.bf16.mxu1 %v2802_v34  ;;  %v2844_v1 = vld [vmem:[#allocation5 + $0x304] ss:$16 sps:$4 sm:$0xff]   ;;  %v2846_v2 = vld [vmem:[#allocation5 + $0x100] ss:$16 sps:$4 sm:$0xff]   ;;  %v3378_v34 = vld [vmem:[#allocation2 + $0x14] ss:$28 sps:$4 sm:$0xff]  }
  0x59   :  { %v2847_v3 = vld [vmem:[#allocation5 + $0x300] ss:$16 sps:$4 sm:$0xff]   ;;  %v2856_v4 = vld [vmem:[#allocation5 + $0x4e4] ss:$16 sps:$4 sm:$0xff]  }
  0x5a   :  { %1350 = vmatpush2.bf16.msra.mxu0 %v2804_v35  ;;  %v2859_v5 = vld [vmem:[#allocation5 + $0x604] ss:$16 sps:$4 sm:$0xff]   ;;  %v3368_v7 = vld [vmem:[#allocation2 + $0x8] ss:$28 sps:$4 sm:$0xff]  }
  0x5b   :  { %1393 = vmatpush2.bf16.msra.mxu1 %v2805_v36  ;;  %1351 = vmatprep.subr.bf16.mxu0 %v2806_v37  ;;  %v2854_v8 = vld [vmem:[#allocation5 + $0x4e0] ss:$16 sps:$4 sm:$0xff]   ;;  %v2862_v10 = vld [vmem:[#allocation5 + $0x4c4] ss:$16 sps:$4 sm:$0xff]   ;;  %v2894_v36 = vld [vmem:[#allocation5 + $0x48] ss:$16 sps:$4 sm:$0xff]  }
  0x5c   :  { %1394 = vmatprep.subr.bf16.mxu1 %v2808_v38  ;;  %v2857_v9 = vld [vmem:[#allocation5 + $0x600] ss:$16 sps:$4 sm:$0xff]   ;;  %v2868_v13 = vld [vmem:[#allocation5 + $0x4a4] ss:$16 sps:$4 sm:$0xff]   ;;  %v2902_v38 = vld [vmem:[#allocation5 + $0x2c] ss:$16 sps:$4 sm:$0xff]  }
  0x5d   :  { %v2860_v12 = vld [vmem:[#allocation5 + $0x4c0] ss:$16 sps:$4 sm:$0xff]   ;;  %v2875_v18 = vld [vmem:[#allocation5 + $0x484] ss:$16 sps:$4 sm:$0xff]  }
  0x5e   :  { %1352 = vmatpush2.bf16.msra.mxu0 %v2810_v39  ;;  %v2866_v16 = vld [vmem:[#allocation5 + $0x4a0] ss:$16 sps:$4 sm:$0xff]   ;;  %v2881_v22 = vld [vmem:[#allocation5 + $0x464] ss:$16 sps:$4 sm:$0xff]  }
  0x5f   :  { %1395 = vmatpush2.bf16.msra.mxu1 %v2811_v40  ;;  %1353 = vmatprep.subr.bf16.mxu0 %v2812_v41  ;;  %v2873_v20 = vld [vmem:[#allocation5 + $0x480] ss:$16 sps:$4 sm:$0xff]   ;;  %v2887_v26 = vld [vmem:[#allocation5 + $0x444] ss:$16 sps:$4 sm:$0xff]   ;;  %v2900_v40 = vld [vmem:[#allocation5 + $0x28] ss:$16 sps:$4 sm:$0xff]  }
  0x60   :  { %1396 = vmatprep.subr.bf16.mxu1 %v2814_v42  ;;  %v2879_v24 = vld [vmem:[#allocation5 + $0x460] ss:$16 sps:$4 sm:$0xff]   ;;  %v2893_v30 = vld [vmem:[#allocation5 + $0x424] ss:$16 sps:$4 sm:$0xff]   ;;  %v2908_v42 = vld [vmem:[#allocation5 + $0xc] ss:$16 sps:$4 sm:$0xff]  }
  0x61   :  { %v2885_v28 = vld [vmem:[#allocation5 + $0x440] ss:$16 sps:$4 sm:$0xff]   ;;  %v2899_v35 = vld [vmem:[#allocation5 + $0x404] ss:$16 sps:$4 sm:$0xff]  }
  0x62   :  { %1354 = vmatpush2.bf16.msra.mxu0 %v2816_v43  ;;  %v2891_v32 = vld [vmem:[#allocation5 + $0x420] ss:$16 sps:$4 sm:$0xff]   ;;  %v2905_v39 = vld [vmem:[#allocation5 + $0x5e4] ss:$16 sps:$4 sm:$0xff]  }
  0x63   :  { %1397 = vmatpush2.bf16.msra.mxu1 %v2817_v44  ;;  %1355 = vmatprep.subr.bf16.mxu0 %v2818_v45  ;;  %v2897_v37 = vld [vmem:[#allocation5 + $0x400] ss:$16 sps:$4 sm:$0xff]   ;;  %v2911_v43 = vld [vmem:[#allocation5 + $0x5c4] ss:$16 sps:$4 sm:$0xff]   ;;  %v2906_v44 = vld [vmem:[#allocation5 + $0x8] ss:$16 sps:$4 sm:$0xff]  }
  0x64   :  { %1398 = vmatprep.subr.bf16.mxu1 %v2820_v46  ;;  %v2903_v41 = vld [vmem:[#allocation5 + $0x5e0] ss:$16 sps:$4 sm:$0xff]   ;;  %v2914_v46 = vld [vmem:[#allocation5 + $0x1ec] ss:$16 sps:$4 sm:$0xff]  }
  0x65   :  { %v2909_v45 = vld [vmem:[#allocation5 + $0x5c0] ss:$16 sps:$4 sm:$0xff]  }
  0x66   :  { %1356 = vmatpush2.bf16.msra.mxu0 %v2822_v47  ;;  %v2917_v47 = vld [vmem:[#allocation5 + $0x5a4] ss:$16 sps:$4 sm:$0xff]  }
  0x67   :  { %1399 = vmatpush2.bf16.msra.mxu1 %v2823_v48  ;;  %1357 = vmatprep.subr.bf16.mxu0 %v2824_v49  ;;  %v2912_v48 = vld [vmem:[#allocation5 + $0x1e8] ss:$16 sps:$4 sm:$0xff]   ;;  %v2915_v49 = vld [vmem:[#allocation5 + $0x5a0] ss:$16 sps:$4 sm:$0xff]  }
  0x68   :  { %1400 = vmatprep.subr.bf16.mxu1 %v2826_v51  ;;  %v2923_v51 = vld [vmem:[#allocation5 + $0x584] ss:$16 sps:$4 sm:$0xff]  }
  0x6a   :  { %1358 = vmatpush2.bf16.msra.mxu0 %v2828_v53  ;;  %v2918_v53 = vld [vmem:[#allocation5 + $0x1c8] ss:$16 sps:$4 sm:$0xff]  }
  0x6b   :  { %1401 = vmatpush2.bf16.msra.mxu1 %v2829_v54  ;;  %1359 = vmatprep.subr.bf16.mxu0 %v2830_v55  ;;  %v2921_v54 = vld [vmem:[#allocation5 + $0x580] ss:$16 sps:$4 sm:$0xff]   ;;  %v2926_v55 = vld [vmem:[#allocation5 + $0x1ac] ss:$16 sps:$4 sm:$0xff]  }
  0x6c   :  { %1402 = vmatprep.subr.bf16.mxu1 %v2832_v56  ;;  %v2929_v56 = vld [vmem:[#allocation5 + $0x564] ss:$16 sps:$4 sm:$0xff]  }
  0x6e   :  { %1360 = vmatpush2.bf16.msra.mxu0 %v2834_v57  ;;  %v2924_v57 = vld [vmem:[#allocation5 + $0x1a8] ss:$16 sps:$4 sm:$0xff]  }
  0x6f   :  { %1403 = vmatpush2.bf16.msra.mxu1 %v2835_v58  ;;  %1361 = vmatprep.subr.bf16.mxu0 %v2836_v59  ;;  %v2927_v58 = vld [vmem:[#allocation5 + $0x560] ss:$16 sps:$4 sm:$0xff]   ;;  %v2932_v59 = vld [vmem:[#allocation5 + $0x18c] ss:$16 sps:$4 sm:$0xff]  }
  0x70   :  { %1404 = vmatprep.subr.bf16.mxu1 %v2838_v60  ;;  %v2935_v60 = vld [vmem:[#allocation5 + $0x544] ss:$16 sps:$4 sm:$0xff]  }
  0x72   :  { %1362 = vmatpush2.bf16.msra.mxu0 %v2840_v61  ;;  %v2930_v61 = vld [vmem:[#allocation5 + $0x188] ss:$16 sps:$4 sm:$0xff]  }
  0x73   :  { %1405 = vmatpush2.bf16.msra.mxu1 %v2841_v62  ;;  %1363 = vmatprep.subr.bf16.mxu0 %v2842_v63  ;;  %v2933_v62 = vld [vmem:[#allocation5 + $0x540] ss:$16 sps:$4 sm:$0xff]   ;;  %v2938_v63 = vld [vmem:[#allocation5 + $0x16c] ss:$16 sps:$4 sm:$0xff]  }
  0x74   :  { %1406 = vmatprep.subr.bf16.mxu1 %v2844_v1  ;;  %v2941_v1 = vld [vmem:[#allocation5 + $0x524] ss:$16 sps:$4 sm:$0xff]  }
  0x76   :  { %1364 = vmatpush2.bf16.msra.mxu0 %v2846_v2  ;;  %v2936_v2 = vld [vmem:[#allocation5 + $0x168] ss:$16 sps:$4 sm:$0xff]  }
  0x77   :  { %1407 = vmatpush2.bf16.msra.mxu1 %v2847_v3  ;;  %1419 = vmatprep.subr.bf16.mxu0 %v2856_v4  ;;  %v2939_v3 = vld [vmem:[#allocation5 + $0x520] ss:$16 sps:$4 sm:$0xff]   ;;  %v2944_v4 = vld [vmem:[#allocation5 + $0x14c] ss:$16 sps:$4 sm:$0xff]  }
  0x78   :  { %1476 = vmatprep.subr.bf16.mxu1 %v2859_v5  ;;  %v2947_v5 = vld [vmem:[#allocation5 + $0x504] ss:$16 sps:$4 sm:$0xff]  }
  0x79   :  { %1366 = vmatmul.mubr.bf16.vlgmr.msra.gmra.mxu0 %v3366_v6 }
  0x7a   :  { %1409 = vmatmul.mubr.bf16.vlgmr.msra.gmra.mxu1 %v3368_v7  ;;  %1420 = vmatpush1.bf16.msra.mxu0 %v2854_v8  ;;  %v2942_v8 = vld [vmem:[#allocation5 + $0x148] ss:$16 sps:$4 sm:$0xff]  }
  0x7b   :  { %1477 = vmatpush1.bf16.msra.mxu1 %v2857_v9  ;;  %1421 = vmatprep.subr.bf16.mxu0 %v2862_v10  ;;  %v2945_v9 = vld [vmem:[#allocation5 + $0x500] ss:$16 sps:$4 sm:$0xff]   ;;  %v2953_v10 = vld [vmem:[#allocation5 + $0x12c] ss:$16 sps:$4 sm:$0xff]  }
  0x7c   :  { %1494 = vmatprep.mubr.bf16.mxu1 %v3296_v0  ;;  %1505 = vmatprep.subr.bf16.mxu1 %v2865_v11  ;;  %v2956_v11 = vld [vmem:[#allocation5 + $0x2ec] ss:$16 sps:$4 sm:$0xff]  }
  0x7d   :  { %1451 = vmatprep.mubr.bf16.mxu0 %v3378_v34 }
  0x7e   :  { %1422 = vmatpush1.bf16.msra.mxu0 %v2860_v12  ;;  %v3381_v12 = vld [vmem:[#allocation2 + $0x10] ss:$28 sps:$4 sm:$0xff]  }
  0x7f   :  { %1423 = vmatprep.subr.bf16.mxu0 %v2868_v13  ;;  %v2951_v13 = vld [vmem:[#allocation5 + $0x128] ss:$16 sps:$4 sm:$0xff]  }
  0x82   :  { %2629 = vmatmul.mubr.msk.bf16.vlgmr.msra.gmra.mxu1 %vm1329_vm0, %v3373_v15  ;;  %1424 = vmatpush1.bf16.msra.mxu0 %v2866_v16  ;;  %v2959_v16 = vld [vmem:[#allocation5 + $0x10c] ss:$16 sps:$4 sm:$0xff]  }
  0x83   :  { %1506 = vmatpush1.bf16.msra.mxu1 %v2863_v14  ;;  %1425 = vmatprep.subr.bf16.mxu0 %v2875_v18  ;;  %v2954_v14 = vld [vmem:[#allocation5 + $0x2e8] ss:$16 sps:$4 sm:$0xff]  }
  0x84   :  { %1507 = vmatprep.subr.bf16.mxu1 %v2872_v17  ;;  %1537 = vmatprep.mubr.bf16.mxu1 %v3360_v50  ;;  %v2920_v50 = vld [vmem:[#allocation5 + $0x1cc] ss:$16 sps:$4 sm:$0xff]   ;;  %v2957_v18 = vld [vmem:[#allocation5 + $0x108] ss:$16 sps:$4 sm:$0xff]  }
  0x85   :  { %v2962_v17 = vld [vmem:[#allocation5 + $0x2cc] ss:$16 sps:$4 sm:$0xff]  }
  0x86   :  { %1426 = vmatpush1.bf16.msra.mxu0 %v2873_v20  ;;  %v2965_v20 = vld [vmem:[#allocation5 + $0x4ec] ss:$16 sps:$4 sm:$0xff]  }
  0x87   :  { %1508 = vmatpush1.bf16.msra.mxu1 %v2870_v19  ;;  %1427 = vmatprep.subr.bf16.mxu0 %v2881_v22  ;;  %v2960_v19 = vld [vmem:[#allocation5 + $0x2c8] ss:$16 sps:$4 sm:$0xff]  }
  0x88   :  { %1509 = vmatprep.subr.bf16.mxu1 %v2878_v21  ;;  %v2968_v21 = vld [vmem:[#allocation5 + $0x2ac] ss:$16 sps:$4 sm:$0xff]   ;;  %v2963_v22 = vld [vmem:[#allocation5 + $0x4e8] ss:$16 sps:$4 sm:$0xff]  }
  0x8a   :  { %1428 = vmatpush1.bf16.msra.mxu0 %v2879_v24  ;;  %v3388_v24 = vld [vmem:[%s3442_s1] sm:$0xff] }
  0x8b   :  { %1510 = vmatpush1.bf16.msra.mxu1 %v2876_v23  ;;  %1429 = vmatprep.subr.bf16.mxu0 %v2887_v26  ;;  %v2966_v23 = vld [vmem:[#allocation5 + $0x2a8] ss:$16 sps:$4 sm:$0xff]   ;;  %v2974_v26 = vld [vmem:[#allocation5 + $0x28c] ss:$16 sps:$4 sm:$0xff]  }
  0x8c   :  { %1511 = vmatprep.subr.bf16.mxu1 %v2884_v25  ;;  %v2971_v25 = vld [vmem:[#allocation5 + $0x4cc] ss:$16 sps:$4 sm:$0xff]   ;;  %1687 = vperm.xlu0 %2749, %v3388_v24  }
  0x8e   :  { %1430 = vmatpush1.bf16.msra.mxu0 %v2885_v28  ;;  %v2969_v28 = vld [vmem:[#allocation5 + $0x4c8] ss:$16 sps:$4 sm:$0xff]  }
  0x8f   :  { %1512 = vmatpush1.bf16.msra.mxu1 %v2882_v27  ;;  %1431 = vmatprep.subr.bf16.mxu0 %v2893_v30  ;;  %v3393_v27 = vld [vmem:[%s3442_s1 + $0x8] sm:$0xff]  ;;  %v2980_v30 = vld [vmem:[#allocation5 + $0x26c] ss:$16 sps:$4 sm:$0xff]  }
  0x90   :  { %1513 = vmatprep.subr.bf16.mxu1 %v2890_v29  ;;  %v2977_v29 = vld [vmem:[#allocation5 + $0x4ac] ss:$16 sps:$4 sm:$0xff]   ;;  %1692 = vperm.xlu0 %2749, %v3393_v27  }
  0x92   :  { %1432 = vmatpush1.bf16.msra.mxu0 %v2891_v32  ;;  %v2978_v32 = vld [vmem:[#allocation5 + $0x268] ss:$16 sps:$4 sm:$0xff]  }
  0x93   :  { %1514 = vmatpush1.bf16.msra.mxu1 %v2888_v31  ;;  %1433 = vmatprep.subr.bf16.mxu0 %v2899_v35  ;;  %v2975_v31 = vld [vmem:[#allocation5 + $0x4a8] ss:$16 sps:$4 sm:$0xff]   ;;  %v2986_v35 = vld [vmem:[#allocation5 + $0x24c] ss:$16 sps:$4 sm:$0xff]  }
  0x94   :  { %1515 = vmatprep.subr.bf16.mxu1 %v2896_v33  ;;  %v2983_v33 = vld [vmem:[#allocation5 + $0x48c] ss:$16 sps:$4 sm:$0xff]  }
  0x96   :  { %1434 = vmatpush1.bf16.msra.mxu0 %v2897_v37  ;;  %v2989_v37 = vld [vmem:[#allocation5 + $0x46c] ss:$16 sps:$4 sm:$0xff]  }
  0x97   :  { %1516 = vmatpush1.bf16.msra.mxu1 %v2894_v36  ;;  %1435 = vmatprep.subr.bf16.mxu0 %v2905_v39  ;;  %v2984_v36 = vld [vmem:[#allocation5 + $0x248] ss:$16 sps:$4 sm:$0xff]  }
  0x98   :  { %1517 = vmatprep.subr.bf16.mxu1 %v2902_v38  ;;  %v2992_v38 = vld [vmem:[#allocation5 + $0x22c] ss:$16 sps:$4 sm:$0xff]   ;;  %v2987_v39 = vld [vmem:[#allocation5 + $0x468] ss:$16 sps:$4 sm:$0xff]  }
  0x9a   :  { %1436 = vmatpush2.bf16.msra.mxu0 %v2903_v41  ;;  %v2998_v41 = vld [vmem:[#allocation5 + $0x20c] ss:$16 sps:$4 sm:$0xff]  }
  0x9b   :  { %1518 = vmatpush1.bf16.msra.mxu1 %v2900_v40  ;;  %1437 = vmatprep.subr.bf16.mxu0 %v2911_v43  ;;  %v2995_v40 = vld [vmem:[#allocation5 + $0x44c] ss:$16 sps:$4 sm:$0xff]   ;;  %v2996_v43 = vld [vmem:[#allocation5 + $0x208] ss:$16 sps:$4 sm:$0xff]  }
  0x9c   :  { %1519 = vmatprep.subr.bf16.mxu1 %v2908_v42  ;;  %v2993_v42 = vld [vmem:[#allocation5 + $0x448] ss:$16 sps:$4 sm:$0xff]  }
  0x9e   :  { %1438 = vmatpush2.bf16.msra.mxu0 %v2909_v45  ;;  %v3004_v45 = vld [vmem:[#allocation5 + $0x3ec] ss:$16 sps:$4 sm:$0xff]  }
  0x9f   :  { %1520 = vmatpush1.bf16.msra.mxu1 %v2906_v44  ;;  %1439 = vmatprep.subr.bf16.mxu0 %v2917_v47  ;;  %v3001_v44 = vld [vmem:[#allocation5 + $0x42c] ss:$16 sps:$4 sm:$0xff]   ;;  %v3002_v47 = vld [vmem:[#allocation5 + $0x3e8] ss:$16 sps:$4 sm:$0xff]  }
  0xa0   :  { %1521 = vmatprep.subr.bf16.mxu1 %v2914_v46  ;;  %v2999_v46 = vld [vmem:[#allocation5 + $0x428] ss:$16 sps:$4 sm:$0xff]  }
  0xa2   :  { %1440 = vmatpush2.bf16.msra.mxu0 %v2915_v49  ;;  %v3010_v49 = vld [vmem:[#allocation5 + $0x3cc] ss:$16 sps:$4 sm:$0xff]  }
  0xa3   :  { %1522 = vmatpush2.bf16.msra.mxu1 %v2912_v48  ;;  %1441 = vmatprep.subr.bf16.mxu0 %v2923_v51  ;;  %v3007_v48 = vld [vmem:[#allocation5 + $0x40c] ss:$16 sps:$4 sm:$0xff]   ;;  %v3008_v51 = vld [vmem:[#allocation5 + $0x3c8] ss:$16 sps:$4 sm:$0xff]  }
  0xa4   :  { %1523 = vmatprep.subr.bf16.mxu1 %v2920_v50  ;;  %v3005_v50 = vld [vmem:[#allocation5 + $0x408] ss:$16 sps:$4 sm:$0xff]  }
  0xa6   :  { %1442 = vmatpush2.bf16.msra.mxu0 %v2921_v54  ;;  %v3016_v54 = vld [vmem:[#allocation5 + $0x3ac] ss:$16 sps:$4 sm:$0xff]  }
  0xa7   :  { %1524 = vmatpush2.bf16.msra.mxu1 %v2918_v53  ;;  %1443 = vmatprep.subr.bf16.mxu0 %v2929_v56  ;;  %v3013_v53 = vld [vmem:[#allocation5 + $0x5ec] ss:$16 sps:$4 sm:$0xff]   ;;  %v3014_v56 = vld [vmem:[#allocation5 + $0x3a8] ss:$16 sps:$4 sm:$0xff]  }
  0xa8   :  { %1525 = vmatprep.subr.bf16.mxu1 %v2926_v55  ;;  %v3011_v55 = vld [vmem:[#allocation5 + $0x5e8] ss:$16 sps:$4 sm:$0xff]  }
  0xaa   :  { %1444 = vmatpush2.bf16.msra.mxu0 %v2927_v58  ;;  %v3022_v58 = vld [vmem:[#allocation5 + $0x38c] ss:$16 sps:$4 sm:$0xff]  }
  0xab   :  { %1526 = vmatpush2.bf16.msra.mxu1 %v2924_v57  ;;  %1445 = vmatprep.subr.bf16.mxu0 %v2935_v60  ;;  %v3019_v57 = vld [vmem:[#allocation5 + $0x5cc] ss:$16 sps:$4 sm:$0xff]   ;;  %v3020_v60 = vld [vmem:[#allocation5 + $0x388] ss:$16 sps:$4 sm:$0xff]  }
  0xac   :  { %1527 = vmatprep.subr.bf16.mxu1 %v2932_v59  ;;  %v3017_v59 = vld [vmem:[#allocation5 + $0x5c8] ss:$16 sps:$4 sm:$0xff]  }
  0xae   :  { %1446 = vmatpush2.bf16.msra.mxu0 %v2933_v62  ;;  %v3028_v62 = vld [vmem:[#allocation5 + $0x36c] ss:$16 sps:$4 sm:$0xff]  }
  0xaf   :  { %1528 = vmatpush2.bf16.msra.mxu1 %v2930_v61  ;;  %1447 = vmatprep.subr.bf16.mxu0 %v2941_v1  ;;  %v3025_v61 = vld [vmem:[#allocation5 + $0x5ac] ss:$16 sps:$4 sm:$0xff]   ;;  %v3026_v1 = vld [vmem:[#allocation5 + $0x368] ss:$16 sps:$4 sm:$0xff]  }
  0xb0   :  { %1529 = vmatprep.subr.bf16.mxu1 %v2938_v63  ;;  %v3023_v63 = vld [vmem:[#allocation5 + $0x5a8] ss:$16 sps:$4 sm:$0xff]  }
  0xb2   :  { %1448 = vmatpush2.bf16.msra.mxu0 %v2939_v3  ;;  %v3034_v3 = vld [vmem:[#allocation5 + $0x34c] ss:$16 sps:$4 sm:$0xff]  }
  0xb3   :  { %1530 = vmatpush2.bf16.msra.mxu1 %v2936_v2  ;;  %1449 = vmatprep.subr.bf16.mxu0 %v2947_v5  ;;  %v3031_v2 = vld [vmem:[#allocation5 + $0x58c] ss:$16 sps:$4 sm:$0xff]   ;;  %v3032_v5 = vld [vmem:[#allocation5 + $0x348] ss:$16 sps:$4 sm:$0xff]  }
  0xb4   :  { %1531 = vmatprep.subr.bf16.mxu1 %v2944_v4  ;;  %v3029_v4 = vld [vmem:[#allocation5 + $0x588] ss:$16 sps:$4 sm:$0xff]  }
  0xb6   :  { %1450 = vmatpush2.bf16.msra.mxu0 %v2945_v9  ;;  %v3040_v9 = vld [vmem:[#allocation5 + $0x32c] ss:$16 sps:$4 sm:$0xff]  }
  0xb7   :  { %1532 = vmatpush2.bf16.msra.mxu1 %v2942_v8  ;;  %1548 = vmatprep.subr.bf16.mxu0 %v2956_v11  ;;  %v3037_v8 = vld [vmem:[#allocation5 + $0x56c] ss:$16 sps:$4 sm:$0xff]   ;;  %v3038_v11 = vld [vmem:[#allocation5 + $0x328] ss:$16 sps:$4 sm:$0xff]  }
  0xb8   :  { %1533 = vmatprep.subr.bf16.mxu1 %v2953_v10  ;;  %v3035_v10 = vld [vmem:[#allocation5 + $0x568] ss:$16 sps:$4 sm:$0xff]  }
  0xb9   :  { %1452 = vmatmul.mubr.bf16.vlgmr.msra.gmra.mxu0 %v3381_v12 }
  0xba   :  { %1549 = vmatpush1.bf16.msra.mxu0 %v2954_v14  ;;  %1580 = vmatprep.mubr.bf16.mxu0 %v3362_v52  ;;  %v2972_v52 = vld [vmem:[#allocation5 + $0x288] ss:$16 sps:$4 sm:$0xff]   ;;  %v3046_v14 = vld [vmem:[#allocation5 + $0x30c] ss:$16 sps:$4 sm:$0xff]  }
  0xbb   :  { %1534 = vmatpush2.bf16.msra.mxu1 %v2951_v13  ;;  %1550 = vmatprep.subr.bf16.mxu0 %v2962_v17  ;;  %v3043_v13 = vld [vmem:[#allocation5 + $0x54c] ss:$16 sps:$4 sm:$0xff]   ;;  %v3044_v17 = vld [vmem:[#allocation5 + $0x308] ss:$16 sps:$4 sm:$0xff]  }
  0xbc   :  { %1535 = vmatprep.subr.bf16.mxu1 %v2959_v16  ;;  %v3041_v16 = vld [vmem:[#allocation5 + $0x548] ss:$16 sps:$4 sm:$0xff]  }
  0xbe   :  { %1551 = vmatpush1.bf16.msra.mxu0 %v2960_v19  ;;  %v3058_v19 = vld [vmem:[#allocation7 + $0x74] ss:$8 sps:$4 sm:$0xff]  }
  0xbf   :  { %1536 = vmatpush2.bf16.msra.mxu1 %v2957_v18  ;;  %1552 = vmatprep.subr.bf16.mxu0 %v2968_v21  ;;  %v3049_v18 = vld [vmem:[#allocation5 + $0x52c] ss:$16 sps:$4 sm:$0xff]   ;;  %v3056_v21 = vld [vmem:[#allocation7 + $0x70] ss:$8 sps:$4 sm:$0xff]  }
  0xc0   :  { %1591 = vmatprep.subr.bf16.mxu1 %v2965_v20  ;;  %v3047_v20 = vld [vmem:[#allocation5 + $0x528] ss:$16 sps:$4 sm:$0xff]  }
  0xc2   :  { %1538 = vmatmul.mubr.bf16.vlgmr.msra.gmra.mxu1 %v3366_v6  ;;  %1553 = vmatpush1.bf16.msra.mxu0 %v2966_v23  ;;  %v2981_v6 = vld [vmem:[#allocation5 + $0x488] ss:$16 sps:$4 sm:$0xff]   ;;  %v3061_v23 = vld [vmem:[#allocation7 + $0x64] ss:$8 sps:$4 sm:$0xff]  }
  0xc3   :  { %1592 = vmatpush1.bf16.msra.mxu1 %v2963_v22  ;;  %1554 = vmatprep.subr.bf16.mxu0 %v2974_v26  ;;  %v3052_v22 = vld [vmem:[#allocation5 + $0x50c] ss:$16 sps:$4 sm:$0xff]   ;;  %v3059_v26 = vld [vmem:[#allocation7 + $0x60] ss:$8 sps:$4 sm:$0xff]  }
  0xc4   :  { %1593 = vmatprep.subr.bf16.mxu1 %v2971_v25  ;;  %1623 = vmatprep.mubr.bf16.mxu1 %v3378_v34  ;;  %v2990_v34 = vld [vmem:[#allocation5 + $0x228] ss:$16 sps:$4 sm:$0xff]  }
  0xc5   :  { %v3050_v25 = vld [vmem:[#allocation5 + $0x508] ss:$16 sps:$4 sm:$0xff]  }
  0xc6   :  { %1555 = vmatpush1.bf16.msra.mxu0 %v2972_v52  ;;  %v3064_v52 = vld [vmem:[#allocation7 + $0x54] ss:$8 sps:$4 sm:$0xff]  }
  0xc7   :  { %1594 = vmatpush1.bf16.msra.mxu1 %v2969_v28  ;;  %1556 = vmatprep.subr.bf16.mxu0 %v2980_v30  ;;  %v3055_v28 = vld [vmem:[#allocation5 + $0x60c] ss:$16 sps:$4 sm:$0xff]   ;;  %v3062_v30 = vld [vmem:[#allocation7 + $0x50] ss:$8 sps:$4 sm:$0xff]  }
  0xc8   :  { %1595 = vmatprep.subr.bf16.mxu1 %v2977_v29  ;;  %v3053_v29 = vld [vmem:[#allocation5 + $0x608] ss:$16 sps:$4 sm:$0xff]  }
  0xca   :  { %1557 = vmatpush1.bf16.msra.mxu0 %v2978_v32  ;;  %v3070_v32 = vld [vmem:[#allocation7 + $0x34] ss:$8 sps:$4 sm:$0xff]  }
  0xcb   :  { %1596 = vmatpush1.bf16.msra.mxu1 %v2975_v31  ;;  %1558 = vmatprep.subr.bf16.mxu0 %v2986_v35  ;;  %v3067_v31 = vld [vmem:[#allocation7 + $0x44] ss:$8 sps:$4 sm:$0xff]  }
  0xcc   :  { %1597 = vmatprep.subr.bf16.mxu1 %v2983_v33  ;;  %v3068_v33 = vld [vmem:[#allocation7 + $0x30] ss:$8 sps:$4 sm:$0xff]   ;;  %v3073_v35 = vld [vmem:[#allocation7 + $0x24] ss:$8 sps:$4 sm:$0xff]  }
  0xce   :  { %1559 = vmatpush1.bf16.msra.mxu0 %v2984_v36  ;;  %v3104_v36 = vld [vmem:[#allocation7 + $0x170] ss:$8 sps:$4 sm:$0xff]  }
  0xcf   :  { %1598 = vmatpush1.bf16.msra.mxu1 %v2981_v6  ;;  %1560 = vmatprep.subr.bf16.mxu0 %v2992_v38  ;;  %v3071_v6 = vld [vmem:[#allocation7 + $0x20] ss:$8 sps:$4 sm:$0xff]   ;;  %v3109_v38 = vld [vmem:[#allocation7 + $0x164] ss:$8 sps:$4 sm:$0xff]  }
  0xd0   :  { %1599 = vmatprep.subr.bf16.mxu1 %v2989_v37  ;;  %v3106_v37 = vld [vmem:[#allocation7 + $0x174] ss:$8 sps:$4 sm:$0xff]  }
  0xd2   :  { %1561 = vmatpush1.bf16.msra.mxu0 %v2990_v34  ;;  %v3112_v34 = vld [vmem:[#allocation7 + $0x154] ss:$8 sps:$4 sm:$0xff]  }
  0xd3   :  { %1600 = vmatpush1.bf16.msra.mxu1 %v2987_v39  ;;  %1562 = vmatprep.subr.bf16.mxu0 %v2998_v41  ;;  %v3074_v39 = vld [vmem:[#allocation7 + $0x10] ss:$8 sps:$4 sm:$0xff]  }
  0xd4   :  { %1601 = vmatprep.subr.bf16.mxu1 %v2995_v40  ;;  %v3079_v40 = vld [vmem:[#allocation7 + $0x4] ss:$8 sps:$4 sm:$0xff]   ;;  %v3110_v41 = vld [vmem:[#allocation7 + $0x150] ss:$8 sps:$4 sm:$0xff]  }
  0xd6   :  { %1563 = vmatpush1.bf16.msra.mxu0 %v2996_v43  ;;  %v3082_v43 = vld [vmem:[#allocation7 + $0xf4] ss:$8 sps:$4 sm:$0xff]  }
  0xd7   :  { %1602 = vmatpush1.bf16.msra.mxu1 %v2993_v42  ;;  %1564 = vmatprep.subr.bf16.mxu0 %v3004_v45  ;;  %v3115_v42 = vld [vmem:[#allocation7 + $0x144] ss:$8 sps:$4 sm:$0xff]   ;;  %v3080_v45 = vld [vmem:[#allocation7 + $0xf0] ss:$8 sps:$4 sm:$0xff]  }
  0xd8   :  { %1603 = vmatprep.subr.bf16.mxu1 %v3001_v44  ;;  %v3113_v44 = vld [vmem:[#allocation7 + $0x140] ss:$8 sps:$4 sm:$0xff]  }
  0xda   :  { %1565 = vmatpush2.bf16.msra.mxu0 %v3002_v47  ;;  %v3085_v47 = vld [vmem:[#allocation7 + $0xe4] ss:$8 sps:$4 sm:$0xff]  }
  0xdb   :  { %1604 = vmatpush1.bf16.msra.mxu1 %v2999_v46  ;;  %1566 = vmatprep.subr.bf16.mxu0 %v3010_v49  ;;  %v3118_v46 = vld [vmem:[#allocation7 + $0x134] ss:$8 sps:$4 sm:$0xff]   ;;  %v3083_v49 = vld [vmem:[#allocation7 + $0xe0] ss:$8 sps:$4 sm:$0xff]  }
  0xdc   :  { %1605 = vmatprep.subr.bf16.mxu1 %v3007_v48  ;;  %v3116_v48 = vld [vmem:[#allocation7 + $0x130] ss:$8 sps:$4 sm:$0xff]  }
  0xde   :  { %1567 = vmatpush2.bf16.msra.mxu0 %v3008_v51  ;;  %v3088_v51 = vld [vmem:[#allocation7 + $0xd4] ss:$8 sps:$4 sm:$0xff]  }
  0xdf   :  { %1606 = vmatpush1.bf16.msra.mxu1 %v3005_v50  ;;  %1568 = vmatprep.subr.bf16.mxu0 %v3016_v54  ;;  %v3121_v50 = vld [vmem:[#allocation7 + $0x124] ss:$8 sps:$4 sm:$0xff]   ;;  %v3086_v54 = vld [vmem:[#allocation7 + $0xd0] ss:$8 sps:$4 sm:$0xff]  }
  0xe0   :  { %1607 = vmatprep.subr.bf16.mxu1 %v3013_v53  ;;  %v3119_v53 = vld [vmem:[#allocation7 + $0x120] ss:$8 sps:$4 sm:$0xff]  }
  0xe2   :  { %1569 = vmatpush2.bf16.msra.mxu0 %v3014_v56  ;;  %v3091_v56 = vld [vmem:[#allocation7 + $0xc4] ss:$8 sps:$4 sm:$0xff]  }
  0xe3   :  { %1608 = vmatpush2.bf16.msra.mxu1 %v3011_v55  ;;  %1570 = vmatprep.subr.bf16.mxu0 %v3022_v58  ;;  %v3124_v55 = vld [vmem:[#allocation7 + $0x114] ss:$8 sps:$4 sm:$0xff]   ;;  %v3089_v58 = vld [vmem:[#allocation7 + $0xc0] ss:$8 sps:$4 sm:$0xff]  }
  0xe4   :  { %1609 = vmatprep.subr.bf16.mxu1 %v3019_v57  ;;  %v3122_v57 = vld [vmem:[#allocation7 + $0x110] ss:$8 sps:$4 sm:$0xff]  }
  0xe6   :  { %1571 = vmatpush2.bf16.msra.mxu0 %v3020_v60  ;;  %v3094_v60 = vld [vmem:[#allocation7 + $0xb4] ss:$8 sps:$4 sm:$0xff]  }
  0xe7   :  { %1610 = vmatpush2.bf16.msra.mxu1 %v3017_v59  ;;  %1572 = vmatprep.subr.bf16.mxu0 %v3028_v62  ;;  %v3127_v59 = vld [vmem:[#allocation7 + $0x104] ss:$8 sps:$4 sm:$0xff]   ;;  %v3092_v62 = vld [vmem:[#allocation7 + $0xb0] ss:$8 sps:$4 sm:$0xff]  }
  0xe8   :  { %1611 = vmatprep.subr.bf16.mxu1 %v3025_v61  ;;  %v3125_v61 = vld [vmem:[#allocation7 + $0x100] ss:$8 sps:$4 sm:$0xff]  }
  0xea   :  { %1573 = vmatpush2.bf16.msra.mxu0 %v3026_v1  ;;  %v3097_v1 = vld [vmem:[#allocation7 + $0xa4] ss:$8 sps:$4 sm:$0xff]  }
  0xeb   :  { %1612 = vmatpush2.bf16.msra.mxu1 %v3023_v63  ;;  %1574 = vmatprep.subr.bf16.mxu0 %v3034_v3  ;;  %v3130_v63 = vld [vmem:[#allocation7 + $0x1f4] ss:$8 sps:$4 sm:$0xff]   ;;  %v3095_v3 = vld [vmem:[#allocation7 + $0xa0] ss:$8 sps:$4 sm:$0xff]  }
  0xec   :  { %1613 = vmatprep.subr.bf16.mxu1 %v3031_v2  ;;  %v3128_v2 = vld [vmem:[#allocation7 + $0x1f0] ss:$8 sps:$4 sm:$0xff]  }
  0xee   :  { %1575 = vmatpush2.bf16.msra.mxu0 %v3032_v5  ;;  %v3098_v5 = vld [vmem:[#allocation7 + $0x90] ss:$8 sps:$4 sm:$0xff]  }
  0xef   :  { %1614 = vmatpush2.bf16.msra.mxu1 %v3029_v4  ;;  %1576 = vmatprep.subr.bf16.mxu0 %v3040_v9  ;;  %v3100_v4 = vld [vmem:[#allocation7 + $0x94] ss:$8 sps:$4 sm:$0xff]   ;;  %v3101_v9 = vld [vmem:[#allocation7 + $0x80] ss:$8 sps:$4 sm:$0xff]  }
  0xf0   :  { %1615 = vmatprep.subr.bf16.mxu1 %v3037_v8  ;;  %v3103_v8 = vld [vmem:[#allocation7 + $0x84] ss:$8 sps:$4 sm:$0xff]  }
  0xf2   :  { %1577 = vmatpush2.bf16.msra.mxu0 %v3038_v11  ;;  %v3131_v11 = vld [vmem:[#allocation7 + $0x1e0] ss:$8 sps:$4 sm:$0xff]  }
  0xf3   :  { %1616 = vmatpush2.bf16.msra.mxu1 %v3035_v10  ;;  %1578 = vmatprep.subr.bf16.mxu0 %v3046_v14  ;;  %v3133_v10 = vld [vmem:[#allocation7 + $0x1e4] ss:$8 sps:$4 sm:$0xff]   ;;  %v3134_v14 = vld [vmem:[#allocation7 + $0x1d0] ss:$8 sps:$4 sm:$0xff]  }
  0xf4   :  { %1617 = vmatprep.subr.bf16.mxu1 %v3043_v13  ;;  %v3136_v13 = vld [vmem:[#allocation7 + $0x1d4] ss:$8 sps:$4 sm:$0xff]  }
  0xf6   :  { %1579 = vmatpush2.bf16.msra.mxu0 %v3044_v17  ;;  %v3137_v17 = vld [vmem:[#allocation7 + $0x1c0] ss:$8 sps:$4 sm:$0xff]  }
  0xf7   :  { %1618 = vmatpush2.bf16.msra.mxu1 %v3041_v16  ;;  %2103 = vmatprep.subr.bf16.mxu0 %v3058_v19  ;;  %v3139_v16 = vld [vmem:[#allocation7 + $0x1c4] ss:$8 sps:$4 sm:$0xff]   ;;  %v3140_v19 = vld [vmem:[#allocation7 + $0x1b0] ss:$8 sps:$4 sm:$0xff]  }
  0xf8   :  { %1619 = vmatprep.subr.bf16.mxu1 %v3049_v18  ;;  %v3142_v18 = vld [vmem:[#allocation7 + $0x1b4] ss:$8 sps:$4 sm:$0xff]  }
  0xf9   :  { %1581 = vmatmul.mubr.bf16.vlgmr.msra.gmra.mxu0 %v3368_v7  ;;  %v3065_v7 = vld [vmem:[#allocation7 + $0x40] ss:$8 sps:$4 sm:$0xff]  }
  0xfa   :  { %2104 = vmatpush1.bf16.msra.mxu0 %v3056_v21  ;;  %v3143_v21 = vld [vmem:[#allocation7 + $0x1a0] ss:$8 sps:$4 sm:$0xff]  }
  0xfb   :  { %1620 = vmatpush2.bf16.msra.mxu1 %v3047_v20  ;;  %2105 = vmatprep.subr.bf16.mxu0 %v3061_v23  ;;  %v3145_v20 = vld [vmem:[#allocation7 + $0x1a4] ss:$8 sps:$4 sm:$0xff]   ;;  %v3146_v23 = vld [vmem:[#allocation7 + $0x190] ss:$8 sps:$4 sm:$0xff]  }
  0xfc   :  { %1621 = vmatprep.subr.bf16.mxu1 %v3052_v22  ;;  %v3148_v22 = vld [vmem:[#allocation7 + $0x194] ss:$8 sps:$4 sm:$0xff]  }
  0xfe   :  { %2106 = vmatpush1.bf16.msra.mxu0 %v3059_v26  ;;  %v3149_v26 = vld [vmem:[#allocation7 + $0x180] ss:$8 sps:$4 sm:$0xff]  }
  0xff   :  { %1622 = vmatpush2.bf16.msra.mxu1 %v3050_v25  ;;  %2107 = vmatprep.subr.bf16.mxu0 %v3064_v52  ;;  %v3151_v25 = vld [vmem:[#allocation7 + $0x184] ss:$8 sps:$4 sm:$0xff]   ;;  %v294_v52 = vlaneseq }
 0x100   :  { %1648 = vmatprep.subr.bf16.mxu1 %v3055_v28  ;;  %v3297_v28 = vmov 1  }
 0x101   :  { %2750 = vset.pattern.permute.xlu1 %v3297_v28  ;;  %2751 = vset.pattern.permute.xlu0 %v3297_v28 }
 0x102   :  { %1624 = vmatmul.mubr.bf16.vlgmr.msra.gmra.mxu1 %v3381_v12  ;;  %2108 = vmatpush1.bf16.msra.mxu0 %v3062_v30  ;;  %v3076_v12 = vld [vmem:[#allocation7 + $0x14] ss:$8 sps:$4 sm:$0xff]   ;;  %v3406_v30 = vshrl.u32 %v294_v52, 7 }
 0x103   :  { %1649 = vmatpush1.bf16.msra.mxu1 %v3053_v29  ;;  %1666 = vmatprep.mubr.bf16.mxu1 %v3296_v0  ;;  %v3107_v0 = vld [vmem:[#allocation7 + $0x160] ss:$8 sps:$4 sm:$0xff]  }
 0x104   :  { %2109 = vmatprep.subr.bf16.mxu0 %v3067_v31  ;;  %2146 = vmatprep.subr.bf16.mxu1 %v3106_v37 }
 0x105   :  { %2194 = vperm.xlu1 %2750, %v3388_v24  }
 0x106   :  { %2110 = vmatpush1.bf16.msra.mxu0 %v3065_v7 }
 0x107   :  { %2111 = vmatprep.subr.bf16.mxu0 %v3070_v32  ;;  %v296_v32 = vsub.s32 0, %v3406_v30 }
 0x109   :  { %2198 = vperm.xlu1 %2750, %v3393_v27  }
 0x10a   :  { %2630 = vmatmul.mubr.msk.bf16.vlgmr.msra.gmra.mxu1 %vm1329_vm0, %v3373_v15  ;;  %2112 = vmatpush1.bf16.msra.mxu0 %v3068_v33  ;;  %v3077_v15 = vld [vmem:[#allocation7] ss:$8 sps:$4 sm:$0xff]  }
 0x10b   :  { %2113 = vmatprep.subr.bf16.mxu0 %v3073_v35  ;;  %2147 = vmatpush1.bf16.msra.mxu1 %v3104_v36  ;;  %v292_v35 = vld [vmem:[%s3444_s3] sm:$0xf] }
 0x10c   :  { %2148 = vmatprep.subr.bf16.mxu1 %v3109_v38  ;;  %v297_v24 = vrot.slane %v292_v35, %v296_v32 }
 0x10e   :  { %2114 = vmatpush1.bf16.msra.mxu0 %v3071_v6  ;;  %v300_v6 = vsub.s32 1, %v3406_v30 }
 0x10f   :  { %2115 = vmatprep.subr.bf16.mxu0 %v3076_v12  ;;  %2149 = vmatpush1.bf16.msra.mxu1 %v3107_v0 }
 0x110   :  { %2150 = vmatprep.subr.bf16.mxu1 %v3112_v34  ;;  %v301_v37 = vrot.slane %v292_v35, %v300_v6 }
 0x112   :  { %2116 = vmatpush1.bf16.msra.mxu0 %v3074_v39 }
 0x113   :  { %2117 = vmatprep.subr.bf16.mxu0 %v3079_v40  ;;  %2151 = vmatpush1.bf16.msra.mxu1 %v3110_v41 }
 0x114   :  { %2152 = vmatprep.subr.bf16.mxu1 %v3115_v42 }
 0x116   :  { %2118 = vmatpush1.bf16.msra.mxu0 %v3077_v15 }
 0x117   :  { %2119 = vmatprep.subr.bf16.mxu0 %v3082_v43  ;;  %2153 = vmatpush1.bf16.msra.mxu1 %v3113_v44 }
 0x118   :  { %2154 = vmatprep.subr.bf16.mxu1 %v3118_v46 }
 0x11a   :  { %2120 = vmatpush2.bf16.msra.mxu0 %v3080_v45 }
 0x11b   :  { %2121 = vmatprep.subr.bf16.mxu0 %v3085_v47  ;;  %2155 = vmatpush1.bf16.msra.mxu1 %v3116_v48 }
 0x11c   :  { %2156 = vmatprep.subr.bf16.mxu1 %v3121_v50 }
 0x11e   :  { %2122 = vmatpush2.bf16.msra.mxu0 %v3083_v49  ;;  %v3417_v49 = vpop.permute.xlu0 %1687 }
 0x11f   :  { %2123 = vmatprep.subr.bf16.mxu0 %v3088_v51  ;;  %2157 = vmatpush1.bf16.msra.mxu1 %v3119_v53 }
 0x120   :  { %2158 = vmatprep.subr.bf16.mxu1 %v3124_v55 }
 0x122   :  { %2124 = vmatpush2.bf16.msra.mxu0 %v3086_v54 }
 0x123   :  { %2125 = vmatprep.subr.bf16.mxu0 %v3091_v56  ;;  %2159 = vmatpush1.bf16.msra.mxu1 %v3122_v57 }
 0x124   :  { %2160 = vmatprep.subr.bf16.mxu1 %v3127_v59 }
 0x126   :  { %2126 = vmatpush2.bf16.msra.mxu0 %v3089_v58 }
 0x127   :  { %2127 = vmatprep.subr.bf16.mxu0 %v3094_v60  ;;  %2161 = vmatpush1.bf16.msra.mxu1 %v3125_v61 }
 0x128   :  { %2162 = vmatprep.subr.bf16.mxu1 %v3130_v63 }
 0x12a   :  { %2128 = vmatpush2.bf16.msra.mxu0 %v3092_v62 }
 0x12b   :  { %2129 = vmatprep.subr.bf16.mxu0 %v3097_v1  ;;  %2163 = vmatpush2.bf16.msra.mxu1 %v3128_v2  ;;  %v1693_v1 = vpop.permute.xlu0 %1692 }
 0x12c   :  { %2164 = vmatprep.subr.bf16.mxu1 %v3133_v10 }
 0x12e   :  { %2130 = vmatpush2.bf16.msra.mxu0 %v3095_v3 }
 0x12f   :  { %2131 = vmatprep.subr.bf16.mxu0 %v3100_v4  ;;  %2165 = vmatpush2.bf16.msra.mxu1 %v3131_v11 }
 0x130   :  { %2166 = vmatprep.subr.bf16.mxu1 %v3136_v13 }
 0x132   :  { %2132 = vmatpush2.bf16.msra.mxu0 %v3098_v5 }
 0x133   :  { %2133 = vmatprep.subr.bf16.mxu0 %v3103_v8  ;;  %2167 = vmatpush2.bf16.msra.mxu1 %v3134_v14 }
 0x134   :  { %2168 = vmatprep.subr.bf16.mxu1 %v3139_v16 }
 0x136   :  { %2134 = vmatpush2.bf16.msra.mxu0 %v3101_v9 }
 0x137   :  { %2169 = vmatpush2.bf16.msra.mxu1 %v3137_v17 }
 0x138   :  { %2170 = vmatprep.subr.bf16.mxu1 %v3142_v18  ;;  %v308_v18 = vsub.s32 3, %v3406_v30 }
 0x139   :  { %v1367_v7 = vpop.f32.mrf.mxu0 }
 0x13a   :  { %v1410_v29 = vpop.f32.mrf.mxu1  ;;  %v1368_v38 = vadd.f32 %v1367_v7, %v297_v24 }
 0x13b   :  { %2171 = vmatpush2.bf16.msra.mxu1 %v3140_v19  ;;  %v1369_v36 = vpop.f32.mrf.mxu0  ;;  %v304_v19 = vsub.s32 2, %v3406_v30 }
 0x13c   :  { %2172 = vmatprep.subr.bf16.mxu1 %v3145_v20  ;;  %v1412_v31 = vpop.f32.mrf.mxu1  ;;  %v1370_v39 = vadd.f32 %v1369_v36, %v301_v37  ;;  %v1411_v41 = vadd.f32 %v1410_v29, %v1368_v38 }
 0x13d   :  { %v1371_v12 = vpop.f32.mrf.mxu0 }
 0x13e   :  { %v1414_v33 = vpop.f32.mrf.mxu1  ;;  %v1372_v40 = vadd.f32 %v1371_v12, %v297_v24  ;;  %v1413_v43 = vadd.f32 %v1412_v31, %v1370_v39 }
 0x13f   :  { %2173 = vmatpush2.bf16.msra.mxu1 %v3143_v21  ;;  %v1373_v34 = vpop.f32.mrf.mxu0 }
 0x140   :  { %2174 = vmatprep.subr.bf16.mxu1 %v3148_v22  ;;  %v1416_v27 = vpop.f32.mrf.mxu1  ;;  %v1374_v44 = vadd.f32 %v1373_v34, %v301_v37  ;;  %v1415_v47 = vadd.f32 %v1414_v33, %v1372_v40 }
 0x142   :  { %v1496_v0 = vpop.f32.mrf.mxu1  ;;  %v1417_v53 = vadd.f32 %v1416_v27, %v1374_v44 }
 0x143   :  { %2175 = vmatpush2.bf16.msra.mxu1 %v3146_v23  ;;  %v309_v23 = vrot.slane %v292_v35, %v308_v18 }
 0x144   :  { %2176 = vmatprep.subr.bf16.mxu1 %v3151_v25  ;;  %v1498_v15 = vpop.f32.mrf.mxu1  ;;  %v305_v25 = vrot.slane %v292_v35, %v304_v19 }
 0x146   :  { %v1500_v50 = vpop.f32.mrf.mxu1 }
 0x147   :  { %2177 = vmatpush2.bf16.msra.mxu1 %v3149_v26 }
 0x148   :  { %v1502_v60 = vpop.f32.mrf.mxu1 }
 0x179   :  { %v1453_v42 = vpop.f32.mrf.mxu0 }
 0x17a   :  { %v1454_v45 = vadd.f32 %v1453_v42, %v1411_v41 }
 0x17b   :  { %v1455_v46 = vpop.f32.mrf.mxu0 }
 0x17c   :  { %v1456_v48 = vadd.f32 %v1455_v46, %v1413_v43  ;;  %v1497_v56 = vadd.f32 %v1496_v0, %v1454_v45 }
 0x17d   :  { %v1457_v51 = vpop.f32.mrf.mxu0 }
 0x17e   :  { %v1499_v54 = vadd.f32 %v1498_v15, %v1456_v48  ;;  %v1458_v55 = vadd.f32 %v1457_v51, %v1415_v47  ;;  %v1677_v2 = vmax.f32 %v1497_v56, 0.0 }
 0x17f   :  { %v1459_v57 = vpop.f32.mrf.mxu0 }
 0x180   :  { %v1501_v58 = vadd.f32 %v1500_v50, %v1458_v55  ;;  %v1460_v59 = vadd.f32 %v1459_v57, %v1417_v53  ;;  %v1678_v61 = vmax.f32 %v1499_v54, 0.0  ;;  %v1695_v9 = vmul.f32 %v3417_v49, %v1677_v2  ;;  %v3152_v53 = vld [vmem:[#allocation8 + $0x78] sm:$0xff]   ;;  %v3154_v55 = vld [vmem:[#allocation8 + $0x70] sm:$0xff]   ;;  %v3157_v2 = vld [vmem:[#allocation8 + $0x28] sm:$0xff]  }
 0x181   :  { %v3153_v54 = vld [vmem:[#allocation8 + $0x38] sm:$0xff]   ;;  %2712 = vmatprep.subr.bf16.mxu0 %v3152_v53 }
 0x182   :  { %v1681_v62 = vmax.f32 %v1501_v58, 0.0  ;;  %v1503_v63 = vadd.f32 %v1502_v60, %v1460_v59  ;;  %v1696_v5 = vmul.f32 %v3417_v49, %v1678_v61  ;;  %v1539_v13 = vpop.f32.mrf.mxu1  ;;  %v3155_v60 = vld [vmem:[#allocation8 + $0x30] sm:$0xff]  }
 0x183   :  { %v1540_v31 = vadd.f32 %v1539_v13, %v305_v25  ;;  %v3167_v13 = vld [vmem:[#allocation8] sm:$0xff]  }
 0x184   :  { %v1682_v3 = vmax.f32 %v1503_v63, 0.0  ;;  %v1699_v4 = vmul.f32 %v1693_v1, %v1681_v62  ;;  %v1541_v14 = vpop.f32.mrf.mxu1  ;;  %v3156_v62 = vld [vmem:[#allocation8 + $0x68] sm:$0xff]  }
 0x185   :  { %v1542_v29 = vadd.f32 %v1541_v14, %v309_v23 }
 0x186   :  { %v1700_v8 = vmul.f32 %v1693_v1, %v1682_v3  ;;  %v1703_v11 = vpack.c.bf16 %v1699_v4, %v1695_v9  ;;  %v1543_v16 = vpop.f32.mrf.mxu1  ;;  %v3158_v3 = vld [vmem:[#allocation8 + $0x60] sm:$0xff]   ;;  %v3164_v9 = vld [vmem:[#allocation8 + $0x48] sm:$0xff]  }
 0x187   :  { %v1544_v33 = vadd.f32 %v1543_v16, %v305_v25  ;;  %v3159_v4 = vld [vmem:[#allocation8 + $0x20] sm:$0xff]  }
 0x188   :  { %v1704_v10 = vpack.c.bf16 %v1700_v8, %v1696_v5  ;;  %v1545_v20 = vpop.f32.mrf.mxu1  ;;  %v3161_v5 = vld [vmem:[#allocation8 + $0x18] sm:$0xff]   ;;  %v3163_v8 = vld [vmem:[#allocation8 + $0x10] sm:$0xff]  }
 0x189   :  { %v1546_v12 = vadd.f32 %v1545_v20, %v309_v23 }
 0x18a   :  { %2135 = vmatprep.mubr.bf16.mxu0 %v1704_v10  ;;  %v3165_v10 = vld [vmem:[#allocation8 + $0x8] sm:$0xff]  }
 0x18b   :  { %2136 = vmatmul.mubr.bf16.vlgmr.msra.gmra.mxu0 %v1703_v11  ;;  %v3166_v11 = vld [vmem:[#allocation8 + $0x40] sm:$0xff]  }
 0x18c   :  { %2713 = vmatpush3.bf16.msra.mxu0 %v3153_v54 }
 0x18d   :  { %2714 = vmatprep.subr.bf16.mxu0 %v3154_v55 }
 0x190   :  { %2715 = vmatpush3.bf16.msra.mxu0 %v3155_v60 }
 0x191   :  { %2716 = vmatprep.subr.bf16.mxu0 %v3156_v62 }
 0x194   :  { %2717 = vmatpush3.bf16.msra.mxu0 %v3157_v2 }
 0x195   :  { %2718 = vmatprep.subr.bf16.mxu0 %v3158_v3 }
 0x198   :  { %2719 = vmatpush3.bf16.msra.mxu0 %v3159_v4 }
 0x1b9   :  { %v1582_v17 = vpop.f32.mrf.mxu0 }
 0x1ba   :  { %v1583_v24 = vadd.f32 %v1582_v17, %v1540_v31  ;;  %v1771_v17 = vld [vmem:[%s3446_s5] sm:$0x3] }
 0x1bb   :  { %v1584_v21 = vpop.f32.mrf.mxu0  ;;  %v1780_v18 = vrot.slane %v1771_v17, %v300_v6  ;;  %v1776_v19 = vrot.slane %v1771_v17, %v296_v32 }
 0x1bc   :  { %v1585_v36 = vadd.f32 %v1584_v21, %v1542_v29  ;;  %v2195_v29 = vpop.permute.xlu1 %2194 }
 0x1bd   :  { %v1586_v28 = vpop.f32.mrf.mxu0 }
 0x1be   :  { %v1587_v38 = vadd.f32 %v1586_v28, %v1544_v33 }
 0x1bf   :  { %v1588_v27 = vpop.f32.mrf.mxu0 }
 0x1c0   :  { %v1589_v40 = vadd.f32 %v1588_v27, %v1546_v12  ;;  %v2199_v32 = vpop.permute.xlu1 %2198 }
 0x1c2   :  { %v1625_v22 = vpop.f32.mrf.mxu1 }
 0x1c3   :  { %v1626_v39 = vadd.f32 %v1625_v22, %v1583_v24 }
 0x1c4   :  { %v1627_v26 = vpop.f32.mrf.mxu1 }
 0x1c5   :  { %v1628_v0 = vadd.f32 %v1627_v26, %v1585_v36 }
 0x1c6   :  { %v1629_v52 = vpop.f32.mrf.mxu1 }
 0x1c7   :  { %v1630_v41 = vadd.f32 %v1629_v52, %v1587_v38 }
 0x1c8   :  { %v1631_v7 = vpop.f32.mrf.mxu1 }
 0x1c9   :  { %v1632_v43 = vadd.f32 %v1631_v7, %v1589_v40 }
 0x1ca   :  { %v1668_v37 = vpop.f32.mrf.mxu1 }
 0x1cb   :  { %v1669_v35 = vadd.f32 %v1668_v37, %v1626_v39 }
 0x1cc   :  { %v1670_v34 = vpop.f32.mrf.mxu1 }
 0x1cd   :  { %v1671_v15 = vadd.f32 %v1670_v34, %v1628_v0  ;;  %v1679_v50 = vmax.f32 %v1669_v35, 0.0  ;;  %v2695_v35 = vld [vmem:[%s3448_s7] ss:$0 sm:$0xff]  ;;  %s3298_s7 = smov [#allocation10]  }
 0x1ce   :  { %v1672_v42 = vpop.f32.mrf.mxu1  ;;  %s2412_s14 = sshll.u32 %s3298_s7, 4  ;;  %s2413_s14 = int_to_ptr.vmem [resolvable:$true] %s2412_s14 }
 0x1cf   :  { %v1673_v44 = vadd.f32 %v1672_v42, %v1630_v41  ;;  %v1680_v46 = vmax.f32 %v1671_v15, 0.0  ;;  %v1697_v59 = vmul.f32 %v3417_v49, %v1679_v50  ;;  %s3256_s15 = scalar_lea.vmem %s2413_s14, 256  ;;  %p3261_p7 = scmp.lt.s32.totalorder %s2413_s14, %s2413_s14 }
 0x1d0   :  { %v1674_v45 = vpop.f32.mrf.mxu1  ;;  %p3257_p6 = scmp.ne.s32.totalorder %s2413_s14, %s3256_s15  ;;  %p3262_p8 = scmp.lt.s32.totalorder %s3256_s15, %s3256_s15 }
 0x1d1   :  { %v1683_v47 = vmax.f32 %v1673_v44, 0.0  ;;  %v1675_v48 = vadd.f32 %v1674_v45, %v1632_v43  ;;  %v1698_v57 = vmul.f32 %v3417_v49, %v1680_v46  ;;  %v3162_v49 = vld [vmem:[#allocation8 + $0x50] sm:$0xff]  }
 0x1d2   :  { %p3263_p9 = por %p3262_p8, %p3261_p7 }
 0x1d3   :  { %v1684_v51 = vmax.f32 %v1675_v48, 0.0  ;;  %v1701_v56 = vmul.f32 %v1693_v1, %v1683_v47 }
 0x1d4   :  { %p3264_p10 = pnand %p3263_p9, %p3257_p6 }
 0x1d5   :  { %v1702_v58 = vmul.f32 %v1693_v1, %v1684_v51  ;;  %v1705_v63 = vpack.c.bf16 %v1701_v56, %v1697_v59  ;;  %v3160_v1 = vld [vmem:[#allocation8 + $0x58] sm:$0xff]  }
 0x1d6   :  { %2720 = vmatprep.subr.bf16.mxu0 %v3160_v1 }
 0x1d7   :  { %v1706_v61 = vpack.c.bf16 %v1702_v58, %v1698_v57  ;;  %2721 = vmatpush3.bf16.msra.mxu0 %v3161_v5 }
 0x1d8   :  { %2722 = vmatprep.subr.bf16.mxu0 %v3162_v49 }
 0x1d9   :  { %2178 = vmatprep.mubr.bf16.mxu1 %v1706_v61 }
 0x1da   :  { %2179 = vmatmul.mubr.bf16.vlgmr.msra.gmra.mxu1 %v1705_v63 }
 0x1db   :  { %2723 = vmatpush3.bf16.msra.mxu0 %v3163_v8 }
 0x1dc   :  { %2724 = vmatprep.subr.bf16.mxu0 %v3164_v9 }
 0x1df   :  { %2725 = vmatpush3.bf16.msra.mxu0 %v3165_v10 }
 0x1e0   :  { %2726 = vmatprep.subr.bf16.mxu0 %v3166_v11 }
 0x1e3   :  { %2727 = vmatpush3.bf16.msra.mxu0 %v3167_v13 }
 0x24b   :  { %v2137_v14 = vpop.f32.mrf.mxu0 }
 0x24c   :  { %v2138_v23 = vadd.f32 %v2137_v14, %v1776_v19 }
 0x24d   :  { %v2139_v16 = vpop.f32.mrf.mxu0 }
 0x24e   :  { %v2140_v22 = vadd.f32 %v2139_v16, %v1780_v18 }
 0x24f   :  { %v2141_v20 = vpop.f32.mrf.mxu0 }
 0x250   :  { %v2142_v28 = vadd.f32 %v2141_v20, %v1776_v19 }
 0x251   :  { %v2143_v25 = vpop.f32.mrf.mxu0 }
 0x252   :  { %v2144_v33 = vadd.f32 %v2143_v25, %v1780_v18 }
 0x29a   :  { %v2180_v21 = vpop.f32.mrf.mxu1 }
 0x29b   :  { %v2181_v31 = vadd.f32 %v2180_v21, %v2138_v23 }
 0x29c   :  { %v2182_v26 = vpop.f32.mrf.mxu1 }
 0x29d   :  { %v2183_v52 = vadd.f32 %v2182_v26, %v2140_v22  ;;  %v2189_v12 = vmax.f32 %v2181_v31, 0.0 }
 0x29e   :  { %v2184_v7 = vpop.f32.mrf.mxu1 }
 0x29f   :  { %v2185_v36 = vadd.f32 %v2184_v7, %v2142_v28  ;;  %v2190_v27 = vmax.f32 %v2183_v52, 0.0  ;;  %v2201_v34 = vmul.f32 %v2195_v29, %v2189_v12 }
 0x2a0   :  { %v2186_v24 = vpop.f32.mrf.mxu1 }
 0x2a1   :  { %v2191_v37 = vmax.f32 %v2185_v36, 0.0  ;;  %v2187_v6 = vadd.f32 %v2186_v24, %v2144_v33  ;;  %v2202_v0 = vmul.f32 %v2195_v29, %v2190_v27 }
 0x2a3   :  { %v2192_v30 = vmax.f32 %v2187_v6, 0.0  ;;  %v2203_v38 = vmul.f32 %v2199_v32, %v2191_v37 }
 0x2a5   :  { %v2204_v39 = vmul.f32 %v2199_v32, %v2192_v30  ;;  %v2205_v41 = vpack.c.bf16 %v2203_v38, %v2201_v34 }
 0x2a7   :  { %v2206_v40 = vpack.c.bf16 %v2204_v39, %v2202_v0 }
 0x2a9   :  { %2374 = vmatprep.mubr.bf16.mxu0 %v2206_v40 }
 0x2aa   :  { %2375 = vmatmul.mubr.bf16.vlgmr.msra.gmra.mxu0 %v2205_v41 }
 0x36a   :  { %v2728_v15 = vpop.f32.mrf.mxu0 }
 0x36c   :  { %v2729_v42 = vpop.f32.mrf.mxu0 }
 0x36d   :  { %v2730_v43 = vadd.f32 %v2729_v42, %v2728_v15 }
 0x36e   :  { %v2731_v44 = vpop.f32.mrf.mxu0 }
 0x36f   :  { %v2377_v45 = vadd.f32 %v2730_v43, %v2695_v35 }
 0x370   :  { %v2732_v46 = vpop.f32.mrf.mxu0 }
 0x371   :  { %v2733_v47 = vadd.f32 %v2732_v46, %v2731_v44  ;;  %2383 = vmax.xlane.f32.xlu0 %v2377_v45 }
 0x373   :  { %v2380_v48 = vadd.f32 %v2733_v47, %v2695_v35 }
 0x375   :  { %2385 = vmax.xlane.f32.xlu1 %v2380_v48 }
 0x3fa   :  { %v2384_v50 = vpop.xlane.xlu0 %2383 }
 0x3fb   :  { %v2387_v51 = vsub.f32 %v2377_v45, %v2384_v50 }
 0x3fd   :  { %v2389_v53 = vmul.f32 1.442695, %v2387_v51 }
 0x3fe   :  { %v2386_v54 = vpop.xlane.xlu1 %2385 }
 0x3ff   :  { %3168 = vpow2.f32 %v2389_v53  ;;  %v2388_v55 = vsub.f32 %v2380_v48, %v2386_v54 }
 0x401   :  { %v2391_v56 = vmul.f32 1.442695, %v2388_v55 }
 0x403   :  { %3170 = vpow2.f32 %v2391_v56 }
 0x40c   :  { %v3169_v57 = vpop.eup %3168 }
 0x40d   :  { %2393 = vadd.xlane.f32.xlu0 %v3169_v57 }
 0x410   :  { %v3171_v58 = vpop.eup %3170 }
 0x411   :  { %2395 = vadd.xlane.f32.xlu0 %v3171_v58 }
 0x496   :  { %v2394_v59 = vpop.xlane.xlu0 %2393 }
 0x497   :  { %3172 = vlog2.f32 %v2394_v59 }
 0x49a   :  { %v2396_v60 = vpop.xlane.xlu0 %2395 }
 0x49b   :  { %3174 = vlog2.f32 %v2396_v60 }
 0x4a4   :  { %v3173_v61 = vpop.eup %3172 }
 0x4a5   :  { %v2398_v62 = vmul.f32 0.6931472, %v3173_v61 }
 0x4a7   :  { %v2401_v63 = vadd.f32 %v2398_v62, %v2384_v50 }
 0x4a8   :  { %v3175_v2 = vpop.eup %3174 }
 0x4a9   :  { %v2400_v3 = vmul.f32 0.6931472, %v3175_v2  ;;  %v2403_v4 = vsub.f32 %v2377_v45, %v2401_v63 }
 0x4ab   :  { %v2402_v1 = vadd.f32 %v2400_v3, %v2386_v54  ;;  %2405 = vst [vmem:[#allocation10] sm:$0xff] %v2403_v4 }
 0x4ad   :  { %v2404_v5 = vsub.f32 %v2380_v48, %v2402_v1 }
 0x4af   :  { %2406 = vst [vmem:[#allocation10 + $0x8] sm:$0xff] %v2404_v5 }
 0x4b0   :  { %3267 = shalt.err (!%p3264_p10)
}
 0x4b1   :  { %2418 = dma.vmem_to_hbm [thread:$0]  %s2413_s14, 256, %s3449_s8, [#allocation4], %s3291_s21, %s3291_s21, %s3292_s22  }
 0x4b2   :  { %3282 = dma.done.wait [#allocation4], 256  }
 0x4b3   :  { %3283 = vsyncadd [#allocation4], 4294967040 }
 0x4b4   :  { %2422 = vsyncpa [#allocation3], 1 }
 0x4b5   :  { %2423 = vsyncpa [#allocation6], 1 }
 0x4b6   :  { %2424 = vsyncpa [#allocation9], 1 }
 0x4b7   :  { %2425 = vsyncpa [#allocation4], 1 }

</bundles_post_ra>
